<compile_context>
chip_gen: v7x
topology: tpu7x:2x2x1
jax: 0.10.0
libtpu: 0.0.40
codegen_flags: <defaults>
</compile_context>

<pallas_src>
import functools
import math

import jax
import jax.numpy as jnp
from jax import lax
from jax.experimental import pallas as pl
from jax.experimental.pallas import tpu as pltpu

CONTEXT_TYPE_KEY = "type"
GENERATION_TYPE = "gen"
INFERENCE_TYPE = "inf"

_LANE = 128


def _round_up(n, m):
    return ((n + m - 1) // m) * m


def _decoder_block_kernel(
    x_ref,
    ln1_g_ref, ln1_b_ref,
    w_qkv_ref, b_qkv_ref, wo_ref, bo_ref,
    ln2_g_ref, ln2_b_ref,
    wc1_ref, bc1_ref, wc2_ref, bc2_ref,
    w1_ref, b1_ref, w2_ref, b2_ref,
    o_ref,
    *, n_head: int, sparsity: int,
):
    T = x_ref.shape[1]
    C = x_ref.shape[2]
    hd = C // n_head
    eps = 1e-5  # PyTorch LayerNorm default
    f32 = jnp.float32
    bf16 = jnp.bfloat16

    x = x_ref[0].astype(f32)  # (T, C) for the current batch element

    def layernorm(v, g_ref, b_ref):
        mu = jnp.mean(v, axis=-1, keepdims=True)
        var = jnp.mean((v - mu) ** 2, axis=-1, keepdims=True)  # biased, as torch
        return (v - mu) * lax.rsqrt(var + eps) * g_ref[...] + b_ref[...]

    # ---------------- self-attention: attn(ln1(x)) ----------------
    h = layernorm(x, ln1_g_ref, ln1_b_ref)

    # fused QKV projection: one bf16 MXU matmul with N = 3C, f32 accumulation
    qkv = (jnp.dot(h.astype(bf16), w_qkv_ref[...], preferred_element_type=f32)
           + b_qkv_ref[...])                                   # (T, 3C) f32

    scale = 1.0 / math.sqrt(hd)
    # bf16 casts hoisted out of the head loop: one full-width cast per slab
    q = (qkv[:, 0 * C:1 * C] * scale).astype(bf16)   # pre-scaled q (torch MHA)
    k = qkv[:, 1 * C:2 * C].astype(bf16)
    v = qkv[:, 2 * C:3 * C].astype(bf16)

    # boolean causal mask (no materialized (T,T) f32 additive mask)
    ri = lax.broadcasted_iota(jnp.int32, (T, T), 0)
    ci = lax.broadcasted_iota(jnp.int32, (T, T), 1)
    causal = ci <= ri

    # Per-head attention with the output projection folded into the loop:
    # no (T, C) context assembly, no scratch, no sub-128-lane column stores,
    # and only one (T, T) score/exp buffer live per iteration.
    # TODO(synk): replace with batched-head / flash-tiled attention for large T.
    attn = jnp.zeros((T, C), f32)
    for hh in range(n_head):  # static & small
        lo = hh * hd
        # scores: q_h @ k_h^T without materializing a transpose
        s = lax.dot_general(q[:, lo:lo + hd], k[:, lo:lo + hd],
                            (((1,), (1,)), ((), ())),
                            preferred_element_type=f32)
        s = jnp.where(causal, s, f32(-1e30))
        m = jnp.max(s, axis=-1, keepdims=True)
        e = jnp.exp(s - m)
        # approx reciprocal runs on the EUP slot; ~1e-3 rel. error vs exact
        # softmax (deliberate deviation from torch.softmax, documented here)
        inv = pl.reciprocal(jnp.sum(e, axis=-1, keepdims=True), approx=True)
        p = (e * inv).astype(bf16)
        ctx_h = jnp.dot(p, v[:, lo:lo + hd], preferred_element_type=f32)  # (T,hd)
        attn = attn + jnp.dot(ctx_h.astype(bf16), wo_ref[lo:lo + hd, :],
                              preferred_element_type=f32)
    attn = attn + bo_ref[...]

    x = x + attn  # first residual (f32)

    # ---------------- SparseFF.forward_gen on ln2(x) ----------------
    x2 = layernorm(x, ln2_g_ref, ln2_b_ref)
    x2b = x2.astype(bf16)

    # controller: Linear(d_model, low_rank_padded) -> ReLU -> Linear(., d_hidden)
    c_hid = jnp.maximum(
        jnp.dot(x2b, wc1_ref[...], preferred_element_type=f32) + bc1_ref[...], 0.0)
    ch = (jnp.dot(c_hid.astype(bf16), wc2_ref[...], preferred_element_type=f32)
          + bc2_ref[...])                                      # (T, DH) f32
    DH = ch.shape[-1]
    G = DH // sparsity

    # per-group one-hot of the first argmax (torch.argmax + scatter semantics),
    # computed in the native (T, DH) lane layout — no group reshape.
    # Note: relies on float equality against the group max with a -1e30 fill
    # for out-of-group lanes; controller outputs can never reach -1e30.
    col = lax.broadcasted_iota(jnp.int32, (T, DH), 1)
    cmask = jnp.zeros((T, DH), f32)
    for g in range(sparsity):  # static & small
        in_g = (col >= g * G) & (col < (g + 1) * G)
        m_g = jnp.max(jnp.where(in_g, ch, f32(-1e30)), axis=-1, keepdims=True)
        cand = in_g & (ch == m_g)
        first_g = jnp.min(jnp.where(cand, col, DH), axis=-1, keepdims=True)
        cmask = cmask + (col == first_g).astype(f32)

    hid = jnp.maximum(
        jnp.dot(x2b, w1_ref[...], preferred_element_type=f32) + b1_ref[...], 0.0)
    hid = hid * cmask
    # TODO(synk): decode (T==1) path — keep w2 in HBM (pl.ANY), store per-group
    # argmax indices in SMEM, DMA-gather only the `sparsity` active w2 rows per
    # token and finish with a (T, sparsity) x (sparsity, C) matmul.
    ff = (jnp.dot(hid.astype(bf16), w2_ref[...], preferred_element_type=f32)
          + b2_ref[...])

    o_ref[0] = (x + ff).astype(o_ref.dtype)  # second residual


def make_params(key, n_embd, n_head, d_hidden, low_rank):
    """Raw (torch-layout-equivalent) f32 parameters."""
    ks = jax.random.split(key, 10)
    scale = 0.02
    f32 = jnp.float32

    def nrm(k, shape):
        return jax.random.normal(k, shape, dtype=f32) * scale

    return dict(
        ln1_g=jnp.ones((1, n_embd), f32),
        ln1_b=jnp.zeros((1, n_embd), f32),
        wq=nrm(ks[0], (n_embd, n_embd)),
        wk=nrm(ks[1], (n_embd, n_embd)),
        wv=nrm(ks[2], (n_embd, n_embd)),
        bq=jnp.zeros((1, n_embd), f32),
        bk=jnp.zeros((1, n_embd), f32),
        bv=jnp.zeros((1, n_embd), f32),
        wo=nrm(ks[3], (n_embd, n_embd)),
        bo=jnp.zeros((1, n_embd), f32),
        ln2_g=jnp.ones((1, n_embd), f32),
        ln2_b=jnp.zeros((1, n_embd), f32),
        wc1=nrm(ks[4], (n_embd, low_rank)),
        bc1=jnp.zeros((1, low_rank), f32),
        wc2=nrm(ks[5], (low_rank, d_hidden)),
        bc2=jnp.zeros((1, d_hidden), f32),
        w1=nrm(ks[6], (n_embd, d_hidden)),
        b1=nrm(ks[7], (1, d_hidden)),
        w2=nrm(ks[8], (d_hidden, n_embd)),
        b2=nrm(ks[9], (1, n_embd)),
    )


def pack_params(params, *, n_embd, d_hidden, low_rank):
    """Kernel-ready params: bf16 weights, fused QKV, lane-padded controller."""
    bf16 = jnp.bfloat16
    f32 = jnp.float32
    lr_pad = _round_up(low_rank, _LANE)

    w_qkv = jnp.concatenate(
        [params["wq"], params["wk"], params["wv"]], axis=1).astype(bf16)
    b_qkv = jnp.concatenate(
        [params["bq"], params["bk"], params["bv"]], axis=1).astype(f32)

    # zero-padding low_rank is exact: padded controller-hidden units are
    # ReLU(0 + 0) = 0 and the padded wc2 rows are zero.
    wc1 = jnp.zeros((n_embd, lr_pad), bf16).at[:, :low_rank].set(
        params["wc1"].astype(bf16))
    bc1 = jnp.zeros((1, lr_pad), f32).at[:, :low_rank].set(params["bc1"])
    wc2 = jnp.zeros((lr_pad, d_hidden), bf16).at[:low_rank, :].set(
        params["wc2"].astype(bf16))

    return dict(
        ln1_g=params["ln1_g"].astype(f32), ln1_b=params["ln1_b"].astype(f32),
        w_qkv=w_qkv, b_qkv=b_qkv,
        wo=params["wo"].astype(bf16), bo=params["bo"].astype(f32),
        ln2_g=params["ln2_g"].astype(f32), ln2_b=params["ln2_b"].astype(f32),
        wc1=wc1, bc1=bc1, wc2=wc2, bc2=params["bc2"].astype(f32),
        w1=params["w1"].astype(bf16), b1=params["b1"].astype(f32),
        w2=params["w2"].astype(bf16), b2=params["b2"].astype(f32),
    )


def _vmem_limit_bytes(est_bytes):
    """Generation-aware scoped-VMEM clamp.

    ~46 MiB on v7x-class parts (64 MiB physical per TC, leave headroom for
    Mosaic internal scratch / semaphores / spill slots), ~96 MiB on v5e/v6e
    (128 MiB physical).  Falls back to the conservative v7x clamp if the
    hardware query is unavailable.
    """
    try:
        cap = getattr(pltpu.get_tpu_info(), "vmem_capacity_bytes", None)
    except Exception:
        cap = None
    if cap is None or cap <= (80 << 20):
        hi = 46 << 20   # v7x-class
    else:
        hi = 96 << 20   # v5e / v6e
    return int(min(max(est_bytes, 32 << 20), hi))


def decoder_block(inputs, packed, *, n_head, sparsity):
    x, context = inputs
    if context[CONTEXT_TYPE_KEY] != GENERATION_TYPE:
        # TODO(synk): 'inf' (weight-trimming) and gumbel training paths not ported.
        raise NotImplementedError(f"Only '{GENERATION_TYPE}' context is implemented")

    B, T, C = x.shape
    d_hidden = packed["w1"].shape[1]
    lr_pad = packed["wc1"].shape[1]

    ordered = [
        packed["ln1_g"], packed["ln1_b"],
        packed["w_qkv"], packed["b_qkv"], packed["wo"], packed["bo"],
        packed["ln2_g"], packed["ln2_b"],
        packed["wc1"], packed["bc1"], packed["wc2"], packed["bc2"],
        packed["w1"], packed["b1"], packed["w2"], packed["b2"],
    ]

    kernel = functools.partial(_decoder_block_kernel,
                               n_head=n_head, sparsity=sparsity)

    def run(single_buffer_weights):
        def full(arr):
            nd = arr.ndim
            if single_buffer_weights:
                # grid-invariant weights: single-buffer them — double-buffering
                # only doubles resident VMEM with zero overlap benefit.
                return pl.BlockSpec(arr.shape, lambda b, _nd=nd: (0,) * _nd,
                                    pipeline_mode=pl.Buffered(1))
            return pl.BlockSpec(arr.shape, lambda b, _nd=nd: (0,) * _nd)

        in_specs = ([pl.BlockSpec((1, T, C), lambda b: (b, 0, 0))]
                    + [full(a) for a in ordered])
        out_specs = pl.BlockSpec((1, T, C), lambda b: (b, 0, 0))

        def nbytes(a):
            return a.size * a.dtype.itemsize

        wfac = 1 if single_buffer_weights else 2
        weight_bytes = wfac * sum(nbytes(a) for a in ordered)
        io_bytes = 2 * 2 * T * C * 4  # x + o blocks, double-buffered, f32
        # live activations: ~8 (T,C) f32 slabs (x, ln, qkv, attn, residuals),
        # ~4 (T,DH) slabs (ch, cmask, hid), one (T,lr_pad) and ONE (T,T) score
        # tile (the head loop keeps a single score/exp buffer live).
        act_bytes = 4 * T * (8 * C + 4 * d_hidden + lr_pad + 2 * T)
        est = weight_bytes + io_bytes + act_bytes + (4 << 20)

        out = pl.pallas_call(
            kernel,
            out_shape=jax.ShapeDtypeStruct((B, T, C), x.dtype),
            grid=(B,),
            in_specs=in_specs,
            out_specs=out_specs,
            compiler_params=pltpu.CompilerParams(
                dimension_semantics=("parallel",),
                vmem_limit_bytes=_vmem_limit_bytes(est)),
        )(x, *ordered)
        return jax.block_until_ready(out)

    try:
        out = run(True)
    except Exception:
        # pipeline_mode=pl.Buffered(1) not supported by this jax/Mosaic build —
        # fall back to default (double-buffered) weight specs.
        out = run(False)
    return out, context


if __name__ == "__main__":
    # small shapes consistent with the module
    B, n_embd, n_head, block_size = 2, 32, 4, 8
    low_rank, sparsity = 8, 2
    d_hidden = n_embd * 4

    key = jax.random.PRNGKey(0)
    kx, kp = jax.random.split(key)
    x = jax.random.normal(kx, (B, block_size, n_embd), dtype=jnp.float32)
    params = make_params(kp, n_embd, n_head, d_hidden, low_rank)
    packed = pack_params(params, n_embd=n_embd, d_hidden=d_hidden, low_rank=low_rank)

    context = {CONTEXT_TYPE_KEY: GENERATION_TYPE}
    out, _ = decoder_block((x, context), packed, n_head=n_head, sparsity=sparsity)
    out = jax.block_until_ready(out)

    assert out.shape == (B, block_size, n_embd)
    assert bool(jnp.all(jnp.isfinite(out)))
    print("KERNEL_OK")
</pallas_src>

<mosaic_0001>
module attributes {stable_mosaic.version = 11 : i64} {
  func.func @_decoder_block_kernel(%arg0: i32, %arg1: memref<1x8x32xf32, #tpu.memory_space<vmem>>, %arg2: memref<1x32xf32, #tpu.memory_space<vmem>>, %arg3: memref<1x32xf32, #tpu.memory_space<vmem>>, %arg4: memref<32x96xbf16, #tpu.memory_space<vmem>>, %arg5: memref<1x96xf32, #tpu.memory_space<vmem>>, %arg6: memref<32x32xbf16, #tpu.memory_space<vmem>>, %arg7: memref<1x32xf32, #tpu.memory_space<vmem>>, %arg8: memref<1x32xf32, #tpu.memory_space<vmem>>, %arg9: memref<1x32xf32, #tpu.memory_space<vmem>>, %arg10: memref<32x128xbf16, #tpu.memory_space<vmem>>, %arg11: memref<1x128xf32, #tpu.memory_space<vmem>>, %arg12: memref<128x128xbf16, #tpu.memory_space<vmem>>, %arg13: memref<1x128xf32, #tpu.memory_space<vmem>>, %arg14: memref<32x128xbf16, #tpu.memory_space<vmem>>, %arg15: memref<1x128xf32, #tpu.memory_space<vmem>>, %arg16: memref<128x32xbf16, #tpu.memory_space<vmem>>, %arg17: memref<1x32xf32, #tpu.memory_space<vmem>>, %arg18: memref<1x8x32xf32, #tpu.memory_space<vmem>>) attributes {dimension_semantics = [#tpu.dimension_semantics<parallel>], iteration_bounds = array<i64: 2>, scalar_prefetch = 0 : i64, scratch_operands = 0 : i64, tpu.core_type = #tpu.core_type<tc>, window_params = [{transform_indices = @transform_0, window_bounds = array<i64: 1, 8, 32>}, {pipeline_mode = #tpu.pipeline_mode<synchronous>, transform_indices = @transform_1, window_bounds = array<i64: 1, 32>}, {pipeline_mode = #tpu.pipeline_mode<synchronous>, transform_indices = @transform_2, window_bounds = array<i64: 1, 32>}, {pipeline_mode = #tpu.pipeline_mode<synchronous>, transform_indices = @transform_3, window_bounds = array<i64: 32, 96>}, {pipeline_mode = #tpu.pipeline_mode<synchronous>, transform_indices = @transform_4, window_bounds = array<i64: 1, 96>}, {pipeline_mode = #tpu.pipeline_mode<synchronous>, transform_indices = @transform_5, window_bounds = array<i64: 32, 32>}, {pipeline_mode = #tpu.pipeline_mode<synchronous>, transform_indices = @transform_6, window_bounds = array<i64: 1, 32>}, {pipeline_mode = #tpu.pipeline_mode<synchronous>, transform_indices = @transform_7, window_bounds = array<i64: 1, 32>}, {pipeline_mode = #tpu.pipeline_mode<synchronous>, transform_indices = @transform_8, window_bounds = array<i64: 1, 32>}, {pipeline_mode = #tpu.pipeline_mode<synchronous>, transform_indices = @transform_9, window_bounds = array<i64: 32, 128>}, {pipeline_mode = #tpu.pipeline_mode<synchronous>, transform_indices = @transform_10, window_bounds = array<i64: 1, 128>}, {pipeline_mode = #tpu.pipeline_mode<synchronous>, transform_indices = @transform_11, window_bounds = array<i64: 128, 128>}, {pipeline_mode = #tpu.pipeline_mode<synchronous>, transform_indices = @transform_12, window_bounds = array<i64: 1, 128>}, {pipeline_mode = #tpu.pipeline_mode<synchronous>, transform_indices = @transform_13, window_bounds = array<i64: 32, 128>}, {pipeline_mode = #tpu.pipeline_mode<synchronous>, transform_indices = @transform_14, window_bounds = array<i64: 1, 128>}, {pipeline_mode = #tpu.pipeline_mode<synchronous>, transform_indices = @transform_15, window_bounds = array<i64: 128, 32>}, {pipeline_mode = #tpu.pipeline_mode<synchronous>, transform_indices = @transform_16, window_bounds = array<i64: 1, 32>}, {transform_indices = @transform_17, window_bounds = array<i64: 1, 8, 32>}]} {
    %c0 = arith.constant 0 : index
    %c0_0 = arith.constant 0 : index
    %c0_1 = arith.constant 0 : index
    %0 = vector.load %arg1[%c0, %c0_0, %c0_1] : memref<1x8x32xf32, #tpu.memory_space<vmem>>, vector<1x8x32xf32>
    %1 = vector.shape_cast %0 : vector<1x8x32xf32> to vector<8x32xf32>
    %cst = arith.constant dense<0.000000e+00> : vector<8xf32>
    %2 = vector.multi_reduction <add>, %1, %cst [1] : vector<8x32xf32> to vector<8xf32>
    %3 = vector.shape_cast %2 : vector<8xf32> to vector<8x1xf32>
    %cst_2 = arith.constant 3.200000e+01 : f32
    %4 = vector.broadcast %cst_2 : f32 to vector<8x1xf32>
    %5 = arith.divf %3, %4 : vector<8x1xf32>
    %6 = vector.broadcast %5 : vector<8x1xf32> to vector<8x32xf32>
    %7 = arith.subf %1, %6 : vector<8x32xf32>
    %8 = arith.mulf %7, %7 : vector<8x32xf32>
    %cst_3 = arith.constant dense<0.000000e+00> : vector<8xf32>
    %9 = vector.multi_reduction <add>, %8, %cst_3 [1] : vector<8x32xf32> to vector<8xf32>
    %10 = vector.shape_cast %9 : vector<8xf32> to vector<8x1xf32>
    %cst_4 = arith.constant 3.200000e+01 : f32
    %11 = vector.broadcast %cst_4 : f32 to vector<8x1xf32>
    %12 = arith.divf %10, %11 : vector<8x1xf32>
    %13 = vector.broadcast %5 : vector<8x1xf32> to vector<8x32xf32>
    %14 = arith.subf %1, %13 : vector<8x32xf32>
    %cst_5 = arith.constant 9.99999974E-6 : f32
    %15 = vector.broadcast %cst_5 : f32 to vector<8x1xf32>
    %16 = arith.addf %12, %15 : vector<8x1xf32>
    %17 = math.rsqrt %16 : vector<8x1xf32>
    %18 = vector.broadcast %17 : vector<8x1xf32> to vector<8x32xf32>
    %19 = arith.mulf %14, %18 : vector<8x32xf32>
    %c0_6 = arith.constant 0 : index
    %c0_7 = arith.constant 0 : index
    %20 = vector.load %arg2[%c0_6, %c0_7] : memref<1x32xf32, #tpu.memory_space<vmem>>, vector<1x32xf32>
    %21 = vector.broadcast %20 : vector<1x32xf32> to vector<8x32xf32>
    %22 = arith.mulf %19, %21 : vector<8x32xf32>
    %c0_8 = arith.constant 0 : index
    %c0_9 = arith.constant 0 : index
    %23 = vector.load %arg3[%c0_8, %c0_9] : memref<1x32xf32, #tpu.memory_space<vmem>>, vector<1x32xf32>
    %24 = vector.broadcast %23 : vector<1x32xf32> to vector<8x32xf32>
    %25 = arith.addf %22, %24 : vector<8x32xf32>
    %26 = arith.truncf %25 : vector<8x32xf32> to vector<8x32xbf16>
    %c0_10 = arith.constant 0 : index
    %c0_11 = arith.constant 0 : index
    %27 = vector.load %arg4[%c0_10, %c0_11] : memref<32x96xbf16, #tpu.memory_space<vmem>>, vector<32x96xbf16>
    %cst_12 = arith.constant dense<0.000000e+00> : vector<8x96xf32>
    %28 = tpu.matmul %26, %27, %cst_12 {dimension_numbers = #tpu.dot_dimension_numbers<[1], [0], [0], [1], [0, 0, 1, 1], [], []>} : vector<8x32xbf16>, vector<32x96xbf16>, vector<8x96xf32> -> vector<8x96xf32>
    %c0_13 = arith.constant 0 : index
    %c0_14 = arith.constant 0 : index
    %29 = vector.load %arg5[%c0_13, %c0_14] : memref<1x96xf32, #tpu.memory_space<vmem>>, vector<1x96xf32>
    %30 = vector.broadcast %29 : vector<1x96xf32> to vector<8x96xf32>
    %31 = arith.addf %28, %30 : vector<8x96xf32>
    %32 = vector.extract_strided_slice %31 {offsets = [0, 0], sizes = [8, 32], strides = [1, 1]} : vector<8x96xf32> to vector<8x32xf32>
    %cst_15 = arith.constant 0.353553385 : f32
    %33 = vector.broadcast %cst_15 : f32 to vector<8x32xf32>
    %34 = arith.mulf %32, %33 : vector<8x32xf32>
    %35 = arith.truncf %34 : vector<8x32xf32> to vector<8x32xbf16>
    %36 = vector.extract_strided_slice %31 {offsets = [0, 32], sizes = [8, 32], strides = [1, 1]} : vector<8x96xf32> to vector<8x32xf32>
    %37 = arith.truncf %36 : vector<8x32xf32> to vector<8x32xbf16>
    %38 = vector.extract_strided_slice %31 {offsets = [0, 64], sizes = [8, 32], strides = [1, 1]} : vector<8x96xf32> to vector<8x32xf32>
    %39 = arith.truncf %38 : vector<8x32xf32> to vector<8x32xbf16>
    %40 = tpu.iota {dimensions = array<i32: 0>} : vector<8x8xi32>
    %41 = tpu.iota {dimensions = array<i32: 1>} : vector<8x8xi32>
    %42 = arith.cmpi sle, %41, %40 : vector<8x8xi32>
    %cst_16 = arith.constant 0.000000e+00 : f32
    %43 = vector.broadcast %cst_16 : f32 to vector<8x32xf32>
    %44 = vector.extract_strided_slice %35 {offsets = [0, 0], sizes = [8, 8], strides = [1, 1]} : vector<8x32xbf16> to vector<8x8xbf16>
    %45 = vector.extract_strided_slice %37 {offsets = [0, 0], sizes = [8, 8], strides = [1, 1]} : vector<8x32xbf16> to vector<8x8xbf16>
    %cst_17 = arith.constant dense<0.000000e+00> : vector<8x8xf32>
    %46 = tpu.matmul %44, %45, %cst_17 {dimension_numbers = #tpu.dot_dimension_numbers<[1], [1], [0], [0], [0, 0, 1, 0], [], []>} : vector<8x8xbf16>, vector<8x8xbf16>, vector<8x8xf32> -> vector<8x8xf32>
    %cst_18 = arith.constant -1.000000e+30 : f32
    %47 = vector.broadcast %cst_18 : f32 to vector<8x8xf32>
    %48 = arith.select %42, %46, %47 : vector<8x8xi1>, vector<8x8xf32>
    %cst_19 = arith.constant dense<0xFF800000> : vector<8xf32>
    %49 = vector.multi_reduction <maximumf>, %48, %cst_19 [1] : vector<8x8xf32> to vector<8xf32>
    %50 = vector.shape_cast %49 : vector<8xf32> to vector<8x1xf32>
    %51 = vector.broadcast %50 : vector<8x1xf32> to vector<8x8xf32>
    %52 = arith.subf %48, %51 : vector<8x8xf32>
    %53 = math.exp %52 : vector<8x8xf32>
    %cst_20 = arith.constant dense<0.000000e+00> : vector<8xf32>
    %54 = vector.multi_reduction <add>, %53, %cst_20 [1] : vector<8x8xf32> to vector<8xf32>
    %55 = vector.shape_cast %54 : vector<8xf32> to vector<8x1xf32>
    %56 = tpu.reciprocal %55 {approx = true} : vector<8x1xf32> -> vector<8x1xf32>
    %57 = vector.broadcast %56 : vector<8x1xf32> to vector<8x8xf32>
    %58 = arith.mulf %53, %57 : vector<8x8xf32>
    %59 = arith.truncf %58 : vector<8x8xf32> to vector<8x8xbf16>
    %60 = vector.extract_strided_slice %39 {offsets = [0, 0], sizes = [8, 8], strides = [1, 1]} : vector<8x32xbf16> to vector<8x8xbf16>
    %cst_21 = arith.constant dense<0.000000e+00> : vector<8x8xf32>
    %61 = tpu.matmul %59, %60, %cst_21 {dimension_numbers = #tpu.dot_dimension_numbers<[1], [0], [0], [1], [0, 0, 1, 1], [], []>} : vector<8x8xbf16>, vector<8x8xbf16>, vector<8x8xf32> -> vector<8x8xf32>
    %62 = arith.truncf %61 : vector<8x8xf32> to vector<8x8xbf16>
    %c0_22 = arith.constant 0 : index
    %c0_23 = arith.constant 0 : index
    %63 = vector.load %arg6[%c0_22, %c0_23] : memref<32x32xbf16, #tpu.memory_space<vmem>>, vector<8x32xbf16>
    %cst_24 = arith.constant dense<0.000000e+00> : vector<8x32xf32>
    %64 = tpu.matmul %62, %63, %cst_24 {dimension_numbers = #tpu.dot_dimension_numbers<[1], [0], [0], [1], [0, 0, 1, 1], [], []>} : vector<8x8xbf16>, vector<8x32xbf16>, vector<8x32xf32> -> vector<8x32xf32>
    %65 = arith.addf %43, %64 : vector<8x32xf32>
    %66 = vector.extract_strided_slice %35 {offsets = [0, 8], sizes = [8, 8], strides = [1, 1]} : vector<8x32xbf16> to vector<8x8xbf16>
    %67 = vector.extract_strided_slice %37 {offsets = [0, 8], sizes = [8, 8], strides = [1, 1]} : vector<8x32xbf16> to vector<8x8xbf16>
    %cst_25 = arith.constant dense<0.000000e+00> : vector<8x8xf32>
    %68 = tpu.matmul %66, %67, %cst_25 {dimension_numbers = #tpu.dot_dimension_numbers<[1], [1], [0], [0], [0, 0, 1, 0], [], []>} : vector<8x8xbf16>, vector<8x8xbf16>, vector<8x8xf32> -> vector<8x8xf32>
    %cst_26 = arith.constant -1.000000e+30 : f32
    %69 = vector.broadcast %cst_26 : f32 to vector<8x8xf32>
    %70 = arith.select %42, %68, %69 : vector<8x8xi1>, vector<8x8xf32>
    %cst_27 = arith.constant dense<0xFF800000> : vector<8xf32>
    %71 = vector.multi_reduction <maximumf>, %70, %cst_27 [1] : vector<8x8xf32> to vector<8xf32>
    %72 = vector.shape_cast %71 : vector<8xf32> to vector<8x1xf32>
    %73 = vector.broadcast %72 : vector<8x1xf32> to vector<8x8xf32>
    %74 = arith.subf %70, %73 : vector<8x8xf32>
    %75 = math.exp %74 : vector<8x8xf32>
    %cst_28 = arith.constant dense<0.000000e+00> : vector<8xf32>
    %76 = vector.multi_reduction <add>, %75, %cst_28 [1] : vector<8x8xf32> to vector<8xf32>
    %77 = vector.shape_cast %76 : vector<8xf32> to vector<8x1xf32>
    %78 = tpu.reciprocal %77 {approx = true} : vector<8x1xf32> -> vector<8x1xf32>
    %79 = vector.broadcast %78 : vector<8x1xf32> to vector<8x8xf32>
    %80 = arith.mulf %75, %79 : vector<8x8xf32>
    %81 = arith.truncf %80 : vector<8x8xf32> to vector<8x8xbf16>
    %82 = vector.extract_strided_slice %39 {offsets = [0, 8], sizes = [8, 8], strides = [1, 1]} : vector<8x32xbf16> to vector<8x8xbf16>
    %cst_29 = arith.constant dense<0.000000e+00> : vector<8x8xf32>
    %83 = tpu.matmul %81, %82, %cst_29 {dimension_numbers = #tpu.dot_dimension_numbers<[1], [0], [0], [1], [0, 0, 1, 1], [], []>} : vector<8x8xbf16>, vector<8x8xbf16>, vector<8x8xf32> -> vector<8x8xf32>
    %84 = arith.truncf %83 : vector<8x8xf32> to vector<8x8xbf16>
    %c8 = arith.constant 8 : index
    %c0_30 = arith.constant 0 : index
    %85 = vector.load %arg6[%c8, %c0_30] : memref<32x32xbf16, #tpu.memory_space<vmem>>, vector<8x32xbf16>
    %cst_31 = arith.constant dense<0.000000e+00> : vector<8x32xf32>
    %86 = tpu.matmul %84, %85, %cst_31 {dimension_numbers = #tpu.dot_dimension_numbers<[1], [0], [0], [1], [0, 0, 1, 1], [], []>} : vector<8x8xbf16>, vector<8x32xbf16>, vector<8x32xf32> -> vector<8x32xf32>
    %87 = arith.addf %65, %86 : vector<8x32xf32>
    %88 = vector.extract_strided_slice %35 {offsets = [0, 16], sizes = [8, 8], strides = [1, 1]} : vector<8x32xbf16> to vector<8x8xbf16>
    %89 = vector.extract_strided_slice %37 {offsets = [0, 16], sizes = [8, 8], strides = [1, 1]} : vector<8x32xbf16> to vector<8x8xbf16>
    %cst_32 = arith.constant dense<0.000000e+00> : vector<8x8xf32>
    %90 = tpu.matmul %88, %89, %cst_32 {dimension_numbers = #tpu.dot_dimension_numbers<[1], [1], [0], [0], [0, 0, 1, 0], [], []>} : vector<8x8xbf16>, vector<8x8xbf16>, vector<8x8xf32> -> vector<8x8xf32>
    %cst_33 = arith.constant -1.000000e+30 : f32
    %91 = vector.broadcast %cst_33 : f32 to vector<8x8xf32>
    %92 = arith.select %42, %90, %91 : vector<8x8xi1>, vector<8x8xf32>
    %cst_34 = arith.constant dense<0xFF800000> : vector<8xf32>
    %93 = vector.multi_reduction <maximumf>, %92, %cst_34 [1] : vector<8x8xf32> to vector<8xf32>
    %94 = vector.shape_cast %93 : vector<8xf32> to vector<8x1xf32>
    %95 = vector.broadcast %94 : vector<8x1xf32> to vector<8x8xf32>
    %96 = arith.subf %92, %95 : vector<8x8xf32>
    %97 = math.exp %96 : vector<8x8xf32>
    %cst_35 = arith.constant dense<0.000000e+00> : vector<8xf32>
    %98 = vector.multi_reduction <add>, %97, %cst_35 [1] : vector<8x8xf32> to vector<8xf32>
    %99 = vector.shape_cast %98 : vector<8xf32> to vector<8x1xf32>
    %100 = tpu.reciprocal %99 {approx = true} : vector<8x1xf32> -> vector<8x1xf32>
    %101 = vector.broadcast %100 : vector<8x1xf32> to vector<8x8xf32>
    %102 = arith.mulf %97, %101 : vector<8x8xf32>
    %103 = arith.truncf %102 : vector<8x8xf32> to vector<8x8xbf16>
    %104 = vector.extract_strided_slice %39 {offsets = [0, 16], sizes = [8, 8], strides = [1, 1]} : vector<8x32xbf16> to vector<8x8xbf16>
    %cst_36 = arith.constant dense<0.000000e+00> : vector<8x8xf32>
    %105 = tpu.matmul %103, %104, %cst_36 {dimension_numbers = #tpu.dot_dimension_numbers<[1], [0], [0], [1], [0, 0, 1, 1], [], []>} : vector<8x8xbf16>, vector<8x8xbf16>, vector<8x8xf32> -> vector<8x8xf32>
    %106 = arith.truncf %105 : vector<8x8xf32> to vector<8x8xbf16>
    %c16 = arith.constant 16 : index
    %c0_37 = arith.constant 0 : index
    %107 = vector.load %arg6[%c16, %c0_37] : memref<32x32xbf16, #tpu.memory_space<vmem>>, vector<8x32xbf16>
    %cst_38 = arith.constant dense<0.000000e+00> : vector<8x32xf32>
    %108 = tpu.matmul %106, %107, %cst_38 {dimension_numbers = #tpu.dot_dimension_numbers<[1], [0], [0], [1], [0, 0, 1, 1], [], []>} : vector<8x8xbf16>, vector<8x32xbf16>, vector<8x32xf32> -> vector<8x32xf32>
    %109 = arith.addf %87, %108 : vector<8x32xf32>
    %110 = vector.extract_strided_slice %35 {offsets = [0, 24], sizes = [8, 8], strides = [1, 1]} : vector<8x32xbf16> to vector<8x8xbf16>
    %111 = vector.extract_strided_slice %37 {offsets = [0, 24], sizes = [8, 8], strides = [1, 1]} : vector<8x32xbf16> to vector<8x8xbf16>
    %cst_39 = arith.constant dense<0.000000e+00> : vector<8x8xf32>
    %112 = tpu.matmul %110, %111, %cst_39 {dimension_numbers = #tpu.dot_dimension_numbers<[1], [1], [0], [0], [0, 0, 1, 0], [], []>} : vector<8x8xbf16>, vector<8x8xbf16>, vector<8x8xf32> -> vector<8x8xf32>
    %cst_40 = arith.constant -1.000000e+30 : f32
    %113 = vector.broadcast %cst_40 : f32 to vector<8x8xf32>
    %114 = arith.select %42, %112, %113 : vector<8x8xi1>, vector<8x8xf32>
    %cst_41 = arith.constant dense<0xFF800000> : vector<8xf32>
    %115 = vector.multi_reduction <maximumf>, %114, %cst_41 [1] : vector<8x8xf32> to vector<8xf32>
    %116 = vector.shape_cast %115 : vector<8xf32> to vector<8x1xf32>
    %117 = vector.broadcast %116 : vector<8x1xf32> to vector<8x8xf32>
    %118 = arith.subf %114, %117 : vector<8x8xf32>
    %119 = math.exp %118 : vector<8x8xf32>
    %cst_42 = arith.constant dense<0.000000e+00> : vector<8xf32>
    %120 = vector.multi_reduction <add>, %119, %cst_42 [1] : vector<8x8xf32> to vector<8xf32>
    %121 = vector.shape_cast %120 : vector<8xf32> to vector<8x1xf32>
    %122 = tpu.reciprocal %121 {approx = true} : vector<8x1xf32> -> vector<8x1xf32>
    %123 = vector.broadcast %122 : vector<8x1xf32> to vector<8x8xf32>
    %124 = arith.mulf %119, %123 : vector<8x8xf32>
    %125 = arith.truncf %124 : vector<8x8xf32> to vector<8x8xbf16>
    %126 = vector.extract_strided_slice %39 {offsets = [0, 24], sizes = [8, 8], strides = [1, 1]} : vector<8x32xbf16> to vector<8x8xbf16>
    %cst_43 = arith.constant dense<0.000000e+00> : vector<8x8xf32>
    %127 = tpu.matmul %125, %126, %cst_43 {dimension_numbers = #tpu.dot_dimension_numbers<[1], [0], [0], [1], [0, 0, 1, 1], [], []>} : vector<8x8xbf16>, vector<8x8xbf16>, vector<8x8xf32> -> vector<8x8xf32>
    %128 = arith.truncf %127 : vector<8x8xf32> to vector<8x8xbf16>
    %c24 = arith.constant 24 : index
    %c0_44 = arith.constant 0 : index
    %129 = vector.load %arg6[%c24, %c0_44] : memref<32x32xbf16, #tpu.memory_space<vmem>>, vector<8x32xbf16>
    %cst_45 = arith.constant dense<0.000000e+00> : vector<8x32xf32>
    %130 = tpu.matmul %128, %129, %cst_45 {dimension_numbers = #tpu.dot_dimension_numbers<[1], [0], [0], [1], [0, 0, 1, 1], [], []>} : vector<8x8xbf16>, vector<8x32xbf16>, vector<8x32xf32> -> vector<8x32xf32>
    %131 = arith.addf %109, %130 : vector<8x32xf32>
    %c0_46 = arith.constant 0 : index
    %c0_47 = arith.constant 0 : index
    %132 = vector.load %arg7[%c0_46, %c0_47] : memref<1x32xf32, #tpu.memory_space<vmem>>, vector<1x32xf32>
    %133 = vector.broadcast %132 : vector<1x32xf32> to vector<8x32xf32>
    %134 = arith.addf %131, %133 : vector<8x32xf32>
    %135 = arith.addf %1, %134 : vector<8x32xf32>
    %cst_48 = arith.constant dense<0.000000e+00> : vector<8xf32>
    %136 = vector.multi_reduction <add>, %135, %cst_48 [1] : vector<8x32xf32> to vector<8xf32>
    %137 = vector.shape_cast %136 : vector<8xf32> to vector<8x1xf32>
    %cst_49 = arith.constant 3.200000e+01 : f32
    %138 = vector.broadcast %cst_49 : f32 to vector<8x1xf32>
    %139 = arith.divf %137, %138 : vector<8x1xf32>
    %140 = vector.broadcast %139 : vector<8x1xf32> to vector<8x32xf32>
    %141 = arith.subf %135, %140 : vector<8x32xf32>
    %142 = arith.mulf %141, %141 : vector<8x32xf32>
    %cst_50 = arith.constant dense<0.000000e+00> : vector<8xf32>
    %143 = vector.multi_reduction <add>, %142, %cst_50 [1] : vector<8x32xf32> to vector<8xf32>
    %144 = vector.shape_cast %143 : vector<8xf32> to vector<8x1xf32>
    %cst_51 = arith.constant 3.200000e+01 : f32
    %145 = vector.broadcast %cst_51 : f32 to vector<8x1xf32>
    %146 = arith.divf %144, %145 : vector<8x1xf32>
    %147 = vector.broadcast %139 : vector<8x1xf32> to vector<8x32xf32>
    %148 = arith.subf %135, %147 : vector<8x32xf32>
    %cst_52 = arith.constant 9.99999974E-6 : f32
    %149 = vector.broadcast %cst_52 : f32 to vector<8x1xf32>
    %150 = arith.addf %146, %149 : vector<8x1xf32>
    %151 = math.rsqrt %150 : vector<8x1xf32>
    %152 = vector.broadcast %151 : vector<8x1xf32> to vector<8x32xf32>
    %153 = arith.mulf %148, %152 : vector<8x32xf32>
    %c0_53 = arith.constant 0 : index
    %c0_54 = arith.constant 0 : index
    %154 = vector.load %arg8[%c0_53, %c0_54] : memref<1x32xf32, #tpu.memory_space<vmem>>, vector<1x32xf32>
    %155 = vector.broadcast %154 : vector<1x32xf32> to vector<8x32xf32>
    %156 = arith.mulf %153, %155 : vector<8x32xf32>
    %c0_55 = arith.constant 0 : index
    %c0_56 = arith.constant 0 : index
    %157 = vector.load %arg9[%c0_55, %c0_56] : memref<1x32xf32, #tpu.memory_space<vmem>>, vector<1x32xf32>
    %158 = vector.broadcast %157 : vector<1x32xf32> to vector<8x32xf32>
    %159 = arith.addf %156, %158 : vector<8x32xf32>
    %160 = arith.truncf %159 : vector<8x32xf32> to vector<8x32xbf16>
    %c0_57 = arith.constant 0 : index
    %c0_58 = arith.constant 0 : index
    %161 = vector.load %arg10[%c0_57, %c0_58] : memref<32x128xbf16, #tpu.memory_space<vmem>>, vector<32x128xbf16>
    %cst_59 = arith.constant dense<0.000000e+00> : vector<8x128xf32>
    %162 = tpu.matmul %160, %161, %cst_59 {dimension_numbers = #tpu.dot_dimension_numbers<[1], [0], [0], [1], [0, 0, 1, 1], [], []>} : vector<8x32xbf16>, vector<32x128xbf16>, vector<8x128xf32> -> vector<8x128xf32>
    %c0_60 = arith.constant 0 : index
    %c0_61 = arith.constant 0 : index
    %163 = vector.load %arg11[%c0_60, %c0_61] : memref<1x128xf32, #tpu.memory_space<vmem>>, vector<1x128xf32>
    %164 = vector.broadcast %163 : vector<1x128xf32> to vector<8x128xf32>
    %165 = arith.addf %162, %164 : vector<8x128xf32>
    %cst_62 = arith.constant 0.000000e+00 : f32
    %166 = vector.broadcast %cst_62 : f32 to vector<8x128xf32>
    %167 = arith.maximumf %165, %166 : vector<8x128xf32>
    %168 = arith.truncf %167 : vector<8x128xf32> to vector<8x128xbf16>
    %c0_63 = arith.constant 0 : index
    %c0_64 = arith.constant 0 : index
    %169 = vector.load %arg12[%c0_63, %c0_64] : memref<128x128xbf16, #tpu.memory_space<vmem>>, vector<128x128xbf16>
    %cst_65 = arith.constant dense<0.000000e+00> : vector<8x128xf32>
    %170 = tpu.matmul %168, %169, %cst_65 {dimension_numbers = #tpu.dot_dimension_numbers<[1], [0], [0], [1], [0, 0, 1, 1], [], []>} : vector<8x128xbf16>, vector<128x128xbf16>, vector<8x128xf32> -> vector<8x128xf32>
    %c0_66 = arith.constant 0 : index
    %c0_67 = arith.constant 0 : index
    %171 = vector.load %arg13[%c0_66, %c0_67] : memref<1x128xf32, #tpu.memory_space<vmem>>, vector<1x128xf32>
    %172 = vector.broadcast %171 : vector<1x128xf32> to vector<8x128xf32>
    %173 = arith.addf %170, %172 : vector<8x128xf32>
    %174 = tpu.iota {dimensions = array<i32: 1>} : vector<8x128xi32>
    %cst_68 = arith.constant 0.000000e+00 : f32
    %175 = vector.broadcast %cst_68 : f32 to vector<8x128xf32>
    %c0_i32 = arith.constant 0 : i32
    %176 = vector.broadcast %c0_i32 : i32 to vector<8x128xi32>
    %177 = arith.cmpi sge, %174, %176 : vector<8x128xi32>
    %c64_i32 = arith.constant 64 : i32
    %178 = vector.broadcast %c64_i32 : i32 to vector<8x128xi32>
    %179 = arith.cmpi slt, %174, %178 : vector<8x128xi32>
    %180 = arith.andi %177, %179 : vector<8x128xi1>
    %cst_69 = arith.constant -1.000000e+30 : f32
    %181 = vector.broadcast %cst_69 : f32 to vector<8x128xf32>
    %182 = arith.select %180, %173, %181 : vector<8x128xi1>, vector<8x128xf32>
    %cst_70 = arith.constant dense<0xFF800000> : vector<8xf32>
    %183 = vector.multi_reduction <maximumf>, %182, %cst_70 [1] : vector<8x128xf32> to vector<8xf32>
    %184 = vector.shape_cast %183 : vector<8xf32> to vector<8x1xf32>
    %185 = vector.broadcast %184 : vector<8x1xf32> to vector<8x128xf32>
    %186 = arith.cmpf oeq, %173, %185 : vector<8x128xf32>
    %187 = arith.andi %180, %186 : vector<8x128xi1>
    %c128_i32 = arith.constant 128 : i32
    %188 = vector.broadcast %c128_i32 : i32 to vector<8x128xi32>
    %189 = arith.select %187, %174, %188 : vector<8x128xi1>, vector<8x128xi32>
    %cst_71 = arith.constant dense<2147483647> : vector<8xi32>
    %190 = vector.multi_reduction <minsi>, %189, %cst_71 [1] : vector<8x128xi32> to vector<8xi32>
    %191 = vector.shape_cast %190 : vector<8xi32> to vector<8x1xi32>
    %192 = vector.broadcast %191 : vector<8x1xi32> to vector<8x128xi32>
    %193 = arith.cmpi eq, %174, %192 : vector<8x128xi32>
    %194 = arith.extui %193 : vector<8x128xi1> to vector<8x128xi32>
    %195 = arith.sitofp %194 : vector<8x128xi32> to vector<8x128xf32>
    %196 = arith.addf %175, %195 : vector<8x128xf32>
    %c64_i32_72 = arith.constant 64 : i32
    %197 = vector.broadcast %c64_i32_72 : i32 to vector<8x128xi32>
    %198 = arith.cmpi sge, %174, %197 : vector<8x128xi32>
    %c128_i32_73 = arith.constant 128 : i32
    %199 = vector.broadcast %c128_i32_73 : i32 to vector<8x128xi32>
    %200 = arith.cmpi slt, %174, %199 : vector<8x128xi32>
    %201 = arith.andi %198, %200 : vector<8x128xi1>
    %cst_74 = arith.constant -1.000000e+30 : f32
    %202 = vector.broadcast %cst_74 : f32 to vector<8x128xf32>
    %203 = arith.select %201, %173, %202 : vector<8x128xi1>, vector<8x128xf32>
    %cst_75 = arith.constant dense<0xFF800000> : vector<8xf32>
    %204 = vector.multi_reduction <maximumf>, %203, %cst_75 [1] : vector<8x128xf32> to vector<8xf32>
    %205 = vector.shape_cast %204 : vector<8xf32> to vector<8x1xf32>
    %206 = vector.broadcast %205 : vector<8x1xf32> to vector<8x128xf32>
    %207 = arith.cmpf oeq, %173, %206 : vector<8x128xf32>
    %208 = arith.andi %201, %207 : vector<8x128xi1>
    %c128_i32_76 = arith.constant 128 : i32
    %209 = vector.broadcast %c128_i32_76 : i32 to vector<8x128xi32>
    %210 = arith.select %208, %174, %209 : vector<8x128xi1>, vector<8x128xi32>
    %cst_77 = arith.constant dense<2147483647> : vector<8xi32>
    %211 = vector.multi_reduction <minsi>, %210, %cst_77 [1] : vector<8x128xi32> to vector<8xi32>
    %212 = vector.shape_cast %211 : vector<8xi32> to vector<8x1xi32>
    %213 = vector.broadcast %212 : vector<8x1xi32> to vector<8x128xi32>
    %214 = arith.cmpi eq, %174, %213 : vector<8x128xi32>
    %215 = arith.extui %214 : vector<8x128xi1> to vector<8x128xi32>
    %216 = arith.sitofp %215 : vector<8x128xi32> to vector<8x128xf32>
    %217 = arith.addf %196, %216 : vector<8x128xf32>
    %c0_78 = arith.constant 0 : index
    %c0_79 = arith.constant 0 : index
    %218 = vector.load %arg14[%c0_78, %c0_79] : memref<32x128xbf16, #tpu.memory_space<vmem>>, vector<32x128xbf16>
    %cst_80 = arith.constant dense<0.000000e+00> : vector<8x128xf32>
    %219 = tpu.matmul %160, %218, %cst_80 {dimension_numbers = #tpu.dot_dimension_numbers<[1], [0], [0], [1], [0, 0, 1, 1], [], []>} : vector<8x32xbf16>, vector<32x128xbf16>, vector<8x128xf32> -> vector<8x128xf32>
    %c0_81 = arith.constant 0 : index
    %c0_82 = arith.constant 0 : index
    %220 = vector.load %arg15[%c0_81, %c0_82] : memref<1x128xf32, #tpu.memory_space<vmem>>, vector<1x128xf32>
    %221 = vector.broadcast %220 : vector<1x128xf32> to vector<8x128xf32>
    %222 = arith.addf %219, %221 : vector<8x128xf32>
    %cst_83 = arith.constant 0.000000e+00 : f32
    %223 = vector.broadcast %cst_83 : f32 to vector<8x128xf32>
    %224 = arith.maximumf %222, %223 : vector<8x128xf32>
    %225 = arith.mulf %224, %217 : vector<8x128xf32>
    %226 = arith.truncf %225 : vector<8x128xf32> to vector<8x128xbf16>
    %c0_84 = arith.constant 0 : index
    %c0_85 = arith.constant 0 : index
    %227 = vector.load %arg16[%c0_84, %c0_85] : memref<128x32xbf16, #tpu.memory_space<vmem>>, vector<128x32xbf16>
    %cst_86 = arith.constant dense<0.000000e+00> : vector<8x32xf32>
    %228 = tpu.matmul %226, %227, %cst_86 {dimension_numbers = #tpu.dot_dimension_numbers<[1], [0], [0], [1], [0, 0, 1, 1], [], []>} : vector<8x128xbf16>, vector<128x32xbf16>, vector<8x32xf32> -> vector<8x32xf32>
    %c0_87 = arith.constant 0 : index
    %c0_88 = arith.constant 0 : index
    %229 = vector.load %arg17[%c0_87, %c0_88] : memref<1x32xf32, #tpu.memory_space<vmem>>, vector<1x32xf32>
    %230 = vector.broadcast %229 : vector<1x32xf32> to vector<8x32xf32>
    %231 = arith.addf %228, %230 : vector<8x32xf32>
    %232 = arith.addf %135, %231 : vector<8x32xf32>
    %c0_89 = arith.constant 0 : index
    %c0_90 = arith.constant 0 : index
    %c0_91 = arith.constant 0 : index
    %233 = vector.load %arg18[%c0_89, %c0_90, %c0_91] : memref<1x8x32xf32, #tpu.memory_space<vmem>>, vector<1x8x32xf32>
    %234 = vector.shape_cast %233 : vector<1x8x32xf32> to vector<8x32xf32>
    %235 = vector.shape_cast %232 : vector<8x32xf32> to vector<1x8x32xf32>
    tpu.vector_store %arg18[%c0_89, %c0_90, %c0_91], %235 {strides = array<i32>} : memref<1x8x32xf32, #tpu.memory_space<vmem>>, vector<1x8x32xf32>,
    return
  }
  func.func @transform_0(%arg0: i32) -> (i32, i32, i32) {
    %c0_i32 = arith.constant 0 : i32
    %c0_i32_0 = arith.constant 0 : i32
    %c0_i32_1 = arith.constant 0 : i32
    return %arg0, %c0_i32, %c0_i32_0 : i32, i32, i32
  }
  func.func @transform_1(%arg0: i32) -> (i32, i32) {
    %c0_i32 = arith.constant 0 : i32
    %c0_i32_0 = arith.constant 0 : i32
    %c0_i32_1 = arith.constant 0 : i32
    return %c0_i32, %c0_i32_0 : i32, i32
  }
  func.func @transform_2(%arg0: i32) -> (i32, i32) {
    %c0_i32 = arith.constant 0 : i32
    %c0_i32_0 = arith.constant 0 : i32
    %c0_i32_1 = arith.constant 0 : i32
    return %c0_i32, %c0_i32_0 : i32, i32
  }
  func.func @transform_3(%arg0: i32) -> (i32, i32) {
    %c0_i32 = arith.constant 0 : i32
    %c0_i32_0 = arith.constant 0 : i32
    %c0_i32_1 = arith.constant 0 : i32
    return %c0_i32, %c0_i32_0 : i32, i32
  }
  func.func @transform_4(%arg0: i32) -> (i32, i32) {
    %c0_i32 = arith.constant 0 : i32
    %c0_i32_0 = arith.constant 0 : i32
    %c0_i32_1 = arith.constant 0 : i32
    return %c0_i32, %c0_i32_0 : i32, i32
  }
  func.func @transform_5(%arg0: i32) -> (i32, i32) {
    %c0_i32 = arith.constant 0 : i32
    %c0_i32_0 = arith.constant 0 : i32
    %c0_i32_1 = arith.constant 0 : i32
    return %c0_i32, %c0_i32_0 : i32, i32
  }
  func.func @transform_6(%arg0: i32) -> (i32, i32) {
    %c0_i32 = arith.constant 0 : i32
    %c0_i32_0 = arith.constant 0 : i32
    %c0_i32_1 = arith.constant 0 : i32
    return %c0_i32, %c0_i32_0 : i32, i32
  }
  func.func @transform_7(%arg0: i32) -> (i32, i32) {
    %c0_i32 = arith.constant 0 : i32
    %c0_i32_0 = arith.constant 0 : i32
    %c0_i32_1 = arith.constant 0 : i32
    return %c0_i32, %c0_i32_0 : i32, i32
  }
  func.func @transform_8(%arg0: i32) -> (i32, i32) {
    %c0_i32 = arith.constant 0 : i32
    %c0_i32_0 = arith.constant 0 : i32
    %c0_i32_1 = arith.constant 0 : i32
    return %c0_i32, %c0_i32_0 : i32, i32
  }
  func.func @transform_9(%arg0: i32) -> (i32, i32) {
    %c0_i32 = arith.constant 0 : i32
    %c0_i32_0 = arith.constant 0 : i32
    %c0_i32_1 = arith.constant 0 : i32
    return %c0_i32, %c0_i32_0 : i32, i32
  }
  func.func @transform_10(%arg0: i32) -> (i32, i32) {
    %c0_i32 = arith.constant 0 : i32
    %c0_i32_0 = arith.constant 0 : i32
    %c0_i32_1 = arith.constant 0 : i32
    return %c0_i32, %c0_i32_0 : i32, i32
  }
  func.func @transform_11(%arg0: i32) -> (i32, i32) {
    %c0_i32 = arith.constant 0 : i32
    %c0_i32_0 = arith.constant 0 : i32
    %c0_i32_1 = arith.constant 0 : i32
    return %c0_i32, %c0_i32_0 : i32, i32
  }
  func.func @transform_12(%arg0: i32) -> (i32, i32) {
    %c0_i32 = arith.constant 0 : i32
    %c0_i32_0 = arith.constant 0 : i32
    %c0_i32_1 = arith.constant 0 : i32
    return %c0_i32, %c0_i32_0 : i32, i32
  }
  func.func @transform_13(%arg0: i32) -> (i32, i32) {
    %c0_i32 = arith.constant 0 : i32
    %c0_i32_0 = arith.constant 0 : i32
    %c0_i32_1 = arith.constant 0 : i32
    return %c0_i32, %c0_i32_0 : i32, i32
  }
  func.func @transform_14(%arg0: i32) -> (i32, i32) {
    %c0_i32 = arith.constant 0 : i32
    %c0_i32_0 = arith.constant 0 : i32
    %c0_i32_1 = arith.constant 0 : i32
    return %c0_i32, %c0_i32_0 : i32, i32
  }
  func.func @transform_15(%arg0: i32) -> (i32, i32) {
    %c0_i32 = arith.constant 0 : i32
    %c0_i32_0 = arith.constant 0 : i32
    %c0_i32_1 = arith.constant 0 : i32
    return %c0_i32, %c0_i32_0 : i32, i32
  }
  func.func @transform_16(%arg0: i32) -> (i32, i32) {
    %c0_i32 = arith.constant 0 : i32
    %c0_i32_0 = arith.constant 0 : i32
    %c0_i32_1 = arith.constant 0 : i32
    return %c0_i32, %c0_i32_0 : i32, i32
  }
  func.func @transform_17(%arg0: i32) -> (i32, i32, i32) {
    %c0_i32 = arith.constant 0 : i32
    %c0_i32_0 = arith.constant 0 : i32
    %c0_i32_1 = arith.constant 0 : i32
    return %arg0, %c0_i32, %c0_i32_0 : i32, i32, i32
  }
}

module attributes {stable_mosaic.version = 11 : i64} {
  func.func @_decoder_block_kernel(%arg0: i32, %arg1: memref<1x8x32xf32, #tpu.memory_space<vmem>>, %arg2: memref<1x32xf32, #tpu.memory_space<vmem>>, %arg3: memref<1x32xf32, #tpu.memory_space<vmem>>, %arg4: memref<32x96xbf16, #tpu.memory_space<vmem>>, %arg5: memref<1x96xf32, #tpu.memory_space<vmem>>, %arg6: memref<32x32xbf16, #tpu.memory_space<vmem>>, %arg7: memref<1x32xf32, #tpu.memory_space<vmem>>, %arg8: memref<1x32xf32, #tpu.memory_space<vmem>>, %arg9: memref<1x32xf32, #tpu.memory_space<vmem>>, %arg10: memref<32x128xbf16, #tpu.memory_space<vmem>>, %arg11: memref<1x128xf32, #tpu.memory_space<vmem>>, %arg12: memref<128x128xbf16, #tpu.memory_space<vmem>>, %arg13: memref<1x128xf32, #tpu.memory_space<vmem>>, %arg14: memref<32x128xbf16, #tpu.memory_space<vmem>>, %arg15: memref<1x128xf32, #tpu.memory_space<vmem>>, %arg16: memref<128x32xbf16, #tpu.memory_space<vmem>>, %arg17: memref<1x32xf32, #tpu.memory_space<vmem>>, %arg18: memref<1x8x32xf32, #tpu.memory_space<vmem>>) attributes {dimension_semantics = [#tpu.dimension_semantics<parallel>], iteration_bounds = array<i64: 2>, scalar_prefetch = 0 : i64, scratch_operands = 0 : i64, tpu.core_type = #tpu.core_type<tc>, window_params = [{transform_indices = @transform_0, window_bounds = array<i64: 1, 8, 32>}, {pipeline_mode = #tpu.pipeline_mode<synchronous>, transform_indices = @transform_1, window_bounds = array<i64: 1, 32>}, {pipeline_mode = #tpu.pipeline_mode<synchronous>, transform_indices = @transform_2, window_bounds = array<i64: 1, 32>}, {pipeline_mode = #tpu.pipeline_mode<synchronous>, transform_indices = @transform_3, window_bounds = array<i64: 32, 96>}, {pipeline_mode = #tpu.pipeline_mode<synchronous>, transform_indices = @transform_4, window_bounds = array<i64: 1, 96>}, {pipeline_mode = #tpu.pipeline_mode<synchronous>, transform_indices = @transform_5, window_bounds = array<i64: 32, 32>}, {pipeline_mode = #tpu.pipeline_mode<synchronous>, transform_indices = @transform_6, window_bounds = array<i64: 1, 32>}, {pipeline_mode = #tpu.pipeline_mode<synchronous>, transform_indices = @transform_7, window_bounds = array<i64: 1, 32>}, {pipeline_mode = #tpu.pipeline_mode<synchronous>, transform_indices = @transform_8, window_bounds = array<i64: 1, 32>}, {pipeline_mode = #tpu.pipeline_mode<synchronous>, transform_indices = @transform_9, window_bounds = array<i64: 32, 128>}, {pipeline_mode = #tpu.pipeline_mode<synchronous>, transform_indices = @transform_10, window_bounds = array<i64: 1, 128>}, {pipeline_mode = #tpu.pipeline_mode<synchronous>, transform_indices = @transform_11, window_bounds = array<i64: 128, 128>}, {pipeline_mode = #tpu.pipeline_mode<synchronous>, transform_indices = @transform_12, window_bounds = array<i64: 1, 128>}, {pipeline_mode = #tpu.pipeline_mode<synchronous>, transform_indices = @transform_13, window_bounds = array<i64: 32, 128>}, {pipeline_mode = #tpu.pipeline_mode<synchronous>, transform_indices = @transform_14, window_bounds = array<i64: 1, 128>}, {pipeline_mode = #tpu.pipeline_mode<synchronous>, transform_indices = @transform_15, window_bounds = array<i64: 128, 32>}, {pipeline_mode = #tpu.pipeline_mode<synchronous>, transform_indices = @transform_16, window_bounds = array<i64: 1, 32>}, {transform_indices = @transform_17, window_bounds = array<i64: 1, 8, 32>}]} {
    %c0 = arith.constant 0 : index
    %c0_0 = arith.constant 0 : index
    %c0_1 = arith.constant 0 : index
    %0 = vector.load %arg1[%c0, %c0_0, %c0_1] : memref<1x8x32xf32, #tpu.memory_space<vmem>>, vector<1x8x32xf32>
    %1 = vector.shape_cast %0 : vector<1x8x32xf32> to vector<8x32xf32>
    %cst = arith.constant dense<0.000000e+00> : vector<8xf32>
    %2 = vector.multi_reduction <add>, %1, %cst [1] : vector<8x32xf32> to vector<8xf32>
    %3 = vector.shape_cast %2 : vector<8xf32> to vector<8x1xf32>
    %cst_2 = arith.constant 3.200000e+01 : f32
    %4 = vector.broadcast %cst_2 : f32 to vector<8x1xf32>
    %5 = arith.divf %3, %4 : vector<8x1xf32>
    %6 = vector.broadcast %5 : vector<8x1xf32> to vector<8x32xf32>
    %7 = arith.subf %1, %6 : vector<8x32xf32>
    %8 = arith.mulf %7, %7 : vector<8x32xf32>
    %cst_3 = arith.constant dense<0.000000e+00> : vector<8xf32>
    %9 = vector.multi_reduction <add>, %8, %cst_3 [1] : vector<8x32xf32> to vector<8xf32>
    %10 = vector.shape_cast %9 : vector<8xf32> to vector<8x1xf32>
    %cst_4 = arith.constant 3.200000e+01 : f32
    %11 = vector.broadcast %cst_4 : f32 to vector<8x1xf32>
    %12 = arith.divf %10, %11 : vector<8x1xf32>
    %13 = vector.broadcast %5 : vector<8x1xf32> to vector<8x32xf32>
    %14 = arith.subf %1, %13 : vector<8x32xf32>
    %cst_5 = arith.constant 9.99999974E-6 : f32
    %15 = vector.broadcast %cst_5 : f32 to vector<8x1xf32>
    %16 = arith.addf %12, %15 : vector<8x1xf32>
    %17 = math.rsqrt %16 : vector<8x1xf32>
    %18 = vector.broadcast %17 : vector<8x1xf32> to vector<8x32xf32>
    %19 = arith.mulf %14, %18 : vector<8x32xf32>
    %c0_6 = arith.constant 0 : index
    %c0_7 = arith.constant 0 : index
    %20 = vector.load %arg2[%c0_6, %c0_7] : memref<1x32xf32, #tpu.memory_space<vmem>>, vector<1x32xf32>
    %21 = vector.broadcast %20 : vector<1x32xf32> to vector<8x32xf32>
    %22 = arith.mulf %19, %21 : vector<8x32xf32>
    %c0_8 = arith.constant 0 : index
    %c0_9 = arith.constant 0 : index
    %23 = vector.load %arg3[%c0_8, %c0_9] : memref<1x32xf32, #tpu.memory_space<vmem>>, vector<1x32xf32>
    %24 = vector.broadcast %23 : vector<1x32xf32> to vector<8x32xf32>
    %25 = arith.addf %22, %24 : vector<8x32xf32>
    %26 = arith.truncf %25 : vector<8x32xf32> to vector<8x32xbf16>
    %c0_10 = arith.constant 0 : index
    %c0_11 = arith.constant 0 : index
    %27 = vector.load %arg4[%c0_10, %c0_11] : memref<32x96xbf16, #tpu.memory_space<vmem>>, vector<32x96xbf16>
    %cst_12 = arith.constant dense<0.000000e+00> : vector<8x96xf32>
    %28 = tpu.matmul %26, %27, %cst_12 {dimension_numbers = #tpu.dot_dimension_numbers<[1], [0], [0], [1], [0, 0, 1, 1], [], []>} : vector<8x32xbf16>, vector<32x96xbf16>, vector<8x96xf32> -> vector<8x96xf32>
    %c0_13 = arith.constant 0 : index
    %c0_14 = arith.constant 0 : index
    %29 = vector.load %arg5[%c0_13, %c0_14] : memref<1x96xf32, #tpu.memory_space<vmem>>, vector<1x96xf32>
    %30 = vector.broadcast %29 : vector<1x96xf32> to vector<8x96xf32>
    %31 = arith.addf %28, %30 : vector<8x96xf32>
    %32 = vector.extract_strided_slice %31 {offsets = [0, 0], sizes = [8, 32], strides = [1, 1]} : vector<8x96xf32> to vector<8x32xf32>
    %cst_15 = arith.constant 0.353553385 : f32
    %33 = vector.broadcast %cst_15 : f32 to vector<8x32xf32>
    %34 = arith.mulf %32, %33 : vector<8x32xf32>
    %35 = arith.truncf %34 : vector<8x32xf32> to vector<8x32xbf16>
    %36 = vector.extract_strided_slice %31 {offsets = [0, 32], sizes = [8, 32], strides = [1, 1]} : vector<8x96xf32> to vector<8x32xf32>
    %37 = arith.truncf %36 : vector<8x32xf32> to vector<8x32xbf16>
    %38 = vector.extract_strided_slice %31 {offsets = [0, 64], sizes = [8, 32], strides = [1, 1]} : vector<8x96xf32> to vector<8x32xf32>
    %39 = arith.truncf %38 : vector<8x32xf32> to vector<8x32xbf16>
    %40 = tpu.iota {dimensions = array<i32: 0>} : vector<8x8xi32>
    %41 = tpu.iota {dimensions = array<i32: 1>} : vector<8x8xi32>
    %42 = arith.cmpi sle, %41, %40 : vector<8x8xi32>
    %cst_16 = arith.constant 0.000000e+00 : f32
    %43 = vector.broadcast %cst_16 : f32 to vector<8x32xf32>
    %44 = vector.extract_strided_slice %35 {offsets = [0, 0], sizes = [8, 8], strides = [1, 1]} : vector<8x32xbf16> to vector<8x8xbf16>
    %45 = vector.extract_strided_slice %37 {offsets = [0, 0], sizes = [8, 8], strides = [1, 1]} : vector<8x32xbf16> to vector<8x8xbf16>
    %cst_17 = arith.constant dense<0.000000e+00> : vector<8x8xf32>
    %46 = tpu.matmul %44, %45, %cst_17 {dimension_numbers = #tpu.dot_dimension_numbers<[1], [1], [0], [0], [0, 0, 1, 0], [], []>} : vector<8x8xbf16>, vector<8x8xbf16>, vector<8x8xf32> -> vector<8x8xf32>
    %cst_18 = arith.constant -1.000000e+30 : f32
    %47 = vector.broadcast %cst_18 : f32 to vector<8x8xf32>
    %48 = arith.select %42, %46, %47 : vector<8x8xi1>, vector<8x8xf32>
    %cst_19 = arith.constant dense<0xFF800000> : vector<8xf32>
    %49 = vector.multi_reduction <maximumf>, %48, %cst_19 [1] : vector<8x8xf32> to vector<8xf32>
    %50 = vector.shape_cast %49 : vector<8xf32> to vector<8x1xf32>
    %51 = vector.broadcast %50 : vector<8x1xf32> to vector<8x8xf32>
    %52 = arith.subf %48, %51 : vector<8x8xf32>
    %53 = math.exp %52 : vector<8x8xf32>
    %cst_20 = arith.constant dense<0.000000e+00> : vector<8xf32>
    %54 = vector.multi_reduction <add>, %53, %cst_20 [1] : vector<8x8xf32> to vector<8xf32>
    %55 = vector.shape_cast %54 : vector<8xf32> to vector<8x1xf32>
    %56 = tpu.reciprocal %55 {approx = true} : vector<8x1xf32> -> vector<8x1xf32>
    %57 = vector.broadcast %56 : vector<8x1xf32> to vector<8x8xf32>
    %58 = arith.mulf %53, %57 : vector<8x8xf32>
    %59 = arith.truncf %58 : vector<8x8xf32> to vector<8x8xbf16>
    %60 = vector.extract_strided_slice %39 {offsets = [0, 0], sizes = [8, 8], strides = [1, 1]} : vector<8x32xbf16> to vector<8x8xbf16>
    %cst_21 = arith.constant dense<0.000000e+00> : vector<8x8xf32>
    %61 = tpu.matmul %59, %60, %cst_21 {dimension_numbers = #tpu.dot_dimension_numbers<[1], [0], [0], [1], [0, 0, 1, 1], [], []>} : vector<8x8xbf16>, vector<8x8xbf16>, vector<8x8xf32> -> vector<8x8xf32>
    %62 = arith.truncf %61 : vector<8x8xf32> to vector<8x8xbf16>
    %c0_22 = arith.constant 0 : index
    %c0_23 = arith.constant 0 : index
    %63 = vector.load %arg6[%c0_22, %c0_23] : memref<32x32xbf16, #tpu.memory_space<vmem>>, vector<8x32xbf16>
    %cst_24 = arith.constant dense<0.000000e+00> : vector<8x32xf32>
    %64 = tpu.matmul %62, %63, %cst_24 {dimension_numbers = #tpu.dot_dimension_numbers<[1], [0], [0], [1], [0, 0, 1, 1], [], []>} : vector<8x8xbf16>, vector<8x32xbf16>, vector<8x32xf32> -> vector<8x32xf32>
    %65 = arith.addf %43, %64 : vector<8x32xf32>
    %66 = vector.extract_strided_slice %35 {offsets = [0, 8], sizes = [8, 8], strides = [1, 1]} : vector<8x32xbf16> to vector<8x8xbf16>
    %67 = vector.extract_strided_slice %37 {offsets = [0, 8], sizes = [8, 8], strides = [1, 1]} : vector<8x32xbf16> to vector<8x8xbf16>
    %cst_25 = arith.constant dense<0.000000e+00> : vector<8x8xf32>
    %68 = tpu.matmul %66, %67, %cst_25 {dimension_numbers = #tpu.dot_dimension_numbers<[1], [1], [0], [0], [0, 0, 1, 0], [], []>} : vector<8x8xbf16>, vector<8x8xbf16>, vector<8x8xf32> -> vector<8x8xf32>
    %cst_26 = arith.constant -1.000000e+30 : f32
    %69 = vector.broadcast %cst_26 : f32 to vector<8x8xf32>
    %70 = arith.select %42, %68, %69 : vector<8x8xi1>, vector<8x8xf32>
    %cst_27 = arith.constant dense<0xFF800000> : vector<8xf32>
    %71 = vector.multi_reduction <maximumf>, %70, %cst_27 [1] : vector<8x8xf32> to vector<8xf32>
    %72 = vector.shape_cast %71 : vector<8xf32> to vector<8x1xf32>
    %73 = vector.broadcast %72 : vector<8x1xf32> to vector<8x8xf32>
    %74 = arith.subf %70, %73 : vector<8x8xf32>
    %75 = math.exp %74 : vector<8x8xf32>
    %cst_28 = arith.constant dense<0.000000e+00> : vector<8xf32>
    %76 = vector.multi_reduction <add>, %75, %cst_28 [1] : vector<8x8xf32> to vector<8xf32>
    %77 = vector.shape_cast %76 : vector<8xf32> to vector<8x1xf32>
    %78 = tpu.reciprocal %77 {approx = true} : vector<8x1xf32> -> vector<8x1xf32>
    %79 = vector.broadcast %78 : vector<8x1xf32> to vector<8x8xf32>
    %80 = arith.mulf %75, %79 : vector<8x8xf32>
    %81 = arith.truncf %80 : vector<8x8xf32> to vector<8x8xbf16>
    %82 = vector.extract_strided_slice %39 {offsets = [0, 8], sizes = [8, 8], strides = [1, 1]} : vector<8x32xbf16> to vector<8x8xbf16>
    %cst_29 = arith.constant dense<0.000000e+00> : vector<8x8xf32>
    %83 = tpu.matmul %81, %82, %cst_29 {dimension_numbers = #tpu.dot_dimension_numbers<[1], [0], [0], [1], [0, 0, 1, 1], [], []>} : vector<8x8xbf16>, vector<8x8xbf16>, vector<8x8xf32> -> vector<8x8xf32>
    %84 = arith.truncf %83 : vector<8x8xf32> to vector<8x8xbf16>
    %c8 = arith.constant 8 : index
    %c0_30 = arith.constant 0 : index
    %85 = vector.load %arg6[%c8, %c0_30] : memref<32x32xbf16, #tpu.memory_space<vmem>>, vector<8x32xbf16>
    %cst_31 = arith.constant dense<0.000000e+00> : vector<8x32xf32>
    %86 = tpu.matmul %84, %85, %cst_31 {dimension_numbers = #tpu.dot_dimension_numbers<[1], [0], [0], [1], [0, 0, 1, 1], [], []>} : vector<8x8xbf16>, vector<8x32xbf16>, vector<8x32xf32> -> vector<8x32xf32>
    %87 = arith.addf %65, %86 : vector<8x32xf32>
    %88 = vector.extract_strided_slice %35 {offsets = [0, 16], sizes = [8, 8], strides = [1, 1]} : vector<8x32xbf16> to vector<8x8xbf16>
    %89 = vector.extract_strided_slice %37 {offsets = [0, 16], sizes = [8, 8], strides = [1, 1]} : vector<8x32xbf16> to vector<8x8xbf16>
    %cst_32 = arith.constant dense<0.000000e+00> : vector<8x8xf32>
    %90 = tpu.matmul %88, %89, %cst_32 {dimension_numbers = #tpu.dot_dimension_numbers<[1], [1], [0], [0], [0, 0, 1, 0], [], []>} : vector<8x8xbf16>, vector<8x8xbf16>, vector<8x8xf32> -> vector<8x8xf32>
    %cst_33 = arith.constant -1.000000e+30 : f32
    %91 = vector.broadcast %cst_33 : f32 to vector<8x8xf32>
    %92 = arith.select %42, %90, %91 : vector<8x8xi1>, vector<8x8xf32>
    %cst_34 = arith.constant dense<0xFF800000> : vector<8xf32>
    %93 = vector.multi_reduction <maximumf>, %92, %cst_34 [1] : vector<8x8xf32> to vector<8xf32>
    %94 = vector.shape_cast %93 : vector<8xf32> to vector<8x1xf32>
    %95 = vector.broadcast %94 : vector<8x1xf32> to vector<8x8xf32>
    %96 = arith.subf %92, %95 : vector<8x8xf32>
    %97 = math.exp %96 : vector<8x8xf32>
    %cst_35 = arith.constant dense<0.000000e+00> : vector<8xf32>
    %98 = vector.multi_reduction <add>, %97, %cst_35 [1] : vector<8x8xf32> to vector<8xf32>
    %99 = vector.shape_cast %98 : vector<8xf32> to vector<8x1xf32>
    %100 = tpu.reciprocal %99 {approx = true} : vector<8x1xf32> -> vector<8x1xf32>
    %101 = vector.broadcast %100 : vector<8x1xf32> to vector<8x8xf32>
    %102 = arith.mulf %97, %101 : vector<8x8xf32>
    %103 = arith.truncf %102 : vector<8x8xf32> to vector<8x8xbf16>
    %104 = vector.extract_strided_slice %39 {offsets = [0, 16], sizes = [8, 8], strides = [1, 1]} : vector<8x32xbf16> to vector<8x8xbf16>
    %cst_36 = arith.constant dense<0.000000e+00> : vector<8x8xf32>
    %105 = tpu.matmul %103, %104, %cst_36 {dimension_numbers = #tpu.dot_dimension_numbers<[1], [0], [0], [1], [0, 0, 1, 1], [], []>} : vector<8x8xbf16>, vector<8x8xbf16>, vector<8x8xf32> -> vector<8x8xf32>
    %106 = arith.truncf %105 : vector<8x8xf32> to vector<8x8xbf16>
    %c16 = arith.constant 16 : index
    %c0_37 = arith.constant 0 : index
    %107 = vector.load %arg6[%c16, %c0_37] : memref<32x32xbf16, #tpu.memory_space<vmem>>, vector<8x32xbf16>
    %cst_38 = arith.constant dense<0.000000e+00> : vector<8x32xf32>
    %108 = tpu.matmul %106, %107, %cst_38 {dimension_numbers = #tpu.dot_dimension_numbers<[1], [0], [0], [1], [0, 0, 1, 1], [], []>} : vector<8x8xbf16>, vector<8x32xbf16>, vector<8x32xf32> -> vector<8x32xf32>
    %109 = arith.addf %87, %108 : vector<8x32xf32>
    %110 = vector.extract_strided_slice %35 {offsets = [0, 24], sizes = [8, 8], strides = [1, 1]} : vector<8x32xbf16> to vector<8x8xbf16>
    %111 = vector.extract_strided_slice %37 {offsets = [0, 24], sizes = [8, 8], strides = [1, 1]} : vector<8x32xbf16> to vector<8x8xbf16>
    %cst_39 = arith.constant dense<0.000000e+00> : vector<8x8xf32>
    %112 = tpu.matmul %110, %111, %cst_39 {dimension_numbers = #tpu.dot_dimension_numbers<[1], [1], [0], [0], [0, 0, 1, 0], [], []>} : vector<8x8xbf16>, vector<8x8xbf16>, vector<8x8xf32> -> vector<8x8xf32>
    %cst_40 = arith.constant -1.000000e+30 : f32
    %113 = vector.broadcast %cst_40 : f32 to vector<8x8xf32>
    %114 = arith.select %42, %112, %113 : vector<8x8xi1>, vector<8x8xf32>
    %cst_41 = arith.constant dense<0xFF800000> : vector<8xf32>
    %115 = vector.multi_reduction <maximumf>, %114, %cst_41 [1] : vector<8x8xf32> to vector<8xf32>
    %116 = vector.shape_cast %115 : vector<8xf32> to vector<8x1xf32>
    %117 = vector.broadcast %116 : vector<8x1xf32> to vector<8x8xf32>
    %118 = arith.subf %114, %117 : vector<8x8xf32>
    %119 = math.exp %118 : vector<8x8xf32>
    %cst_42 = arith.constant dense<0.000000e+00> : vector<8xf32>
    %120 = vector.multi_reduction <add>, %119, %cst_42 [1] : vector<8x8xf32> to vector<8xf32>
    %121 = vector.shape_cast %120 : vector<8xf32> to vector<8x1xf32>
    %122 = tpu.reciprocal %121 {approx = true} : vector<8x1xf32> -> vector<8x1xf32>
    %123 = vector.broadcast %122 : vector<8x1xf32> to vector<8x8xf32>
    %124 = arith.mulf %119, %123 : vector<8x8xf32>
    %125 = arith.truncf %124 : vector<8x8xf32> to vector<8x8xbf16>
    %126 = vector.extract_strided_slice %39 {offsets = [0, 24], sizes = [8, 8], strides = [1, 1]} : vector<8x32xbf16> to vector<8x8xbf16>
    %cst_43 = arith.constant dense<0.000000e+00> : vector<8x8xf32>
    %127 = tpu.matmul %125, %126, %cst_43 {dimension_numbers = #tpu.dot_dimension_numbers<[1], [0], [0], [1], [0, 0, 1, 1], [], []>} : vector<8x8xbf16>, vector<8x8xbf16>, vector<8x8xf32> -> vector<8x8xf32>
    %128 = arith.truncf %127 : vector<8x8xf32> to vector<8x8xbf16>
    %c24 = arith.constant 24 : index
    %c0_44 = arith.constant 0 : index
    %129 = vector.load %arg6[%c24, %c0_44] : memref<32x32xbf16, #tpu.memory_space<vmem>>, vector<8x32xbf16>
    %cst_45 = arith.constant dense<0.000000e+00> : vector<8x32xf32>
    %130 = tpu.matmul %128, %129, %cst_45 {dimension_numbers = #tpu.dot_dimension_numbers<[1], [0], [0], [1], [0, 0, 1, 1], [], []>} : vector<8x8xbf16>, vector<8x32xbf16>, vector<8x32xf32> -> vector<8x32xf32>
    %131 = arith.addf %109, %130 : vector<8x32xf32>
    %c0_46 = arith.constant 0 : index
    %c0_47 = arith.constant 0 : index
    %132 = vector.load %arg7[%c0_46, %c0_47] : memref<1x32xf32, #tpu.memory_space<vmem>>, vector<1x32xf32>
    %133 = vector.broadcast %132 : vector<1x32xf32> to vector<8x32xf32>
    %134 = arith.addf %131, %133 : vector<8x32xf32>
    %135 = arith.addf %1, %134 : vector<8x32xf32>
    %cst_48 = arith.constant dense<0.000000e+00> : vector<8xf32>
    %136 = vector.multi_reduction <add>, %135, %cst_48 [1] : vector<8x32xf32> to vector<8xf32>
    %137 = vector.shape_cast %136 : vector<8xf32> to vector<8x1xf32>
    %cst_49 = arith.constant 3.200000e+01 : f32
    %138 = vector.broadcast %cst_49 : f32 to vector<8x1xf32>
    %139 = arith.divf %137, %138 : vector<8x1xf32>
    %140 = vector.broadcast %139 : vector<8x1xf32> to vector<8x32xf32>
    %141 = arith.subf %135, %140 : vector<8x32xf32>
    %142 = arith.mulf %141, %141 : vector<8x32xf32>
    %cst_50 = arith.constant dense<0.000000e+00> : vector<8xf32>
    %143 = vector.multi_reduction <add>, %142, %cst_50 [1] : vector<8x32xf32> to vector<8xf32>
    %144 = vector.shape_cast %143 : vector<8xf32> to vector<8x1xf32>
    %cst_51 = arith.constant 3.200000e+01 : f32
    %145 = vector.broadcast %cst_51 : f32 to vector<8x1xf32>
    %146 = arith.divf %144, %145 : vector<8x1xf32>
    %147 = vector.broadcast %139 : vector<8x1xf32> to vector<8x32xf32>
    %148 = arith.subf %135, %147 : vector<8x32xf32>
    %cst_52 = arith.constant 9.99999974E-6 : f32
    %149 = vector.broadcast %cst_52 : f32 to vector<8x1xf32>
    %150 = arith.addf %146, %149 : vector<8x1xf32>
    %151 = math.rsqrt %150 : vector<8x1xf32>
    %152 = vector.broadcast %151 : vector<8x1xf32> to vector<8x32xf32>
    %153 = arith.mulf %148, %152 : vector<8x32xf32>
    %c0_53 = arith.constant 0 : index
    %c0_54 = arith.constant 0 : index
    %154 = vector.load %arg8[%c0_53, %c0_54] : memref<1x32xf32, #tpu.memory_space<vmem>>, vector<1x32xf32>
    %155 = vector.broadcast %154 : vector<1x32xf32> to vector<8x32xf32>
    %156 = arith.mulf %153, %155 : vector<8x32xf32>
    %c0_55 = arith.constant 0 : index
    %c0_56 = arith.constant 0 : index
    %157 = vector.load %arg9[%c0_55, %c0_56] : memref<1x32xf32, #tpu.memory_space<vmem>>, vector<1x32xf32>
    %158 = vector.broadcast %157 : vector<1x32xf32> to vector<8x32xf32>
    %159 = arith.addf %156, %158 : vector<8x32xf32>
    %160 = arith.truncf %159 : vector<8x32xf32> to vector<8x32xbf16>
    %c0_57 = arith.constant 0 : index
    %c0_58 = arith.constant 0 : index
    %161 = vector.load %arg10[%c0_57, %c0_58] : memref<32x128xbf16, #tpu.memory_space<vmem>>, vector<32x128xbf16>
    %cst_59 = arith.constant dense<0.000000e+00> : vector<8x128xf32>
    %162 = tpu.matmul %160, %161, %cst_59 {dimension_numbers = #tpu.dot_dimension_numbers<[1], [0], [0], [1], [0, 0, 1, 1], [], []>} : vector<8x32xbf16>, vector<32x128xbf16>, vector<8x128xf32> -> vector<8x128xf32>
    %c0_60 = arith.constant 0 : index
    %c0_61 = arith.constant 0 : index
    %163 = vector.load %arg11[%c0_60, %c0_61] : memref<1x128xf32, #tpu.memory_space<vmem>>, vector<1x128xf32>
    %164 = vector.broadcast %163 : vector<1x128xf32> to vector<8x128xf32>
    %165 = arith.addf %162, %164 : vector<8x128xf32>
    %cst_62 = arith.constant 0.000000e+00 : f32
    %166 = vector.broadcast %cst_62 : f32 to vector<8x128xf32>
    %167 = arith.maximumf %165, %166 : vector<8x128xf32>
    %168 = arith.truncf %167 : vector<8x128xf32> to vector<8x128xbf16>
    %c0_63 = arith.constant 0 : index
    %c0_64 = arith.constant 0 : index
    %169 = vector.load %arg12[%c0_63, %c0_64] : memref<128x128xbf16, #tpu.memory_space<vmem>>, vector<128x128xbf16>
    %cst_65 = arith.constant dense<0.000000e+00> : vector<8x128xf32>
    %170 = tpu.matmul %168, %169, %cst_65 {dimension_numbers = #tpu.dot_dimension_numbers<[1], [0], [0], [1], [0, 0, 1, 1], [], []>} : vector<8x128xbf16>, vector<128x128xbf16>, vector<8x128xf32> -> vector<8x128xf32>
    %c0_66 = arith.constant 0 : index
    %c0_67 = arith.constant 0 : index
    %171 = vector.load %arg13[%c0_66, %c0_67] : memref<1x128xf32, #tpu.memory_space<vmem>>, vector<1x128xf32>
    %172 = vector.broadcast %171 : vector<1x128xf32> to vector<8x128xf32>
    %173 = arith.addf %170, %172 : vector<8x128xf32>
    %174 = tpu.iota {dimensions = array<i32: 1>} : vector<8x128xi32>
    %cst_68 = arith.constant 0.000000e+00 : f32
    %175 = vector.broadcast %cst_68 : f32 to vector<8x128xf32>
    %c0_i32 = arith.constant 0 : i32
    %176 = vector.broadcast %c0_i32 : i32 to vector<8x128xi32>
    %177 = arith.cmpi sge, %174, %176 : vector<8x128xi32>
    %c64_i32 = arith.constant 64 : i32
    %178 = vector.broadcast %c64_i32 : i32 to vector<8x128xi32>
    %179 = arith.cmpi slt, %174, %178 : vector<8x128xi32>
    %180 = arith.andi %177, %179 : vector<8x128xi1>
    %cst_69 = arith.constant -1.000000e+30 : f32
    %181 = vector.broadcast %cst_69 : f32 to vector<8x128xf32>
    %182 = arith.select %180, %173, %181 : vector<8x128xi1>, vector<8x128xf32>
    %cst_70 = arith.constant dense<0xFF800000> : vector<8xf32>
    %183 = vector.multi_reduction <maximumf>, %182, %cst_70 [1] : vector<8x128xf32> to vector<8xf32>
    %184 = vector.shape_cast %183 : vector<8xf32> to vector<8x1xf32>
    %185 = vector.broadcast %184 : vector<8x1xf32> to vector<8x128xf32>
    %186 = arith.cmpf oeq, %173, %185 : vector<8x128xf32>
    %187 = arith.andi %180, %186 : vector<8x128xi1>
    %c128_i32 = arith.constant 128 : i32
    %188 = vector.broadcast %c128_i32 : i32 to vector<8x128xi32>
    %189 = arith.select %187, %174, %188 : vector<8x128xi1>, vector<8x128xi32>
    %cst_71 = arith.constant dense<2147483647> : vector<8xi32>
    %190 = vector.multi_reduction <minsi>, %189, %cst_71 [1] : vector<8x128xi32> to vector<8xi32>
    %191 = vector.shape_cast %190 : vector<8xi32> to vector<8x1xi32>
    %192 = vector.broadcast %191 : vector<8x1xi32> to vector<8x128xi32>
    %193 = arith.cmpi eq, %174, %192 : vector<8x128xi32>
    %194 = arith.extui %193 : vector<8x128xi1> to vector<8x128xi32>
    %195 = arith.sitofp %194 : vector<8x128xi32> to vector<8x128xf32>
    %196 = arith.addf %175, %195 : vector<8x128xf32>
    %c64_i32_72 = arith.constant 64 : i32
    %197 = vector.broadcast %c64_i32_72 : i32 to vector<8x128xi32>
    %198 = arith.cmpi sge, %174, %197 : vector<8x128xi32>
    %c128_i32_73 = arith.constant 128 : i32
    %199 = vector.broadcast %c128_i32_73 : i32 to vector<8x128xi32>
    %200 = arith.cmpi slt, %174, %199 : vector<8x128xi32>
    %201 = arith.andi %198, %200 : vector<8x128xi1>
    %cst_74 = arith.constant -1.000000e+30 : f32
    %202 = vector.broadcast %cst_74 : f32 to vector<8x128xf32>
    %203 = arith.select %201, %173, %202 : vector<8x128xi1>, vector<8x128xf32>
    %cst_75 = arith.constant dense<0xFF800000> : vector<8xf32>
    %204 = vector.multi_reduction <maximumf>, %203, %cst_75 [1] : vector<8x128xf32> to vector<8xf32>
    %205 = vector.shape_cast %204 : vector<8xf32> to vector<8x1xf32>
    %206 = vector.broadcast %205 : vector<8x1xf32> to vector<8x128xf32>
    %207 = arith.cmpf oeq, %173, %206 : vector<8x128xf32>
    %208 = arith.andi %201, %207 : vector<8x128xi1>
    %c128_i32_76 = arith.constant 128 : i32
    %209 = vector.broadcast %c128_i32_76 : i32 to vector<8x128xi32>
    %210 = arith.select %208, %174, %209 : vector<8x128xi1>, vector<8x128xi32>
    %cst_77 = arith.constant dense<2147483647> : vector<8xi32>
    %211 = vector.multi_reduction <minsi>, %210, %cst_77 [1] : vector<8x128xi32> to vector<8xi32>
    %212 = vector.shape_cast %211 : vector<8xi32> to vector<8x1xi32>
    %213 = vector.broadcast %212 : vector<8x1xi32> to vector<8x128xi32>
    %214 = arith.cmpi eq, %174, %213 : vector<8x128xi32>
    %215 = arith.extui %214 : vector<8x128xi1> to vector<8x128xi32>
    %216 = arith.sitofp %215 : vector<8x128xi32> to vector<8x128xf32>
    %217 = arith.addf %196, %216 : vector<8x128xf32>
    %c0_78 = arith.constant 0 : index
    %c0_79 = arith.constant 0 : index
    %218 = vector.load %arg14[%c0_78, %c0_79] : memref<32x128xbf16, #tpu.memory_space<vmem>>, vector<32x128xbf16>
    %cst_80 = arith.constant dense<0.000000e+00> : vector<8x128xf32>
    %219 = tpu.matmul %160, %218, %cst_80 {dimension_numbers = #tpu.dot_dimension_numbers<[1], [0], [0], [1], [0, 0, 1, 1], [], []>} : vector<8x32xbf16>, vector<32x128xbf16>, vector<8x128xf32> -> vector<8x128xf32>
    %c0_81 = arith.constant 0 : index
    %c0_82 = arith.constant 0 : index
    %220 = vector.load %arg15[%c0_81, %c0_82] : memref<1x128xf32, #tpu.memory_space<vmem>>, vector<1x128xf32>
    %221 = vector.broadcast %220 : vector<1x128xf32> to vector<8x128xf32>
    %222 = arith.addf %219, %221 : vector<8x128xf32>
    %cst_83 = arith.constant 0.000000e+00 : f32
    %223 = vector.broadcast %cst_83 : f32 to vector<8x128xf32>
    %224 = arith.maximumf %222, %223 : vector<8x128xf32>
    %225 = arith.mulf %224, %217 : vector<8x128xf32>
    %226 = arith.truncf %225 : vector<8x128xf32> to vector<8x128xbf16>
    %c0_84 = arith.constant 0 : index
    %c0_85 = arith.constant 0 : index
    %227 = vector.load %arg16[%c0_84, %c0_85] : memref<128x32xbf16, #tpu.memory_space<vmem>>, vector<128x32xbf16>
    %cst_86 = arith.constant dense<0.000000e+00> : vector<8x32xf32>
    %228 = tpu.matmul %226, %227, %cst_86 {dimension_numbers = #tpu.dot_dimension_numbers<[1], [0], [0], [1], [0, 0, 1, 1], [], []>} : vector<8x128xbf16>, vector<128x32xbf16>, vector<8x32xf32> -> vector<8x32xf32>
    %c0_87 = arith.constant 0 : index
    %c0_88 = arith.constant 0 : index
    %229 = vector.load %arg17[%c0_87, %c0_88] : memref<1x32xf32, #tpu.memory_space<vmem>>, vector<1x32xf32>
    %230 = vector.broadcast %229 : vector<1x32xf32> to vector<8x32xf32>
    %231 = arith.addf %228, %230 : vector<8x32xf32>
    %232 = arith.addf %135, %231 : vector<8x32xf32>
    %c0_89 = arith.constant 0 : index
    %c0_90 = arith.constant 0 : index
    %c0_91 = arith.constant 0 : index
    %233 = vector.load %arg18[%c0_89, %c0_90, %c0_91] : memref<1x8x32xf32, #tpu.memory_space<vmem>>, vector<1x8x32xf32>
    %234 = vector.shape_cast %233 : vector<1x8x32xf32> to vector<8x32xf32>
    %235 = vector.shape_cast %232 : vector<8x32xf32> to vector<1x8x32xf32>
    tpu.vector_store %arg18[%c0_89, %c0_90, %c0_91], %235 {strides = array<i32>} : memref<1x8x32xf32, #tpu.memory_space<vmem>>, vector<1x8x32xf32>,
    return
  }
  func.func @transform_0(%arg0: i32) -> (i32, i32, i32) {
    %c0_i32 = arith.constant 0 : i32
    %c0_i32_0 = arith.constant 0 : i32
    %c0_i32_1 = arith.constant 0 : i32
    return %arg0, %c0_i32, %c0_i32_0 : i32, i32, i32
  }
  func.func @transform_1(%arg0: i32) -> (i32, i32) {
    %c0_i32 = arith.constant 0 : i32
    %c0_i32_0 = arith.constant 0 : i32
    %c0_i32_1 = arith.constant 0 : i32
    return %c0_i32, %c0_i32_0 : i32, i32
  }
  func.func @transform_2(%arg0: i32) -> (i32, i32) {
    %c0_i32 = arith.constant 0 : i32
    %c0_i32_0 = arith.constant 0 : i32
    %c0_i32_1 = arith.constant 0 : i32
    return %c0_i32, %c0_i32_0 : i32, i32
  }
  func.func @transform_3(%arg0: i32) -> (i32, i32) {
    %c0_i32 = arith.constant 0 : i32
    %c0_i32_0 = arith.constant 0 : i32
    %c0_i32_1 = arith.constant 0 : i32
    return %c0_i32, %c0_i32_0 : i32, i32
  }
  func.func @transform_4(%arg0: i32) -> (i32, i32) {
    %c0_i32 = arith.constant 0 : i32
    %c0_i32_0 = arith.constant 0 : i32
    %c0_i32_1 = arith.constant 0 : i32
    return %c0_i32, %c0_i32_0 : i32, i32
  }
  func.func @transform_5(%arg0: i32) -> (i32, i32) {
    %c0_i32 = arith.constant 0 : i32
    %c0_i32_0 = arith.constant 0 : i32
    %c0_i32_1 = arith.constant 0 : i32
    return %c0_i32, %c0_i32_0 : i32, i32
  }
  func.func @transform_6(%arg0: i32) -> (i32, i32) {
    %c0_i32 = arith.constant 0 : i32
    %c0_i32_0 = arith.constant 0 : i32
    %c0_i32_1 = arith.constant 0 : i32
    return %c0_i32, %c0_i32_0 : i32, i32
  }
  func.func @transform_7(%arg0: i32) -> (i32, i32) {
    %c0_i32 = arith.constant 0 : i32
    %c0_i32_0 = arith.constant 0 : i32
    %c0_i32_1 = arith.constant 0 : i32
    return %c0_i32, %c0_i32_0 : i32, i32
  }
  func.func @transform_8(%arg0: i32) -> (i32, i32) {
    %c0_i32 = arith.constant 0 : i32
    %c0_i32_0 = arith.constant 0 : i32
    %c0_i32_1 = arith.constant 0 : i32
    return %c0_i32, %c0_i32_0 : i32, i32
  }
  func.func @transform_9(%arg0: i32) -> (i32, i32) {
    %c0_i32 = arith.constant 0 : i32
    %c0_i32_0 = arith.constant 0 : i32
    %c0_i32_1 = arith.constant 0 : i32
    return %c0_i32, %c0_i32_0 : i32, i32
  }
  func.func @transform_10(%arg0: i32) -> (i32, i32) {
    %c0_i32 = arith.constant 0 : i32
    %c0_i32_0 = arith.constant 0 : i32
    %c0_i32_1 = arith.constant 0 : i32
    return %c0_i32, %c0_i32_0 : i32, i32
  }
  func.func @transform_11(%arg0: i32) -> (i32, i32) {
    %c0_i32 = arith.constant 0 : i32
    %c0_i32_0 = arith.constant 0 : i32
    %c0_i32_1 = arith.constant 0 : i32
    return %c0_i32, %c0_i32_0 : i32, i32
  }
  func.func @transform_12(%arg0: i32) -> (i32, i32) {
    %c0_i32 = arith.constant 0 : i32
    %c0_i32_0 = arith.constant 0 : i32
    %c0_i32_1 = arith.constant 0 : i32
    return %c0_i32, %c0_i32_0 : i32, i32
  }
  func.func @transform_13(%arg0: i32) -> (i32, i32) {
    %c0_i32 = arith.constant 0 : i32
    %c0_i32_0 = arith.constant 0 : i32
    %c0_i32_1 = arith.constant 0 : i32
    return %c0_i32, %c0_i32_0 : i32, i32
  }
  func.func @transform_14(%arg0: i32) -> (i32, i32) {
    %c0_i32 = arith.constant 0 : i32
    %c0_i32_0 = arith.constant 0 : i32
    %c0_i32_1 = arith.constant 0 : i32
    return %c0_i32, %c0_i32_0 : i32, i32
  }
  func.func @transform_15(%arg0: i32) -> (i32, i32) {
    %c0_i32 = arith.constant 0 : i32
    %c0_i32_0 = arith.constant 0 : i32
    %c0_i32_1 = arith.constant 0 : i32
    return %c0_i32, %c0_i32_0 : i32, i32
  }
  func.func @transform_16(%arg0: i32) -> (i32, i32) {
    %c0_i32 = arith.constant 0 : i32
    %c0_i32_0 = arith.constant 0 : i32
    %c0_i32_1 = arith.constant 0 : i32
    return %c0_i32, %c0_i32_0 : i32, i32
  }
  func.func @transform_17(%arg0: i32) -> (i32, i32, i32) {
    %c0_i32 = arith.constant 0 : i32
    %c0_i32_0 = arith.constant 0 : i32
    %c0_i32_1 = arith.constant 0 : i32
    return %arg0, %c0_i32, %c0_i32_0 : i32, i32, i32
  }
}

</mosaic_0001>

<bundles_post_ra>
// kernel: tpu_custom_call.1
= control target key start
LH: loop header
LB: loop body
LE: loop exit
PB: predicated region body
PF: predicated region fallthrough
CT: control target
= control target key end

     0   :  { %s3490_s0 = inlined_call_operand.vmem [shape: f32[2,8,32], index: 0, kind: input, shape index: {}]   ;;  %s3491_s1 = inlined_call_operand.vmem [shape: f32[1,32], index: 1, kind: input, shape index: {}]   ;;  %s3492_s2 = inlined_call_operand.hbm [shape: f32[1,32], index: 2, kind: input, shape index: {}]   ;;  %s3493_s3 = inlined_call_operand.vmem [shape: bf16[32,96], index: 3, kind: input, shape index: {}]   ;;  %s3494_s4 = inlined_call_operand.hbm [shape: f32[1,96], index: 4, kind: input, shape index: {}]   ;;  %s3495_s5 = inlined_call_operand.hbm [shape: bf16[32,32], index: 5, kind: input, shape index: {}]   ;;  %s3496_s6 = inlined_call_operand.hbm [shape: f32[1,32], index: 6, kind: input, shape index: {}]   ;;  %s3497_s7 = inlined_call_operand.hbm [shape: f32[1,32], index: 7, kind: input, shape index: {}]   ;;  %s3498_s8 = inlined_call_operand.hbm [shape: f32[1,32], index: 8, kind: input, shape index: {}]   ;;  %s3499_s9 = inlined_call_operand.hbm [shape: bf16[32,128], index: 9, kind: input, shape index: {}]   ;;  %s3500_s10 = inlined_call_operand.hbm [shape: f32[1,128], index: 10, kind: input, shape index: {}]   ;;  %s3501_s11 = inlined_call_operand.vmem [shape: bf16[128,128], index: 11, kind: input, shape index: {}]   ;;  %s3502_s12 = inlined_call_operand.hbm [shape: f32[1,128], index: 12, kind: input, shape index: {}]   ;;  %s3503_s13 = inlined_call_operand.vmem [shape: bf16[32,128], index: 13, kind: input, shape index: {}]   ;;  %s3504_s14 = inlined_call_operand.vmem [shape: f32[1,128], index: 14, kind: input, shape index: {}]   ;;  %s3505_s15 = inlined_call_operand.vmem [shape: bf16[128,32], index: 15, kind: input, shape index: {}]   ;;  %s3506_s16 = inlined_call_operand.vmem [shape: f32[1,32], index: 16, kind: input, shape index: {}]   ;;  %s3507_s17 = inlined_call_operand.hbm [shape: f32[2,8,32], index: 17, kind: output, shape index: {}]  }
   0x1   :  { %3520 = sst [smem:[#allocation31_spill]] %s3490_s0 }
   0x2   :  { %3521 = sst [smem:[#allocation32_spill]] %s3491_s1 }
   0x3   :  { %3522 = sst [smem:[#allocation33_spill]] %s3492_s2 }
   0x4   :  { %3523 = sst [smem:[#allocation34_spill]] %s3494_s4 }
   0x5   :  { %3524 = sst [smem:[#allocation35_spill]] %s3506_s16 }
   0x6   :  { %3525 = sst [smem:[#allocation36_spill]] %s3507_s17 }
   0x7   :  { %22 = vsyncpa [#allocation3], 0 }
   0x8   :  { %23 = vsyncpa [#allocation6], 0 }
   0x9   :  { %24 = vsyncpa [#allocation9], 0 }
   0xa   :  { %25 = vsyncpa [#allocation12], 0 }
   0xb   :  { %26 = vsyncpa [#allocation15], 0 }
   0xc   :  { %27 = vsyncpa [#allocation4], 0 }
   0xd   :  { %29 = vsyncpa [#allocation4 + $0x1], 0  ;;  %s2923_s24 = smov 0   ;;  %s2925_s25 = smov 0  }
   0xe   :  { %s2927_s26 = smov 0   ;;  %s2929_s27 = smov 0  }
   0xf LB: > { %3526 = sst [smem:[#allocation24_spill]] %s2794_s24  ;;  %s2944_s28 = sadd.s32 4294967295, %s2806_s27   ;;  %s2806_s27 = sphi %s2929_s27, %s3561_s27   ;;  %s2802_s26 = sphi %s2927_s26, %s3563_s26   ;;  %s2798_s25 = sphi %s2925_s25, %s3565_s25   ;;  %s2794_s24 = sphi %s2923_s24, %s3564_s24  }
  0x10   : > { %3527 = sst [smem:[#allocation25_spill]] %s2802_s26  ;;  %s2021_s29 = sadd.s32 4294967294, %s2806_s27  }
  0x11   : > { %3528 = sst [smem:[#allocation26_spill]] %s2806_s27  ;;  %s2948_s0 = sadd.s32 1, %s2806_s27  }
  0x12   : > { %3529 = sst [smem:[#allocation27_spill]] %s2948_s0  ;;  %s404_s30 = sadd.s32 1, %s2802_s26 }
  0x13   : > { %s401_s18 = ssub.s32 %s2806_s27, %s2948_s0  ;;  %p414_p0 = scmp.ne.s32.totalorder %s2802_s26, %s2798_s25 }
  0x14   : > { %p402_p1 = scmp.eq.s32.totalorder %s401_s18, 0  ;;  %p415_p2 = scmp.eq.s32.totalorder %s2944_s28, 1 }
  0x15   : > { %p420_p3 = scmp.ne.s32.totalorder %s2798_s25, %s2794_s24  ;;  %p421_p4 = scmp.eq.s32.totalorder %s2021_s29, 1 }
  0x16   : > { %s2959_s19 = scalar_select %p402_p1, %s2802_s26, %s404_s30  }
  0x17   : > { %p2961_p5 = por %p415_p2, %p414_p0  ;;  %p2965_p6 = por %p421_p4, %p420_p3 }
  0x18   : > { %3530 = sst [smem:[#allocation28_spill]] %s2959_s19  ;;  %p2022_p7 = scmp.ge.s32.totalorder %s2806_s27, 1 }
  0x19   : > { %s3531_s1 = scalar_select %p2961_p5, 1, 0 }
  0x1a   : > { %s3533_s20 = scalar_select %p2965_p6, 1, 0 }
  0x1b   : > { %3532 = sst [smem:[#allocation29_spill]] %s3531_s1  ;;  %p428_p8 = scmp.lt.s32.totalorder %s2806_s27, 3 }
  0x1c   : > { %3534 = sst [smem:[#allocation30_spill]] %s3533_s20  ;;  %p3515_p9 = scmp.eq.s32.totalorder %s2944_s28, 0 }
  0x1d   : > { %p2972_p10 = pnand %p2022_p7, %p428_p8  ;;  %s2808_s22 = smov [#allocation5]  }
  0x1e   : > { %s458_s23 = sshll.u32 %s2808_s22, 4  ;;  %s2809_s29 = smov [#allocation8]   ;;  %s459_s23 = int_to_ptr.vmem [resolvable:$true] %s458_s23 }
  0x1f   : > { %s3535_s21 = scalar_select %p2972_p10, 1, 0 }
  0x20   : > { %p2323_p11 = pneg %p2972_p10  ;;  %s482_s30 = sshll.u32 %s2809_s29, 4  ;;  %s2984_s30 = int_to_ptr.vmem [resolvable:$true] %s482_s30 }
  0x21   : > { %s2810_s19 = smov [#allocation11]   ;;  %s3537_s4 = sld [smem:[#allocation34_spill]] }
  0x22   : > { %p2980_p12 = pnand %p3515_p9, %p2323_p11  ;;  %s504_s26 = sshll.u32 %s2810_s19, 4  ;;  %s2986_s26 = int_to_ptr.vmem [resolvable:$true] %s504_s26 }
  0x24   : > { %p2996_p0 = pneg %p2980_p12 }
  0x27   : > { %s2472_s22 = scalar_lea.hbm %s3537_s4, 16 }
  0x28   : > { %p2473_p13 = scmp.ne.s32.totalorder %s3537_s4, %s2472_s22  ;;  %p2479_p3 = scmp.lt.u32.totalorder %s2472_s22, %s3537_s4 }
  0x2a   : > { %p2475_p1 = pnand %p2996_p0, %p2473_p13 }
  0x2c   : > { %p2476_p2 = pneg %p2475_p1 }
  0x2e   : > { %p2481_p4 = pnand %p2479_p3, %p2476_p2 }
  0x30   : > { %2484 = shalt.err (!%p2481_p4)
}
  0x31   : > { %s2485_s0 = scalar_lea.vmem %s459_s23, 16  ;;  %s2492_s24 = scalar_lea.vmem %s459_s23, 32 }
  0x32   : > { %p2486_p7 = scmp.ne.s32.totalorder %s459_s23, %s2485_s0  ;;  %p2493_p9 = scmp.lt.s32.totalorder %s459_s23, %s459_s23 }
  0x33   : > { %p2494_p6 = scmp.lt.s32.totalorder %s2492_s24, %s2485_s0 }
  0x34   : > { %p2488_p8 = pnand %p2486_p7, %p2996_p0 }
  0x35   : > { %p2495_p5 = por %p2494_p6, %p2493_p9 }
  0x36   : > { %p2489_p11 = pneg %p2488_p8 }
  0x38   : > { %p2496_p10 = pnand %p2495_p5, %p2489_p11 }
  0x3a   : > { %2499 = shalt.err (!%p2496_p10)
}
  0x3b   : > { %2329 = dma.hbm_to_vmem [thread:$0]  (!%p2980_p12), %s3537_s4, 16, %s459_s23, [#allocation6]  }
  0x3c   : > { %s2500_s19 = scalar_lea.hbm %s3496_s6, 16 }
  0x3d   : > { %p2501_p13 = scmp.ne.s32.totalorder %s3496_s6, %s2500_s19  ;;  %p2507_p5 = scmp.lt.u32.totalorder %s2500_s19, %s3496_s6 }
  0x3f   : > { %p2503_p1 = pnand %p2501_p13, %p2996_p0 }
  0x41   : > { %p2504_p6 = pneg %p2503_p1 }
  0x43   : > { %p2509_p9 = pnand %p2507_p5, %p2504_p6 }
  0x45   : > { %2512 = shalt.err (!%p2509_p9)
}
  0x46   : > { %s2513_s23 = scalar_lea.vmem %s2984_s30, 16  ;;  %s2520_s16 = scalar_lea.vmem %s2984_s30, 32 }
  0x47   : > { %p2514_p10 = scmp.ne.s32.totalorder %s2984_s30, %s2513_s23  ;;  %p2521_p4 = scmp.lt.s32.totalorder %s2984_s30, %s2984_s30 }
  0x48   : > { %p2522_p7 = scmp.lt.s32.totalorder %s2520_s16, %s2513_s23 }
  0x49   : > { %p2516_p2 = pnand %p2514_p10, %p2996_p0 }
  0x4a   : > { %p2523_p8 = por %p2522_p7, %p2521_p4 }
  0x4b   : > { %p2517_p3 = pneg %p2516_p2 }
  0x4d   : > { %p2524_p11 = pnand %p2523_p8, %p2517_p3 }
  0x4f   : > { %2527 = shalt.err (!%p2524_p11)
}
  0x50   : > { %2335 = dma.hbm_to_vmem [thread:$0]  (!%p2980_p12), %s3496_s6, 16, %s2984_s30, [#allocation9]  }
  0x51   : > { %s2528_s22 = scalar_lea.hbm %s3498_s8, 16 }
  0x52   : > { %p2529_p13 = scmp.ne.s32.totalorder %s3498_s8, %s2528_s22  ;;  %p2535_p5 = scmp.lt.u32.totalorder %s2528_s22, %s3498_s8 }
  0x54   : > { %p2531_p1 = pnand %p2529_p13, %p2996_p0 }
  0x56   : > { %p2532_p6 = pneg %p2531_p1 }
  0x58   : > { %p2537_p9 = pnand %p2535_p5, %p2532_p6 }
  0x5a   : > { %2540 = shalt.err (!%p2537_p9)
}
  0x5b   : > { %s2541_s30 = scalar_lea.vmem %s2986_s26, 16  ;;  %s2548_s16 = scalar_lea.vmem %s2986_s26, 32 }
  0x5c   : > { %p2542_p10 = scmp.ne.s32.totalorder %s2986_s26, %s2541_s30  ;;  %p2549_p4 = scmp.lt.s32.totalorder %s2986_s26, %s2986_s26 }
  0x5d   : > { %p2550_p7 = scmp.lt.s32.totalorder %s2548_s16, %s2541_s30 }
  0x5e   : > { %p2544_p2 = pnand %p2542_p10, %p2996_p0 }
  0x5f   : > { %p2551_p8 = por %p2550_p7, %p2549_p4 }
  0x60   : > { %p2545_p3 = pneg %p2544_p2 }
  0x62   : > { %p2552_p11 = pnand %p2551_p8, %p2545_p3 }
  0x64   : > { %2555 = shalt.err (!%p2552_p11)
}
  0x65   : > { %2341 = dma.hbm_to_vmem [thread:$0]  (!%p2980_p12), %s3498_s8, 16, %s2986_s26, [#allocation12]  }
  0x66   : > { %s2811_s20 = smov [#allocation14]   ;;  %s2812_s22 = smov [#allocation2]  }
  0x67   : > { %s528_s17 = sshll.u32 %s2811_s20, 4  ;;  %s444_s19 = sshll.u32 %s2812_s22, 4  ;;  %s529_s17 = int_to_ptr.vmem [resolvable:$true] %s528_s17  ;;  %s445_s19 = int_to_ptr.vmem [resolvable:$true] %s444_s19 }
  0x68   : > { %s2556_s23 = scalar_lea.hbm %s3500_s10, 16 }
  0x69   : > { %p2557_p13 = scmp.ne.s32.totalorder %s3500_s10, %s2556_s23  ;;  %p2563_p5 = scmp.lt.u32.totalorder %s2556_s23, %s3500_s10 }
  0x6b   : > { %p2559_p1 = pnand %p2557_p13, %p2996_p0 }
  0x6d   : > { %p2560_p6 = pneg %p2559_p1 }
  0x6f   : > { %p2565_p9 = pnand %p2563_p5, %p2560_p6 }
  0x71   : > { %2568 = shalt.err (!%p2565_p9)
}
  0x72   : > { %s2569_s26 = scalar_lea.vmem %s529_s17, 16  ;;  %s2576_s27 = scalar_lea.vmem %s529_s17, 32 }
  0x73   : > { %p2570_p10 = scmp.ne.s32.totalorder %s529_s17, %s2569_s26  ;;  %p2577_p4 = scmp.lt.s32.totalorder %s529_s17, %s529_s17 }
  0x74   : > { %p2578_p7 = scmp.lt.s32.totalorder %s2576_s27, %s2569_s26 }
  0x75   : > { %p2572_p2 = pnand %p2570_p10, %p2996_p0 }
  0x76   : > { %p2579_p8 = por %p2578_p7, %p2577_p4 }
  0x77   : > { %p2573_p3 = pneg %p2572_p2 }
  0x79   : > { %p2580_p11 = pnand %p2579_p8, %p2573_p3 }
  0x7b   : > { %2583 = shalt.err (!%p2580_p11)
}
  0x7c   : > { %2347 = dma.hbm_to_vmem [thread:$0]  (!%p2980_p12), %s3500_s10, 16, %s529_s17, [#allocation15]  }
  0x7d   : > { %s3539_s2 = sld [smem:[#allocation33_spill]] }
  0x83   : > { %s2584_s24 = scalar_lea.hbm %s3539_s2, 16 }
  0x84   : > { %p2585_p13 = scmp.ne.s32.totalorder %s3539_s2, %s2584_s24  ;;  %p2591_p5 = scmp.lt.u32.totalorder %s2584_s24, %s3539_s2 }
  0x86   : > { %p2587_p1 = pnand %p2585_p13, %p2996_p0 }
  0x88   : > { %p2588_p6 = pneg %p2587_p1 }
  0x8a   : > { %p2593_p9 = pnand %p2591_p5, %p2588_p6 }
  0x8c   : > { %2596 = shalt.err (!%p2593_p9)
}
  0x8d   : > { %s2597_s26 = scalar_lea.vmem %s445_s19, 16  ;;  %s2604_s17 = scalar_lea.vmem %s445_s19, 32 }
  0x8e   : > { %p2598_p10 = scmp.ne.s32.totalorder %s445_s19, %s2597_s26  ;;  %p2605_p4 = scmp.lt.s32.totalorder %s445_s19, %s445_s19 }
  0x8f   : > { %p2606_p7 = scmp.lt.s32.totalorder %s2604_s17, %s2597_s26 }
  0x90   : > { %p2600_p2 = pnand %p2598_p10, %p2996_p0 }
  0x91   : > { %p2607_p8 = por %p2606_p7, %p2605_p4 }
  0x92   : > { %p2601_p3 = pneg %p2600_p2 }
  0x94   : > { %p2608_p11 = pnand %p2607_p8, %p2601_p3 }
  0x96   : > { %2611 = shalt.err (!%p2608_p11)
}
  0x97   : > { %2326 = dma.hbm_to_vmem [thread:$0]  (!%p2980_p12), %s3539_s2, 16, %s445_s19, [#allocation3]  }
  0x98   : > { %s2813_s22 = smov [#allocation7]   ;;  %s2612_s23 = scalar_lea.hbm %s3495_s5, 256 }
  0x99   : > { %s468_s4 = sshll.u32 %s2813_s22, 4  ;;  %p2613_p13 = scmp.ne.s32.totalorder %s3495_s5, %s2612_s23  ;;  %s469_s4 = int_to_ptr.vmem [resolvable:$true] %s468_s4 }
  0x9a   : > { %p2619_p5 = scmp.lt.u32.totalorder %s2612_s23, %s3495_s5 }
  0x9b   : > { %p2615_p1 = pnand %p2613_p13, %p2996_p0 }
  0x9d   : > { %p2616_p6 = pneg %p2615_p1 }
  0x9f   : > { %p2621_p9 = pnand %p2619_p5, %p2616_p6 }
  0xa1   : > { %2624 = shalt.err (!%p2621_p9)
}
  0xa2   : > { %s2625_s19 = scalar_lea.vmem %s469_s4, 256  ;;  %p2633_p4 = scmp.lt.s32.totalorder %s469_s4, %s469_s4 }
  0xa3   : > { %p2626_p10 = scmp.ne.s32.totalorder %s469_s4, %s2625_s19  ;;  %p2634_p7 = scmp.lt.s32.totalorder %s2625_s19, %s2625_s19 }
  0xa5   : > { %p2628_p2 = pnand %p2626_p10, %p2996_p0  ;;  %p2635_p8 = por %p2634_p7, %p2633_p4 }
  0xa7   : > { %p2629_p3 = pneg %p2628_p2 }
  0xa9   : > { %p2636_p11 = pnand %p2635_p8, %p2629_p3 }
  0xab   : > { %2639 = shalt.err (!%p2636_p11)
}
  0xac   : > { %s2814_s17 = smov 64   ;;  %s2815_s27 = smov 4  }
  0xad   : > { %2332 = dma.hbm_to_vmem [thread:$0]  (!%p2980_p12), %s3495_s5, 256, %s469_s4, [#allocation6], %s2814_s17, %s2814_s17, %s2815_s27  }
  0xae   : > { %s2816_s0 = smov [#allocation10]   ;;  %s2817_s23 = smov [#allocation13]  }
  0xaf   : > { %s493_s24 = sshll.u32 %s2816_s0, 4  ;;  %s514_s30 = sshll.u32 %s2817_s23, 4  ;;  %s494_s24 = int_to_ptr.vmem [resolvable:$true] %s493_s24  ;;  %s3117_s30 = int_to_ptr.vmem [resolvable:$true] %s514_s30 }
  0xb0   : > { %s2640_s26 = scalar_lea.hbm %s3497_s7, 16 }
  0xb1   : > { %p2641_p13 = scmp.ne.s32.totalorder %s3497_s7, %s2640_s26  ;;  %p2647_p5 = scmp.lt.u32.totalorder %s2640_s26, %s3497_s7 }
  0xb3   : > { %p2643_p1 = pnand %p2641_p13, %p2996_p0 }
  0xb5   : > { %p2644_p6 = pneg %p2643_p1 }
  0xb7   : > { %p2649_p9 = pnand %p2647_p5, %p2644_p6 }
  0xb9   : > { %2652 = shalt.err (!%p2649_p9)
}
  0xba   : > { %s2653_s22 = scalar_lea.vmem %s494_s24, 16  ;;  %s2660_s0 = scalar_lea.vmem %s494_s24, 32 }
  0xbb   : > { %p2654_p10 = scmp.ne.s32.totalorder %s494_s24, %s2653_s22  ;;  %p2661_p4 = scmp.lt.s32.totalorder %s494_s24, %s494_s24 }
  0xbc   : > { %p2662_p7 = scmp.lt.s32.totalorder %s2660_s0, %s2653_s22 }
  0xbd   : > { %p2656_p2 = pnand %p2654_p10, %p2996_p0 }
  0xbe   : > { %p2663_p8 = por %p2662_p7, %p2661_p4 }
  0xbf   : > { %p2657_p3 = pneg %p2656_p2 }
  0xc1   : > { %p2664_p11 = pnand %p2663_p8, %p2657_p3 }
  0xc3   : > { %2667 = shalt.err (!%p2664_p11)
}
  0xc4   : > { %2338 = dma.hbm_to_vmem [thread:$0]  (!%p2980_p12), %s3497_s7, 16, %s494_s24, [#allocation9]  }
  0xc5   : > { %s2668_s26 = scalar_lea.hbm %s3499_s9, 256 }
  0xc6   : > { %p2669_p13 = scmp.ne.s32.totalorder %s3499_s9, %s2668_s26  ;;  %p2675_p5 = scmp.lt.u32.totalorder %s2668_s26, %s3499_s9 }
  0xc8   : > { %p2671_p1 = pnand %p2669_p13, %p2996_p0 }
  0xca   : > { %p2672_p6 = pneg %p2671_p1 }
  0xcc   : > { %p2677_p9 = pnand %p2675_p5, %p2672_p6 }
  0xce   : > { %2680 = shalt.err (!%p2677_p9)
}
  0xcf   : > { %s2681_s24 = scalar_lea.vmem %s3117_s30, 256  ;;  %p2689_p4 = scmp.lt.s32.totalorder %s3117_s30, %s3117_s30 }
  0xd0   : > { %p2682_p10 = scmp.ne.s32.totalorder %s3117_s30, %s2681_s24  ;;  %p2690_p7 = scmp.lt.s32.totalorder %s2681_s24, %s2681_s24 }
  0xd2   : > { %p2684_p2 = pnand %p2682_p10, %p2996_p0  ;;  %p2691_p8 = por %p2690_p7, %p2689_p4 }
  0xd4   : > { %p2685_p3 = pneg %p2684_p2 }
  0xd6   : > { %p2692_p11 = pnand %p2691_p8, %p2685_p3 }
  0xd8   : > { %2695 = shalt.err (!%p2692_p11)
}
  0xd9   : > { %2344 = dma.hbm_to_vmem [thread:$0]  (!%p2980_p12), %s3499_s9, 256, %s3117_s30, [#allocation12], %s2814_s17, %s2814_s17, %s2815_s27  }
  0xda   : > { %s2818_s23 = smov [#allocation16]   ;;  %s2696_s19 = scalar_lea.hbm %s3502_s12, 16 }
  0xdb   : > { %s542_s16 = sshll.u32 %s2818_s23, 4  ;;  %p2697_p13 = scmp.ne.s32.totalorder %s3502_s12, %s2696_s19  ;;  %s543_s16 = int_to_ptr.vmem [resolvable:$true] %s542_s16 }
  0xdc   : > { %p2703_p5 = scmp.lt.u32.totalorder %s2696_s19, %s3502_s12 }
  0xdd   : > { %p2699_p1 = pnand %p2697_p13, %p2996_p0 }
  0xdf   : > { %p2700_p6 = pneg %p2699_p1 }
  0xe1   : > { %p2705_p9 = pnand %p2703_p5, %p2700_p6 }
  0xe3   : > { %2708 = shalt.err (!%p2705_p9)
}
  0xe4   : > { %s2709_s17 = scalar_lea.vmem %s543_s16, 16  ;;  %s2716_s27 = scalar_lea.vmem %s543_s16, 32 }
  0xe5   : > { %p2710_p10 = scmp.ne.s32.totalorder %s543_s16, %s2709_s17  ;;  %p2717_p4 = scmp.lt.s32.totalorder %s543_s16, %s543_s16 }
  0xe6   : > { %p2718_p7 = scmp.lt.s32.totalorder %s2716_s27, %s2709_s17 }
  0xe7   : > { %p2712_p2 = pnand %p2710_p10, %p2996_p0 }
  0xe8   : > { %p2719_p8 = por %p2718_p7, %p2717_p4 }
  0xe9   : > { %p2713_p3 = pneg %p2712_p2 }
  0xeb   : > { %p2720_p11 = pnand %p2719_p8, %p2713_p3 }
  0xed   : > { %2723 = shalt.err (!%p2720_p11)
}
  0xee   : > { %2350 = dma.hbm_to_vmem [thread:$0]  (!%p2980_p12), %s3502_s12, 16, %s543_s16, [#allocation15]  }
  0xef   : > { %p3540_p13 = scmp.ne.s32.totalorder %s3535_s21, 0 }
  0xf0   : > { %p3541_p1 = scmp.eq.s32.totalorder (!%p3540_p13), %s2944_s28, 0 }
  0xf1   : > { %574 = sbr.rel (%p3540_p13) target bundleno = 4611 (0x1203), region = 88 }
  0xf8   : > { %2769 = dma.done.wait (%p3541_p1), [#allocation3], 16   ;;  %p3542_p0 = pmov %p3541_p1 }
  0xfa   : > { %2771 = vsyncadd (%p3542_p0), [#allocation3], 4294967280  ;;  %p3543_p6 = pmov %p3542_p0 }
  0xfb   : > { %p3544_p5 = pmov %p3542_p0 }
  0xfc   : > { %2773 = dma.done.wait (%p3543_p6), [#allocation6], 272  }
  0xfd   : > { %2775 = vsyncadd (%p3544_p5), [#allocation6], 4294967024  ;;  %p3545_p9 = pmov %p3542_p0 }
  0xfe   : > { %p3546_p12 = pmov %p3542_p0 }
  0xff   : > { %2777 = dma.done.wait (%p3545_p9), [#allocation9], 32  }
 0x100   : > { %2779 = vsyncadd (%p3546_p12), [#allocation9], 4294967264  ;;  %p3547_p10 = pmov %p3542_p0 }
 0x101   : > { %p3548_p2 = pmov %p3542_p0 }
 0x102   : > { %2781 = dma.done.wait (%p3547_p10), [#allocation12], 272  }
 0x103   : > { %2783 = vsyncadd (%p3548_p2), [#allocation12], 4294967024  ;;  %p3549_p3 = pmov %p3542_p0 }
 0x104   : > { %p3550_p4 = pmov %p3542_p0 }
 0x105   : > { %2785 = dma.done.wait (%p3549_p3), [#allocation15], 32  }
 0x106   : > { %2787 = vsyncadd (%p3550_p4), [#allocation15], 4294967264  ;;  %p657_p7 = scmp.lt.s32.totalorder %s2944_s28, 1  ;;  %s3551_s23 = sld [smem:[#allocation31_spill]]  ;;  %vm663_vm0 = vcmask 261120   ;;  %v2430_v7 = vld [vmem:[%s3493_s3] sm:$0xff]   ;;  %v764_v34 = vlaneseq }
 0x107   : > { %v2819_v8 = vmov 0.0   ;;  %vm2820_vm1 = vmmov 0   ;;  %v2431_v9 = vld [vmem:[%s3493_s3 + $0x8] sm:$0xff]   ;;  %s3552_s24 = sld [smem:[#allocation32_spill]]  ;;  %v2046_v16 = vld [vmem:[#allocation2] ss:$0 sm:$0xff] }
 0x108   : > { %s658_s21 = scalar_select %p657_p7, %s2944_s28, 1  ;;  %2149 = vmatprep.subr.bf16.mxu0 %v2819_v8  ;;  %2153 = vmatprep.mubr.msk.bf16.mxu0 %vm2820_vm1, %v2819_v8  ;;  %v2047_v20 = vld [vmem:[#allocation5] ss:$0 sm:$0xff]  ;;  %vm772_vm2 = vcmask 64512   ;;  %v3252_v35 = vshrl.u32 %v764_v34, 7  ;;  %v3254_v36 = vand.u32 127, %v764_v34 }
 0x109   : > { %2150 = vmatpush3.bf16.msra.mxu0 %v2430_v7  ;;  %2157 = vmatprep.subr.bf16.mxu1 %v2819_v8  ;;  %s2821_s17 = smov 96   ;;  %s2822_s27 = smov 120   ;;  %vm837_vm4 = vcmask 1043456  }
 0x10a   : > { %s2044_s18 = sshll.u32 %s658_s21, 3  ;;  %2151 = vmatprep.subr.bf16.mxu0 %v2819_v8  ;;  %2159 = vmatprep.mubr.msk.bf16.mxu1 %vm2820_vm1, %v2819_v8  ;;  %s2823_s30 = smov 88   ;;  %vm768_vm3 = vcmp.le.s32.totalorder %v3254_v36, %v3252_v35  ;;  %vm1628_vm5 = vcmp.lt.s32.totalorder %v3254_v36, 64  ;;  %vm1654_vm6 = vcmp.ge.s32.totalorder %v3254_v36, 64 }
 0x10b   : > { %s2824_s0 = smov 56   ;;  %s2825_s21 = smov 64  }
 0x10c   : > { %s660_s16 = scalar_lea.vmem %s3551_s23, %s2044_s18  ;;  %s2826_s18 = smov 80  }
 0x10d   : > { %v3208_v0 = vld [vmem:[%s660_s16] sm:$0xff]  ;;  %2152 = vmatpush3.bf16.msra.mxu0 %v2431_v9  ;;  %s2827_s29 = smov 112   ;;  %s2828_s2 = smov 48  }
 0x10e   : > { %v664_v1 = vsel %vm663_vm0, %v3208_v0, 0.0  ;;  %2163 = vmatprep.subr.bf16.mxu0 %v2819_v8  ;;  %v2045_v14 = vld [vmem:[%s3552_s24] ss:$0 sm:$0xff]  ;;  %v882_v9 = vld [vmem:[#allocation7] sm:$0xf]  ;;  %s2829_s23 = smov 104  }
 0x10f   : > { %665 = vadd.xlane.f32.xlu0 %v664_v1  ;;  %s2830_s16 = smov 72   ;;  %s2831_s1 = smov 40  }
 0x110   : > { %s654_s22 = sand.u32 1, %s2798_s25   ;;  %s2832_s19 = smov [#allocation17]  }
 0x111   : > { %s2043_s24 = sshll.u32 %s654_s22, 3  ;;  %s2728_s20 = sshll.u32 %s2832_s19, 4  ;;  %s2729_s20 = int_to_ptr.vmem [resolvable:$false] %s2728_s20 }
 0x112   : > { %s2730_s4 = scalar_lea.vmem %s2729_s20, 256 }
 0x19c   : > { %v666_v2 = vpop.xlane.xlu0 %665 }
 0x19d   : > { %v668_v3 = vmul.f32 0.03125, %v666_v2 }
 0x19f   : > { %v669_v4 = vsub.f32 %v3208_v0, %v668_v3 }
 0x1a1   : > { %v670_v5 = vmul.f32 %v669_v4, %v669_v4 }
 0x1a3   : > { %v671_v6 = vsel %vm663_vm0, %v670_v5, 0.0 }
 0x1a4   : > { %672 = vadd.xlane.f32.xlu0 %v671_v6 }
 0x231   : > { %v673_v10 = vpop.xlane.xlu0 %672 }
 0x232   : > { %v674_v11 = vmul.f32 0.03125, %v673_v10  ;;  %v1047_v10 = vsel %vm837_vm4, %v882_v9, 0 }
 0x234   : > { %v675_v12 = vadd.f32 1e-05, %v674_v11  ;;  %v996_v11 = vld [vmem:[#allocation7 + $0x4] sm:$0xf] }
 0x236   : > { %2452 = vrsqrt.f32 %v675_v12  ;;  %v1001_v12 = vsel %vm837_vm4, %v996_v11, 0 }
 0x240   : > { %v2453_v13 = vpop.eup %2452 }
 0x241   : > { %v677_v15 = vmul.f32 %v2453_v13, %v669_v4 }
 0x243   : > { %v685_v17 = vmul.f32 %v2045_v14, %v677_v15 }
 0x245   : > { %v693_v18 = vadd.f32 %v2046_v16, %v685_v17 }
 0x247   : > { %v694_v19 = vpack.c.bf16 %v693_v18, %v693_v18 }
 0x249   : > { %2154 = vmatmul.mubr.msk.bf16.vlgmr.msra.gmra.mrb[0].mxu0 %vm663_vm0, %v694_v19 }
 0x24a   : > { %2165 = vmatprep.mubr.msk.bf16.mxu0 %vm2820_vm1, %v2819_v8 }
 0x31c   : > { %v755_v21 = vpop.f32.mrb[0].mxu0 }
 0x31d   : > { %v756_v22 = vadd.f32 %v2047_v20, %v755_v21  ;;  %v2155_v23 = vpop.f32.mrb[1].mxu0 }
 0x31e   : > { %v758_v24 = vpop.f32.mrb[2].mxu0 }
 0x31f   : > { %v761_v25 = vmul.f32 0.35355338, %v756_v22  ;;  %v3234_v26 = vpack.c.bf16 %v756_v22, %v756_v22  ;;  %v2156_v27 = vpop.f32.mrb[3].mxu0 }
 0x321   : > { %v3236_v28 = vpack.c.bf16 %v761_v25, %v761_v25  ;;  %770 = vrot.lane.b32.xlu1 %v3234_v26, %s2821_s17 }
 0x323   : > { %884 = vrot.lane.b32.xlu0 %v3236_v28, %s2822_s27 }
 0x325   : > { %886 = vrot.lane.b32.xlu1 %v3234_v26, %s2823_s30  ;;  %s3553_s30 = sld [smem:[#allocation35_spill]] }
 0x393   : > { %v771_v29 = vpop.permute.xlu1 %770 }
 0x394   : > { %v777_v30 = vsel %vm772_vm2, %v771_v29, 0 }
 0x395   : > { %2158 = vmatpush3.bf16.xpose.msra.mxu1 %v777_v30  ;;  %v885_v33 = vpop.permute.xlu0 %884 }
 0x396   : > { %2169 = vmatprep.subr.bf16.mxu1 %v2819_v8 }
 0x397   : > { %v887_v31 = vpop.permute.xlu1 %886 }
 0x398   : > { %v892_v32 = vsel %vm772_vm2, %v887_v31, 0 }
 0x39c   : > { %2160 = vmatmul.mubr.msk.bf16.vlgmr.msra.gmra.mrb[0].mxu1 %vm772_vm2, %v3236_v28 }
 0x39d   : > { %2170 = vmatpush3.bf16.xpose.msra.mxu1 %v892_v32  ;;  %2171 = vmatprep.mubr.msk.bf16.mxu1 %vm2820_vm1, %v2819_v8 }
 0x39e   : > { %2181 = vmatprep.subr.bf16.mxu1 %v2819_v8 }
 0x3a4   : > { %2172 = vmatmul.mubr.msk.bf16.vlgmr.msra.gmra.mrb[4].mxu1 %vm772_vm2, %v885_v33 }
 0x3a5   : > { %2183 = vmatprep.mubr.msk.bf16.mxu1 %vm2820_vm1, %v2819_v8  ;;  %2182 = vmatpush3.bf16.msra.mxu1 %v1001_v12 }
 0x3a6   : > { %2193 = vmatprep.subr.bf16.mxu1 %v2819_v8 }
 0x46f   : > { %v813_v37 = vpop.f32.mrb[0].mxu1 }
 0x470   : > { %v819_v38 = vsel %vm768_vm3, %v813_v37, -1e+30  ;;  %v2161_v39 = vpop.f32.mrb[1].mxu1 }
 0x471   : > { %v816_v40 = vpop.f32.mrb[2].mxu1  ;;  %v820_v41 = vsel %vm772_vm2, %v819_v38, -inf }
 0x472   : > { %821 = vmax.xlane.f32.xlu1 %v820_v41  ;;  %v2162_v42 = vpop.f32.mrb[3].mxu1 }
 0x477   : > { %v928_v43 = vpop.f32.mrb[4].mxu1 }
 0x478   : > { %v934_v44 = vsel %vm768_vm3, %v928_v43, -1e+30  ;;  %v2173_v45 = vpop.f32.mrb[5].mxu1 }
 0x479   : > { %v931_v46 = vpop.f32.mrb[6].mxu1  ;;  %v935_v47 = vsel %vm772_vm2, %v934_v44, -inf }
 0x47a   : > { %936 = vmax.xlane.f32.xlu0 %v935_v47  ;;  %v2174_v48 = vpop.f32.mrb[7].mxu1 }
 0x490   : > { %947 = vrot.lane.b32.xlu0 %v3234_v26, %s2824_s0  ;;  %s3554_s0 = sld [smem:[#allocation29_spill]] }
 0x496   : > { %p3556_p11 = scmp.ne.s32.totalorder %s3554_s0, 0 }
 0x4ff   : > { %v822_v49 = vpop.xlane.xlu1 %821 }
 0x500   : > { %v823_v50 = vsub.f32 %v819_v38, %v822_v49 }
 0x502   : > { %v824_v51 = vmul.f32 1.442695, %v823_v50 }
 0x504   : > { %2454 = vpow2.f32 %v824_v51 }
 0x507   : > { %v937_v52 = vpop.xlane.xlu0 %936 }
 0x508   : > { %v938_v53 = vsub.f32 %v934_v44, %v937_v52 }
 0x50a   : > { %v939_v54 = vmul.f32 1.442695, %v938_v53 }
 0x50b   : > { %v948_v2 = vpop.permute.xlu0 %947 }
 0x50c   : > { %2456 = vpow2.f32 %v939_v54  ;;  %v953_v4 = vsel %vm837_vm4, %v948_v2, 0 }
 0x50e   : > { %v2455_v55 = vpop.eup %2454 }
 0x50f   : > { %v826_v56 = vsel %vm772_vm2, %v2455_v55, 0.0 }
 0x510   : > { %827 = vadd.xlane.f32.xlu1 %v826_v56 }
 0x516   : > { %v2457_v57 = vpop.eup %2456 }
 0x517   : > { %v941_v58 = vsel %vm772_vm2, %v2457_v57, 0.0 }
 0x518   : > { %942 = vadd.xlane.f32.xlu1 %v941_v58  ;;  %v1201_v58 = vld [vmem:[#allocation7 + $0x8] sm:$0xf] }
 0x529   : > { %832 = vrot.lane.b32.xlu1 %v3234_v26, %s2825_s21  ;;  %s2095_s21 = sshll.u32 %s2944_s28, 7  ;;  %s1861_s28 = scalar_lea.sflag [#allocation4], %s654_s22 }
 0x52d   : > { %1091 = vrot.lane.b32.xlu1 %v3234_v26, %s2826_s18  ;;  %s656_s18 = scalar_lea.vmem [#allocation17], %s2043_s24 }
 0x531   : > { %1089 = vrot.lane.b32.xlu1 %v3236_v28, %s2827_s29  ;;  %s1874_s29 = sshll.u32 %s656_s18, 4  ;;  %s3449_s29 = int_to_ptr.vmem [resolvable:$true] %s1874_s29 }
 0x532   : > { %s2724_s26 = scalar_lea.vmem %s3449_s29, 128  ;;  %p2731_p0 = scmp.lt.s32.totalorder %s3449_s29, %s2729_s20 }
 0x533   : > { %p2725_p8 = scmp.ne.s32.totalorder %s3449_s29, %s2724_s26  ;;  %p2732_p6 = scmp.lt.s32.totalorder %s2730_s4, %s2724_s26 }
 0x535   : > { %p2726_p13 = pnand %p2725_p8, %p3556_p11  ;;  %p2733_p5 = por %p2732_p6, %p2731_p0 }
 0x537   : > { %p2727_p1 = pneg %p2726_p13 }
 0x539   : > { %p2734_p9 = pnand %p2733_p5, %p2727_p1 }
 0x59d   : > { %v828_v59 = vpop.xlane.xlu1 %827 }
 0x59e   : > { %2458 = vrcp.f32 %v828_v59  ;;  %v1206_v59 = vsel %vm837_vm4, %v1201_v58, 0  ;;  %v2064_v58 = vld [vmem:[#allocation10] ss:$0 sm:$0xff] }
 0x5a5   : > { %v943_v60 = vpop.xlane.xlu1 %942 }
 0x5a6   : > { %2460 = vrcp.f32 %v943_v60 }
 0x5a8   : > { %v2459_v61 = vpop.eup %2458 }
 0x5a9   : > { %v830_v62 = vmul.f32 %v2459_v61, %v2455_v55  ;;  %v833_v63 = vpop.permute.xlu1 %832 }
 0x5aa   : > { %v839_v1 = vsel %vm837_vm4, %v833_v63, 0 }
 0x5ab   : > { %2164 = vmatpush3.bf16.msra.mxu0 %v839_v1  ;;  %v831_v3 = vpack.c.bf16 %v830_v62, %v830_v62 }
 0x5ac   : > { %2175 = vmatprep.subr.bf16.mxu0 %v2819_v8 }
 0x5ad   : > { %v1092_v18 = vpop.permute.xlu1 %1091 }
 0x5ae   : > { %2166 = vmatmul.mubr.msk.bf16.vlgmr.msra.gmra.mrb[4].mxu0 %vm772_vm2, %v831_v3  ;;  %v1097_v23 = vsel %vm772_vm2, %v1092_v18, 0 }
 0x5af   : > { %2176 = vmatpush3.bf16.msra.mxu0 %v953_v4  ;;  %2177 = vmatprep.mubr.msk.bf16.mxu0 %vm2820_vm1, %v2819_v8 }
 0x5b0   : > { %v2461_v5 = vpop.eup %2460  ;;  %2187 = vmatprep.subr.bf16.mxu0 %v2819_v8 }
 0x5b1   : > { %v945_v6 = vmul.f32 %v2461_v5, %v2457_v57  ;;  %v1090_v25 = vpop.permute.xlu1 %1089 }
 0x5b3   : > { %v946_v7 = vpack.c.bf16 %v945_v6, %v945_v6 }
 0x5b6   : > { %2178 = vmatmul.mubr.msk.bf16.vlgmr.msra.gmra.mrb[8].mxu0 %vm772_vm2, %v946_v7 }
 0x5b7   : > { %2189 = vmatprep.mubr.msk.bf16.mxu0 %vm2820_vm1, %v2819_v8  ;;  %2188 = vmatpush3.bf16.msra.mxu0 %v1047_v10 }
 0x5b8   : > { %2199 = vmatprep.subr.bf16.mxu0 %v2819_v8 }
 0x681   : > { %v875_v13 = vpop.f32.mrb[4].mxu0 }
 0x682   : > { %v881_v14 = vpack.c.bf16 %v875_v13, %v875_v13  ;;  %v2167_v15 = vpop.f32.mrb[5].mxu0 }
 0x683   : > { %v878_v16 = vpop.f32.mrb[6].mxu0 }
 0x684   : > { %v2168_v17 = vpop.f32.mrb[7].mxu0  ;;  %2190 = vmatmul.mubr.msk.bf16.vlgmr.msra.gmra.mrb[12].mxu0 %vm772_vm2, %v881_v14 }
 0x685   : > { %2201 = vmatprep.mubr.msk.bf16.mxu0 %vm2820_vm1, %v2819_v8 }
 0x689   : > { %v989_v19 = vpop.f32.mrb[8].mxu0 }
 0x68a   : > { %v995_v20 = vpack.c.bf16 %v989_v19, %v989_v19  ;;  %v2179_v21 = vpop.f32.mrb[9].mxu0 }
 0x68b   : > { %v992_v22 = vpop.f32.mrb[10].mxu0 }
 0x68c   : > { %v2180_v24 = vpop.f32.mrb[11].mxu0  ;;  %2184 = vmatmul.mubr.msk.bf16.vlgmr.msra.gmra.mrb[8].mxu1 %vm772_vm2, %v995_v20 }
 0x68d   : > { %2194 = vmatpush3.bf16.xpose.msra.mxu1 %v1097_v23  ;;  %2195 = vmatprep.mubr.msk.bf16.mxu1 %vm2820_vm1, %v2819_v8 }
 0x68e   : > { %2205 = vmatprep.subr.bf16.mxu1 %v2819_v8 }
 0x694   : > { %2196 = vmatmul.mubr.msk.bf16.vlgmr.msra.gmra.mrb[12].mxu1 %vm772_vm2, %v1090_v25 }
 0x695   : > { %2207 = vmatprep.mubr.msk.bf16.mxu1 %vm2820_vm1, %v2819_v8  ;;  %2206 = vmatpush3.bf16.msra.mxu1 %v1206_v59 }
 0x696   : > { %2217 = vmatprep.subr.bf16.mxu1 %v2819_v8 }
 0x757   : > { %v1083_v27 = vpop.f32.mrb[12].mxu0 }
 0x758   : > { %v2191_v29 = vpop.f32.mrb[13].mxu0 }
 0x759   : > { %v1086_v30 = vpop.f32.mrb[14].mxu0 }
 0x75a   : > { %v2192_v31 = vpop.f32.mrb[15].mxu0 }
 0x75f   : > { %v1037_v32 = vpop.f32.mrb[8].mxu1 }
 0x760   : > { %v3297_v33 = vadd.f32 %v1083_v27, %v1037_v32  ;;  %v2185_v34 = vpop.f32.mrb[9].mxu1 }
 0x761   : > { %v1040_v37 = vpop.f32.mrb[10].mxu1 }
 0x762   : > { %v2186_v38 = vpop.f32.mrb[11].mxu1 }
 0x767   : > { %v1133_v39 = vpop.f32.mrb[12].mxu1 }
 0x768   : > { %v1139_v40 = vsel %vm768_vm3, %v1133_v39, -1e+30  ;;  %v2197_v41 = vpop.f32.mrb[13].mxu1 }
 0x769   : > { %v1136_v42 = vpop.f32.mrb[14].mxu1  ;;  %v1140_v43 = vsel %vm772_vm2, %v1139_v40, -inf }
 0x76a   : > { %1141 = vmax.xlane.f32.xlu1 %v1140_v43  ;;  %v2198_v44 = vpop.f32.mrb[15].mxu1 }
 0x77b   : > { %1152 = vrot.lane.b32.xlu1 %v3234_v26, %s2828_s2 }
 0x77f   : > { %1249 = vrot.lane.b32.xlu1 %v3236_v28, %s2829_s23 }
 0x7f7   : > { %v1142_v45 = vpop.xlane.xlu1 %1141 }
 0x7f8   : > { %v1143_v46 = vsub.f32 %v1139_v40, %v1142_v45 }
 0x7fa   : > { %v1144_v47 = vmul.f32 1.442695, %v1143_v46 }
 0x7fb   : > { %v1153_v48 = vpop.permute.xlu1 %1152 }
 0x7fc   : > { %2462 = vpow2.f32 %v1144_v47  ;;  %v1158_v49 = vsel %vm837_vm4, %v1153_v48, 0  ;;  %v2432_v48 = vld [vmem:[#allocation13] sm:$0xff]  }
 0x7fd   : > { %2200 = vmatpush3.bf16.msra.mxu0 %v1158_v49  ;;  %v2433_v49 = vld [vmem:[#allocation13 + $0x8] sm:$0xff]  }
 0x7fe   : > { %2211 = vmatprep.subr.bf16.mxu0 %v2819_v8 }
 0x7ff   : > { %v1250_v57 = vpop.permute.xlu1 %1249 }
 0x806   : > { %v2463_v50 = vpop.eup %2462 }
 0x807   : > { %v1146_v51 = vsel %vm772_vm2, %v2463_v50, 0.0 }
 0x808   : > { %1147 = vadd.xlane.f32.xlu0 %v1146_v51  ;;  %v2438_v51 = vld [vmem:[%s3501_s11 + $0x10] sm:$0xff]  }
 0x81e   : > { %1251 = vrot.lane.b32.xlu0 %v3234_v26, %s2830_s16  ;;  %s3555_s16 = sld [smem:[#allocation36_spill]] }
 0x895   : > { %v1148_v52 = vpop.xlane.xlu0 %1147 }
 0x896   : > { %2464 = vrcp.f32 %v1148_v52  ;;  %v2439_v52 = vld [vmem:[%s3501_s11 + $0x18] sm:$0xff]  }
 0x899   : > { %v1252_v54 = vpop.permute.xlu0 %1251 }
 0x89a   : > { %v1257_v56 = vsel %vm772_vm2, %v1252_v54, 0 }
 0x8a0   : > { %v2465_v28 = vpop.eup %2464 }
 0x8a1   : > { %v1150_v53 = vmul.f32 %v2465_v28, %v2463_v50  ;;  %v2437_v50 = vld [vmem:[%s3501_s11 + $0x8] sm:$0xff]   ;;  %v2440_v28 = vld [vmem:[%s3501_s11 + $0x20] sm:$0xff]  }
 0x8a3   : > { %v1151_v55 = vpack.c.bf16 %v1150_v53, %v1150_v53  ;;  %v2441_v53 = vld [vmem:[%s3501_s11 + $0x28] sm:$0xff]  }
 0x8a5   : > { %2202 = vmatmul.mubr.msk.bf16.vlgmr.msra.gmra.mrb[16].mxu0 %vm772_vm2, %v1151_v55 }
 0x8a6   : > { %2212 = vmatpush3.bf16.xpose.msra.mxu0 %v1257_v56  ;;  %2213 = vmatprep.mubr.msk.bf16.mxu0 %vm2820_vm1, %v2819_v8 }
 0x8a7   : > { %2223 = vmatprep.subr.bf16.mxu0 %v2819_v8 }
 0x8ad   : > { %2214 = vmatmul.mubr.msk.bf16.vlgmr.msra.gmra.mrb[20].mxu0 %vm772_vm2, %v1250_v57 }
 0x8ae   : > { %2225 = vmatprep.mubr.msk.bf16.mxu0 %vm2820_vm1, %v2819_v8 }
 0x978   : > { %v1194_v60 = vpop.f32.mrb[16].mxu0 }
 0x979   : > { %v1200_v61 = vpack.c.bf16 %v1194_v60, %v1194_v60  ;;  %v2203_v62 = vpop.f32.mrb[17].mxu0  ;;  %v2065_v60 = vld [vmem:[#allocation11] ss:$0 sm:$0xff] }
 0x97a   : > { %v1197_v63 = vpop.f32.mrb[18].mxu0 }
 0x97b   : > { %v2204_v1 = vpop.f32.mrb[19].mxu0  ;;  %2208 = vmatmul.mubr.msk.bf16.vlgmr.msra.gmra.mrb[16].mxu1 %vm772_vm2, %v1200_v61  ;;  %v2434_v63 = vld [vmem:[%s3503_s13] sm:$0xff]  }
 0x97c   : > { %2219 = vmatprep.mubr.msk.bf16.mxu1 %vm2820_vm1, %v2819_v8 }
 0x980   : > { %v1293_v2 = vpop.f32.mrb[20].mxu0 }
 0x981   : > { %v1299_v3 = vsel %vm768_vm3, %v1293_v2, -1e+30  ;;  %v2215_v4 = vpop.f32.mrb[21].mxu0  ;;  %v2435_v2 = vld [vmem:[%s3503_s13 + $0x8] sm:$0xff]  }
 0x982   : > { %v1296_v5 = vpop.f32.mrb[22].mxu0  ;;  %v1300_v6 = vsel %vm772_vm2, %v1299_v3, -inf  ;;  %v2443_v4 = vld [vmem:[%s3501_s11 + $0x38] sm:$0xff]  }
 0x983   : > { %1301 = vmax.xlane.f32.xlu1 %v1300_v6  ;;  %v2216_v7 = vpop.f32.mrb[23].mxu0  ;;  %v2066_v5 = vld [vmem:[#allocation14] ss:$0 sm:$0xff] }
 0xa10   : > { %v1302_v9 = vpop.xlane.xlu1 %1301 }
 0xa11   : > { %v1303_v10 = vsub.f32 %v1299_v3, %v1302_v9  ;;  %v2442_v3 = vld [vmem:[%s3501_s11 + $0x30] sm:$0xff]  }
 0xa13   : > { %v1304_v11 = vmul.f32 1.442695, %v1303_v10 }
 0xa15   : > { %2466 = vpow2.f32 %v1304_v11 }
 0xa1f   : > { %v2467_v12 = vpop.eup %2466 }
 0xa20   : > { %v1306_v13 = vsel %vm772_vm2, %v2467_v12, 0.0 }
 0xa21   : > { %1307 = vadd.xlane.f32.xlu0 %v1306_v13 }
 0xa37   : > { %1312 = vrot.lane.b32.xlu0 %v3234_v26, %s2831_s1  ;;  %v1361_v26 = vld [vmem:[#allocation7 + $0xc] sm:$0xf]  ;;  %s3447_s1 = scalar_lea.hbm %s3555_s16, %s2095_s21 }
 0xa38   : > { %v1366_v24 = vsel %vm837_vm4, %v1361_v26, 0 }
 0xa39   : > { %2224 = vmatpush3.bf16.msra.mxu0 %v1366_v24 }
 0xa3a   : > { %2237 = vmatprep.subr.bf16.mxu0 %v2819_v8 }
 0xa4e   : > { %v1242_v14 = vpop.f32.mrb[16].mxu1 }
 0xa4f   : > { %v1248_v35 = vadd.f32 %v1242_v14, %v3297_v33  ;;  %v2209_v15 = vpop.f32.mrb[17].mxu1  ;;  %v2063_v33 = vld [vmem:[#allocation8] ss:$0 sm:$0xff] }
 0xa50   : > { %v1245_v16 = vpop.f32.mrb[18].mxu1 }
 0xa51   : > { %v2210_v17 = vpop.f32.mrb[19].mxu1 }
 0xa52   : > { %v2070_v17 = vld [vmem:[#allocation16] ss:$0 sm:$0xff] }
 0xaae   : > { %v1308_v18 = vpop.xlane.xlu0 %1307 }
 0xaaf   : > { %2468 = vrcp.f32 %v1308_v18 }
 0xab2   : > { %v1313_v19 = vpop.permute.xlu0 %1312 }
 0xab3   : > { %v1318_v20 = vsel %vm837_vm4, %v1313_v19, 0 }
 0xab4   : > { %2218 = vmatpush3.bf16.msra.mxu1 %v1318_v20 }
 0xab5   : > { %2229 = vmatprep.subr.bf16.mxu1 %v2819_v8 }
 0xab9   : > { %v2469_v21 = vpop.eup %2468 }
 0xaba   : > { %v1310_v22 = vmul.f32 %v2469_v21, %v2467_v12 }
 0xabc   : > { %v1311_v23 = vpack.c.bf16 %v1310_v22, %v1310_v22 }
 0xabe   : > { %2220 = vmatmul.mubr.msk.bf16.vlgmr.msra.gmra.mrb[20].mxu1 %vm772_vm2, %v1311_v23 }
 0xabf   : > { %2233 = vmatprep.mubr.msk.bf16.mxu1 %vm2820_vm1, %v2819_v8  ;;  %2230 = vmatpush3.bf16.msra.mxu1 %v2432_v48 }
 0xac0   : > { %2231 = vmatprep.subr.bf16.mxu1 %v2819_v8 }
 0xac3   : > { %2232 = vmatpush3.bf16.msra.mxu1 %v2433_v49  ;;  %v2448_v49 = vld [vmem:[%s3505_s15 + $0x20] sm:$0xff]  }
 0xac4   : > { %2257 = vmatprep.subr.bf16.mxu1 %v2819_v8 }
 0xb91   : > { %v1354_v25 = vpop.f32.mrb[20].mxu1 }
 0xb92   : > { %v1360_v27 = vpack.c.bf16 %v1354_v25, %v1354_v25  ;;  %v2221_v29 = vpop.f32.mrb[21].mxu1 }
 0xb93   : > { %v1357_v30 = vpop.f32.mrb[22].mxu1 }
 0xb94   : > { %v2222_v31 = vpop.f32.mrb[23].mxu1  ;;  %2226 = vmatmul.mubr.msk.bf16.vlgmr.msra.gmra.mrb[24].mxu0 %vm772_vm2, %v1360_v27 }
 0xb95   : > { %2253 = vmatprep.mubr.msk.bf16.mxu0 %vm2820_vm1, %v2819_v8 }
 0xc67   : > { %v1402_v32 = vpop.f32.mrb[24].mxu0 }
 0xc68   : > { %v1408_v34 = vadd.f32 %v1402_v32, %v1248_v35  ;;  %v2227_v37 = vpop.f32.mrb[25].mxu0 }
 0xc69   : > { %v1405_v38 = vpop.f32.mrb[26].mxu0  ;;  %v2445_v37 = vld [vmem:[%s3505_s15 + $0x8] sm:$0xff]  }
 0xc6a   : > { %v1416_v39 = vadd.f32 %v2063_v33, %v1408_v34  ;;  %v2228_v40 = vpop.f32.mrb[27].mxu0  ;;  %v2444_v34 = vld [vmem:[%s3505_s15] sm:$0xff]   ;;  %v2446_v38 = vld [vmem:[%s3505_s15 + $0x10] sm:$0xff]  }
 0xc6c   : > { %v3340_v41 = vadd.f32 %v1416_v39, %v3208_v0  ;;  %v2436_v0 = vld [vmem:[%s3501_s11] sm:$0xff]   ;;  %v2447_v39 = vld [vmem:[%s3505_s15 + $0x18] sm:$0xff]  }
 0xc6d   : > { %2238 = vmatpush3.bf16.msra.mxu0 %v2436_v0  ;;  %v2449_v0 = vld [vmem:[%s3505_s15 + $0x28] sm:$0xff]  }
 0xc6e   : > { %v1418_v42 = vsel %vm663_vm0, %v3340_v41, 0.0  ;;  %2239 = vmatprep.subr.bf16.mxu0 %v2819_v8 }
 0xc6f   : > { %1419 = vadd.xlane.f32.xlu1 %v1418_v42 }
 0xc71   : > { %2240 = vmatpush3.bf16.msra.mxu0 %v2437_v50  ;;  %v2450_v50 = vld [vmem:[%s3505_s15 + $0x30] sm:$0xff]  }
 0xc72   : > { %2241 = vmatprep.subr.bf16.mxu0 %v2819_v8 }
 0xc75   : > { %2242 = vmatpush3.bf16.msra.mxu0 %v2438_v51  ;;  %v2451_v51 = vld [vmem:[%s3505_s15 + $0x38] sm:$0xff]  }
 0xc76   : > { %2243 = vmatprep.subr.bf16.mxu0 %v2819_v8 }
 0xc79   : > { %2244 = vmatpush3.bf16.msra.mxu0 %v2439_v52 }
 0xc7a   : > { %2245 = vmatprep.subr.bf16.mxu0 %v2819_v8 }
 0xc7d   : > { %2246 = vmatpush3.bf16.msra.mxu0 %v2440_v28 }
 0xc7e   : > { %2247 = vmatprep.subr.bf16.mxu0 %v2819_v8 }
 0xc81   : > { %2248 = vmatpush3.bf16.msra.mxu0 %v2441_v53 }
 0xc82   : > { %2249 = vmatprep.subr.bf16.mxu0 %v2819_v8 }
 0xc85   : > { %2250 = vmatpush3.bf16.msra.mxu0 %v2442_v3 }
 0xc86   : > { %2251 = vmatprep.subr.bf16.mxu0 %v2819_v8 }
 0xc89   : > { %2252 = vmatpush3.bf16.msra.mxu0 %v2443_v4 }
 0xcfc   : > { %v1420_v43 = vpop.xlane.xlu1 %1419 }
 0xcfd   : > { %v1421_v44 = vmul.f32 0.03125, %v1420_v43 }
 0xcff   : > { %v1422_v45 = vsub.f32 %v3340_v41, %v1421_v44 }
 0xd01   : > { %v1423_v46 = vmul.f32 %v1422_v45, %v1422_v45 }
 0xd03   : > { %v1424_v47 = vsel %vm663_vm0, %v1423_v46, 0.0 }
 0xd04   : > { %1425 = vadd.xlane.f32.xlu1 %v1424_v47 }
 0xd91   : > { %v1426_v54 = vpop.xlane.xlu1 %1425 }
 0xd92   : > { %v1427_v55 = vmul.f32 0.03125, %v1426_v54 }
 0xd94   : > { %v1428_v56 = vadd.f32 1e-05, %v1427_v55 }
 0xd96   : > { %2470 = vrsqrt.f32 %v1428_v56 }
 0xda0   : > { %v2471_v57 = vpop.eup %2470 }
 0xda1   : > { %v1430_v59 = vmul.f32 %v2471_v57, %v1422_v45  ;;  %v2081_v57 = vld [vmem:[%s3504_s14] ss:$0 sm:$0xff] }
 0xda3   : > { %v1438_v61 = vmul.f32 %v2064_v58, %v1430_v59 }
 0xda5   : > { %v1446_v62 = vadd.f32 %v2065_v60, %v1438_v61 }
 0xda7   : > { %v1447_v1 = vpack.c.bf16 %v1446_v62, %v1446_v62 }
 0xda9   : > { %2234 = vmatmul.mubr.msk.bf16.vlgmr.msra.gmra.mrb[24].mxu1 %vm663_vm0, %v1447_v1 }
 0xdaa   : > { %2258 = vmatpush3.bf16.msra.mxu1 %v2434_v63  ;;  %2261 = vmatprep.mubr.msk.bf16.mxu1 %vm2820_vm1, %v2819_v8 }
 0xdab   : > { %2259 = vmatprep.subr.bf16.mxu1 %v2819_v8 }
 0xdae   : > { %2260 = vmatpush3.bf16.msra.mxu1 %v2435_v2 }
 0xdaf   : > { %2265 = vmatprep.subr.bf16.mxu1 %v2819_v8 }
 0xdb1   : > { %2262 = vmatmul.mubr.msk.bf16.vlgmr.msra.gmra.mrb[28].mxu1 %vm663_vm0, %v1447_v1 }
 0xdb2   : > { %2281 = vmatprep.mubr.msk.bf16.mxu1 %vm2820_vm1, %v2819_v8  ;;  %2266 = vmatpush3.bf16.msra.mxu1 %v2444_v34 }
 0xdb3   : > { %2267 = vmatprep.subr.bf16.mxu1 %v2819_v8 }
 0xdb6   : > { %2268 = vmatpush3.bf16.msra.mxu1 %v2445_v37 }
 0xdb7   : > { %2269 = vmatprep.subr.bf16.mxu1 %v2819_v8 }
 0xdba   : > { %2270 = vmatpush3.bf16.msra.mxu1 %v2446_v38 }
 0xdbb   : > { %2271 = vmatprep.subr.bf16.mxu1 %v2819_v8 }
 0xdbe   : > { %2272 = vmatpush3.bf16.msra.mxu1 %v2447_v39 }
 0xdbf   : > { %2273 = vmatprep.subr.bf16.mxu1 %v2819_v8 }
 0xdc2   : > { %2274 = vmatpush3.bf16.msra.mxu1 %v2448_v49 }
 0xdc3   : > { %2275 = vmatprep.subr.bf16.mxu1 %v2819_v8 }
 0xdc6   : > { %2276 = vmatpush3.bf16.msra.mxu1 %v2449_v0 }
 0xdc7   : > { %2277 = vmatprep.subr.bf16.mxu1 %v2819_v8 }
 0xdca   : > { %2278 = vmatpush3.bf16.msra.mxu1 %v2450_v50 }
 0xdcb   : > { %2279 = vmatprep.subr.bf16.mxu1 %v2819_v8 }
 0xdce   : > { %2280 = vmatpush3.bf16.msra.mxu1 %v2451_v51 }
 0xe7c   : > { %v1508_v6 = vpop.f32.mrb[24].mxu1 }
 0xe7d   : > { %v1509_v7 = vadd.f32 %v2066_v5, %v1508_v6  ;;  %v2235_v9 = vpop.f32.mrb[25].mxu1  ;;  %v2085_v6 = vld [vmem:[%s3553_s30] ss:$0 sm:$0xff] }
 0xe7e   : > { %v1511_v10 = vpop.f32.mrb[26].mxu1 }
 0xe7f   : > { %v1514_v11 = vmax.f32 %v1509_v7, 0.0  ;;  %v2236_v12 = vpop.f32.mrb[27].mxu1 }
 0xe81   : > { %v1515_v13 = vpack.c.bf16 %v1514_v11, %v1514_v11 }
 0xe83   : > { %2254 = vmatmul.mubr.bf16.vlgmr.msra.gmra.mrb[28].mxu0 %v1515_v13 }
 0xe84   : > { %v3393_v14 = vpop.f32.mrb[28].mxu1 }
 0xe85   : > { %v2263_v35 = vpop.f32.mrb[29].mxu1  ;;  %v1739_v61 = vadd.f32 %v2081_v57, %v3393_v14 }
 0xe86   : > { %v1741_v15 = vpop.f32.mrb[30].mxu1 }
 0xe87   : > { %v2264_v16 = vpop.f32.mrb[31].mxu1  ;;  %v1744_v2 = vmax.f32 %v1739_v61, 0.0 }
 0xf56   : > { %v1621_v18 = vpop.f32.mrb[28].mxu0 }
 0xf57   : > { %v1622_v19 = vadd.f32 %v2070_v17, %v1621_v18  ;;  %v2255_v20 = vpop.f32.mrb[29].mxu0 }
 0xf58   : > { %v1624_v21 = vpop.f32.mrb[30].mxu0 }
 0xf59   : > { %v2256_v22 = vpop.f32.mrb[31].mxu0  ;;  %v1630_v23 = vsel %vm1628_vm5, %v1622_v19, -1e+30  ;;  %v1657_v26 = vsel %vm1654_vm6, %v1622_v19, -1e+30 }
 0xf5a   : > { %1631 = vmax.xlane.f32.xlu1 %v1630_v23 }
 0xf5e   : > { %1658 = vmax.xlane.f32.xlu1 %v1657_v26 }
 0xfe7   : > { %v1632_v24 = vpop.xlane.xlu1 %1631 }
 0xfe8   : > { %vm1633_vm7 = vcmp.eq.f32.partialorder %v1622_v19, %v1632_v24 }
 0xfe9   : > { %vm1634_vm8 = vmand %vm1628_vm5, %vm1633_vm7 }
 0xfea   : > { %v1635_v25 = vsel %vm1634_vm8, %v3254_v36, 128 }
 0xfeb   : > { %v1659_v27 = vpop.xlane.xlu1 %1658  ;;  %v1637_v29 = vshra.s32 %v1635_v25, 16  ;;  %v1636_v40 = vand.u32 65535, %v1635_v25 }
 0xfec   : > { %vm1660_vm9 = vcmp.eq.f32.partialorder %v1622_v19, %v1659_v27 }
 0xfed   : > { %vm1661_vm10 = vmand %vm1654_vm6, %vm1660_vm9  ;;  %v1639_v30 = vcvt.s32.f32 %v1637_v29  ;;  %v1638_v43 = vcvt.s32.f32 %v1636_v40 }
 0xfee   : > { %v1662_v31 = vsel %vm1661_vm10, %v3254_v36, 128 }
 0xfef   : > { %1640 = vmin.xlane.f32.xlu1 %v1639_v30  ;;  %v1664_v32 = vshra.s32 %v1662_v31, 16  ;;  %v1663_v44 = vand.u32 65535, %v1662_v31 }
 0xff1   : > { %v1666_v33 = vcvt.s32.f32 %v1664_v32  ;;  %v1665_v47 = vcvt.s32.f32 %v1663_v44 }
 0xff3   : > { %1667 = vmin.xlane.f32.xlu0 %v1666_v33 }
0x107c   : > { %v1641_v42 = vpop.xlane.xlu1 %1640 }
0x107d   : > { %vm1642_vm11 = vcmp.eq.f32.partialorder %v1639_v30, %v1641_v42  ;;  %v1647_v52 = vcvt.f32.s32 %v1641_v42 }
0x107e   : > { %v1643_v45 = vsel %vm1642_vm11, %v1638_v43, inf }
0x107f   : > { %1644 = vmin.xlane.f32.xlu1 %v1643_v45  ;;  %v1648_v53 = vshll.u32 %v1647_v52, 16 }
0x1080   : > { %v1668_v46 = vpop.xlane.xlu0 %1667 }
0x1081   : > { %vm1669_vm12 = vcmp.eq.f32.partialorder %v1666_v33, %v1668_v46  ;;  %v1674_v54 = vcvt.f32.s32 %v1668_v46 }
0x1082   : > { %v1670_v48 = vsel %vm1669_vm12, %v1665_v47, inf }
0x1083   : > { %1671 = vmin.xlane.f32.xlu1 %v1670_v48  ;;  %v1675_v59 = vshll.u32 %v1674_v54, 16 }
0x110c   : > { %v1645_v28 = vpop.xlane.xlu1 %1644 }
0x110d   : > { %v1646_v55 = vcvt.f32.s32 %v1645_v28 }
0x110f   : > { %v1649_v56 = vadd.s32 %v1648_v53, %v1646_v55 }
0x1110   : > { %v1672_v58 = vpop.xlane.xlu1 %1671 }
0x1111   : > { %v1673_v60 = vcvt.f32.s32 %v1672_v58  ;;  %vm1650_vm13 = vcmp.eq.s32.totalorder %v3254_v36, %v1649_v56 }
0x1112   : > { %v2079_v63 = vsel %vm1650_vm13, 1.0, %v2819_v8 }
0x1113   : > { %v1676_v62 = vadd.s32 %v1675_v59, %v1673_v60 }
0x1115   : > { %vm1677_vm14 = vcmp.eq.s32.totalorder %v3254_v36, %v1676_v62 }
0x1116   : > { %v2080_v1 = vsel %vm1677_vm14, 1.0, %v2819_v8 }
0x1117   : > { %v1680_v3 = vadd.f32 %v2080_v1, %v2079_v63 }
0x1119   : > { %v1745_v4 = vmul.f32 %v1744_v2, %v1680_v3 }
0x111b   : > { %v1746_v5 = vpack.c.bf16 %v1745_v4, %v1745_v4 }
0x111d   : > { %2282 = vmatmul.mubr.bf16.vlgmr.msra.gmra.mrb[32].mxu1 %v1746_v5 }
0x11f0   : > { %v1852_v7 = vpop.f32.mrb[32].mxu1 }
0x11f1   : > { %v1853_v36 = vadd.f32 %v2085_v6, %v1852_v7  ;;  %v2283_v9 = vpop.f32.mrb[33].mxu1 }
0x11f2   : > { %v1855_v10 = vpop.f32.mrb[34].mxu1 }
0x11f3   : > { %v1858_v8 = vadd.f32 %v1853_v36, %v3340_v41  ;;  %v2284_v11 = vpop.f32.mrb[35].mxu1 }
0x11f5   : > { %1859 = vst.msk [vmem:[%s656_s18] sm:$0xff] %vm663_vm0, %v1858_v8 }
0x11f6   : > { %2737 = shalt.err (!%p2734_p9)
}
0x11f7   : > { %s2738_s22 = scalar_lea.hbm %s3447_s1, 128  ;;  %s2742_s27 = scalar_lea.hbm %s3555_s16, 256 }
0x11f8   : > { %p2739_p12 = scmp.ne.s32.totalorder %s3447_s1, %s2738_s22  ;;  %p2743_p3 = scmp.lt.u32.totalorder %s3447_s1, %s3555_s16 }
0x11f9   : > { %p2744_p4 = scmp.lt.u32.totalorder %s2742_s27, %s2738_s22  ;;  %p2746_p8 = scmp.lt.u32.totalorder %s2738_s22, %s3447_s1 }
0x11fa   : > { %p2740_p10 = pnand %p2739_p12, %p3556_p11 }
0x11fb   : > { %p2745_p7 = por %p2744_p4, %p2743_p3 }
0x11fc   : > { %p2741_p2 = pneg %p2740_p10 }
0x11fd   : > { %p2747_p13 = por %p2746_p8, %p2745_p7 }
0x11ff   : > { %p2748_p1 = pnand %p2747_p13, %p2741_p2 }
0x1201   : > { %2751 = shalt.err (!%p2748_p1)
}
0x1202   : > { %2321 = dma.vmem_to_hbm [thread:$0]  (%p3556_p11), %s3449_s29, 128, %s3447_s1, %s1861_s28  }
0x1203 PF: > { %s3557_s18 = sld [smem:[#allocation26_spill]]  ;;  %s3558_s2 = sld [smem:[#allocation24_spill]] }
0x1204   : > { %s3559_s23 = sld [smem:[#allocation30_spill]] }
0x1209   : > { %p2373_p0 = scmp.ge.s32.totalorder %s3557_s18, 2  ;;  %s1886_s26 = sand.u32 1, %s3558_s2  }
0x120a   : > { %p3560_p6 = scmp.ne.s32.totalorder %s3559_s23, 0  ;;  %s1887_s19 = scalar_lea.sflag [#allocation4], %s1886_s26 }
0x120c   : > { %p2352_p5 = pnand %p2373_p0, %p3560_p6 }
0x120e   : > { %2789 = dma.done.wait (!%p2352_p5), %s1887_s19, 128  }
0x120f   : > { %2791 = vsyncadd (!%p2352_p5), %s1887_s19, 4294967168  ;;  %s3561_s27 = sld [smem:[#allocation27_spill]]  ;;  %s3562_s20 = sld [smem:[#allocation25_spill]] }
0x1210   : > { %s3563_s26 = sld [smem:[#allocation28_spill]]  ;;  %s3564_s24 = smov %s2798_s25 }
0x1215   : > { %p32_p9 = scmp.ge.s32.totalorder %s3561_s27, 4   ;;  %s3565_s25 = smov %s3562_s20 }
0x1217   :  { %34 = sbr.rel (!%p32_p9) target bundleno = 15 (0xf), region = 160 }
0x121e   :  { %1892 = vsyncpa [#allocation3], 1 }
0x121f   :  { %1894 = vsyncpa [#allocation3 + $0x1], 1 }
0x1220   :  { %1895 = vsyncpa [#allocation6], 1 }
0x1221   :  { %1896 = vsyncpa [#allocation9], 1 }
0x1222   :  { %1897 = vsyncpa [#allocation12], 1 }
0x1223   :  { %1898 = vsyncpa [#allocation15], 1 }
0x1224   :  { %1899 = vsyncpa [#allocation4], 1 }
0x1225   :  { %1901 = vsyncpa [#allocation4 + $0x1], 1 }

// kernel: tpu_custom_call.1
= control target key start
LH: loop header
LB: loop body
LE: loop exit
PB: predicated region body
PF: predicated region fallthrough
CT: control target
= control target key end

     0   :  { %s3490_s0 = inlined_call_operand.vmem [shape: f32[2,8,32], index: 0, kind: input, shape index: {}]   ;;  %s3491_s1 = inlined_call_operand.vmem [shape: f32[1,32], index: 1, kind: input, shape index: {}]   ;;  %s3492_s2 = inlined_call_operand.hbm [shape: f32[1,32], index: 2, kind: input, shape index: {}]   ;;  %s3493_s3 = inlined_call_operand.vmem [shape: bf16[32,96], index: 3, kind: input, shape index: {}]   ;;  %s3494_s4 = inlined_call_operand.hbm [shape: f32[1,96], index: 4, kind: input, shape index: {}]   ;;  %s3495_s5 = inlined_call_operand.hbm [shape: bf16[32,32], index: 5, kind: input, shape index: {}]   ;;  %s3496_s6 = inlined_call_operand.hbm [shape: f32[1,32], index: 6, kind: input, shape index: {}]   ;;  %s3497_s7 = inlined_call_operand.hbm [shape: f32[1,32], index: 7, kind: input, shape index: {}]   ;;  %s3498_s8 = inlined_call_operand.hbm [shape: f32[1,32], index: 8, kind: input, shape index: {}]   ;;  %s3499_s9 = inlined_call_operand.hbm [shape: bf16[32,128], index: 9, kind: input, shape index: {}]   ;;  %s3500_s10 = inlined_call_operand.hbm [shape: f32[1,128], index: 10, kind: input, shape index: {}]   ;;  %s3501_s11 = inlined_call_operand.vmem [shape: bf16[128,128], index: 11, kind: input, shape index: {}]   ;;  %s3502_s12 = inlined_call_operand.hbm [shape: f32[1,128], index: 12, kind: input, shape index: {}]   ;;  %s3503_s13 = inlined_call_operand.vmem [shape: bf16[32,128], index: 13, kind: input, shape index: {}]   ;;  %s3504_s14 = inlined_call_operand.vmem [shape: f32[1,128], index: 14, kind: input, shape index: {}]   ;;  %s3505_s15 = inlined_call_operand.vmem [shape: bf16[128,32], index: 15, kind: input, shape index: {}]   ;;  %s3506_s16 = inlined_call_operand.vmem [shape: f32[1,32], index: 16, kind: input, shape index: {}]   ;;  %s3507_s17 = inlined_call_operand.hbm [shape: f32[2,8,32], index: 17, kind: output, shape index: {}]  }
   0x1   :  { %3520 = sst [smem:[#allocation31_spill]] %s3490_s0 }
   0x2   :  { %3521 = sst [smem:[#allocation32_spill]] %s3491_s1 }
   0x3   :  { %3522 = sst [smem:[#allocation33_spill]] %s3492_s2 }
   0x4   :  { %3523 = sst [smem:[#allocation34_spill]] %s3494_s4 }
   0x5   :  { %3524 = sst [smem:[#allocation35_spill]] %s3506_s16 }
   0x6   :  { %3525 = sst [smem:[#allocation36_spill]] %s3507_s17 }
   0x7   :  { %22 = vsyncpa [#allocation3], 0 }
   0x8   :  { %23 = vsyncpa [#allocation6], 0 }
   0x9   :  { %24 = vsyncpa [#allocation9], 0 }
   0xa   :  { %25 = vsyncpa [#allocation12], 0 }
   0xb   :  { %26 = vsyncpa [#allocation15], 0 }
   0xc   :  { %27 = vsyncpa [#allocation4], 0 }
   0xd   :  { %29 = vsyncpa [#allocation4 + $0x1], 0  ;;  %s2923_s24 = smov 0   ;;  %s2925_s25 = smov 0  }
   0xe   :  { %s2927_s26 = smov 0   ;;  %s2929_s27 = smov 0  }
   0xf LB: > { %3526 = sst [smem:[#allocation24_spill]] %s2794_s24  ;;  %s2944_s28 = sadd.s32 4294967295, %s2806_s27   ;;  %s2806_s27 = sphi %s2929_s27, %s3561_s27   ;;  %s2802_s26 = sphi %s2927_s26, %s3563_s26   ;;  %s2798_s25 = sphi %s2925_s25, %s3565_s25   ;;  %s2794_s24 = sphi %s2923_s24, %s3564_s24  }
  0x10   : > { %3527 = sst [smem:[#allocation25_spill]] %s2802_s26  ;;  %s2021_s29 = sadd.s32 4294967294, %s2806_s27  }
  0x11   : > { %3528 = sst [smem:[#allocation26_spill]] %s2806_s27  ;;  %s2948_s0 = sadd.s32 1, %s2806_s27  }
  0x12   : > { %3529 = sst [smem:[#allocation27_spill]] %s2948_s0  ;;  %s404_s30 = sadd.s32 1, %s2802_s26 }
  0x13   : > { %s401_s18 = ssub.s32 %s2806_s27, %s2948_s0  ;;  %p414_p0 = scmp.ne.s32.totalorder %s2802_s26, %s2798_s25 }
  0x14   : > { %p402_p1 = scmp.eq.s32.totalorder %s401_s18, 0  ;;  %p415_p2 = scmp.eq.s32.totalorder %s2944_s28, 1 }
  0x15   : > { %p420_p3 = scmp.ne.s32.totalorder %s2798_s25, %s2794_s24  ;;  %p421_p4 = scmp.eq.s32.totalorder %s2021_s29, 1 }
  0x16   : > { %s2959_s19 = scalar_select %p402_p1, %s2802_s26, %s404_s30  }
  0x17   : > { %p2961_p5 = por %p415_p2, %p414_p0  ;;  %p2965_p6 = por %p421_p4, %p420_p3 }
  0x18   : > { %3530 = sst [smem:[#allocation28_spill]] %s2959_s19  ;;  %p2022_p7 = scmp.ge.s32.totalorder %s2806_s27, 1 }
  0x19   : > { %s3531_s1 = scalar_select %p2961_p5, 1, 0 }
  0x1a   : > { %s3533_s20 = scalar_select %p2965_p6, 1, 0 }
  0x1b   : > { %3532 = sst [smem:[#allocation29_spill]] %s3531_s1  ;;  %p428_p8 = scmp.lt.s32.totalorder %s2806_s27, 3 }
  0x1c   : > { %3534 = sst [smem:[#allocation30_spill]] %s3533_s20  ;;  %p3515_p9 = scmp.eq.s32.totalorder %s2944_s28, 0 }
  0x1d   : > { %p2972_p10 = pnand %p2022_p7, %p428_p8  ;;  %s2808_s22 = smov [#allocation5]  }
  0x1e   : > { %s458_s23 = sshll.u32 %s2808_s22, 4  ;;  %s2809_s29 = smov [#allocation8]   ;;  %s459_s23 = int_to_ptr.vmem [resolvable:$true] %s458_s23 }
  0x1f   : > { %s3535_s21 = scalar_select %p2972_p10, 1, 0 }
  0x20   : > { %p2323_p11 = pneg %p2972_p10  ;;  %s482_s30 = sshll.u32 %s2809_s29, 4  ;;  %s2984_s30 = int_to_ptr.vmem [resolvable:$true] %s482_s30 }
  0x21   : > { %s2810_s19 = smov [#allocation11]   ;;  %s3537_s4 = sld [smem:[#allocation34_spill]] }
  0x22   : > { %p2980_p12 = pnand %p3515_p9, %p2323_p11  ;;  %s504_s26 = sshll.u32 %s2810_s19, 4  ;;  %s2986_s26 = int_to_ptr.vmem [resolvable:$true] %s504_s26 }
  0x24   : > { %p2996_p0 = pneg %p2980_p12 }
  0x27   : > { %s2472_s22 = scalar_lea.hbm %s3537_s4, 16 }
  0x28   : > { %p2473_p13 = scmp.ne.s32.totalorder %s3537_s4, %s2472_s22  ;;  %p2479_p3 = scmp.lt.u32.totalorder %s2472_s22, %s3537_s4 }
  0x2a   : > { %p2475_p1 = pnand %p2996_p0, %p2473_p13 }
  0x2c   : > { %p2476_p2 = pneg %p2475_p1 }
  0x2e   : > { %p2481_p4 = pnand %p2479_p3, %p2476_p2 }
  0x30   : > { %2484 = shalt.err (!%p2481_p4)
}
  0x31   : > { %s2485_s0 = scalar_lea.vmem %s459_s23, 16  ;;  %s2492_s24 = scalar_lea.vmem %s459_s23, 32 }
  0x32   : > { %p2486_p7 = scmp.ne.s32.totalorder %s459_s23, %s2485_s0  ;;  %p2493_p9 = scmp.lt.s32.totalorder %s459_s23, %s459_s23 }
  0x33   : > { %p2494_p6 = scmp.lt.s32.totalorder %s2492_s24, %s2485_s0 }
  0x34   : > { %p2488_p8 = pnand %p2486_p7, %p2996_p0 }
  0x35   : > { %p2495_p5 = por %p2494_p6, %p2493_p9 }
  0x36   : > { %p2489_p11 = pneg %p2488_p8 }
  0x38   : > { %p2496_p10 = pnand %p2495_p5, %p2489_p11 }
  0x3a   : > { %2499 = shalt.err (!%p2496_p10)
}
  0x3b   : > { %2329 = dma.hbm_to_vmem [thread:$0]  (!%p2980_p12), %s3537_s4, 16, %s459_s23, [#allocation6]  }
  0x3c   : > { %s2500_s19 = scalar_lea.hbm %s3496_s6, 16 }
  0x3d   : > { %p2501_p13 = scmp.ne.s32.totalorder %s3496_s6, %s2500_s19  ;;  %p2507_p5 = scmp.lt.u32.totalorder %s2500_s19, %s3496_s6 }
  0x3f   : > { %p2503_p1 = pnand %p2501_p13, %p2996_p0 }
  0x41   : > { %p2504_p6 = pneg %p2503_p1 }
  0x43   : > { %p2509_p9 = pnand %p2507_p5, %p2504_p6 }
  0x45   : > { %2512 = shalt.err (!%p2509_p9)
}
  0x46   : > { %s2513_s23 = scalar_lea.vmem %s2984_s30, 16  ;;  %s2520_s16 = scalar_lea.vmem %s2984_s30, 32 }
  0x47   : > { %p2514_p10 = scmp.ne.s32.totalorder %s2984_s30, %s2513_s23  ;;  %p2521_p4 = scmp.lt.s32.totalorder %s2984_s30, %s2984_s30 }
  0x48   : > { %p2522_p7 = scmp.lt.s32.totalorder %s2520_s16, %s2513_s23 }
  0x49   : > { %p2516_p2 = pnand %p2514_p10, %p2996_p0 }
  0x4a   : > { %p2523_p8 = por %p2522_p7, %p2521_p4 }
  0x4b   : > { %p2517_p3 = pneg %p2516_p2 }
  0x4d   : > { %p2524_p11 = pnand %p2523_p8, %p2517_p3 }
  0x4f   : > { %2527 = shalt.err (!%p2524_p11)
}
  0x50   : > { %2335 = dma.hbm_to_vmem [thread:$0]  (!%p2980_p12), %s3496_s6, 16, %s2984_s30, [#allocation9]  }
  0x51   : > { %s2528_s22 = scalar_lea.hbm %s3498_s8, 16 }
  0x52   : > { %p2529_p13 = scmp.ne.s32.totalorder %s3498_s8, %s2528_s22  ;;  %p2535_p5 = scmp.lt.u32.totalorder %s2528_s22, %s3498_s8 }
  0x54   : > { %p2531_p1 = pnand %p2529_p13, %p2996_p0 }
  0x56   : > { %p2532_p6 = pneg %p2531_p1 }
  0x58   : > { %p2537_p9 = pnand %p2535_p5, %p2532_p6 }
  0x5a   : > { %2540 = shalt.err (!%p2537_p9)
}
  0x5b   : > { %s2541_s30 = scalar_lea.vmem %s2986_s26, 16  ;;  %s2548_s16 = scalar_lea.vmem %s2986_s26, 32 }
  0x5c   : > { %p2542_p10 = scmp.ne.s32.totalorder %s2986_s26, %s2541_s30  ;;  %p2549_p4 = scmp.lt.s32.totalorder %s2986_s26, %s2986_s26 }
  0x5d   : > { %p2550_p7 = scmp.lt.s32.totalorder %s2548_s16, %s2541_s30 }
  0x5e   : > { %p2544_p2 = pnand %p2542_p10, %p2996_p0 }
  0x5f   : > { %p2551_p8 = por %p2550_p7, %p2549_p4 }
  0x60   : > { %p2545_p3 = pneg %p2544_p2 }
  0x62   : > { %p2552_p11 = pnand %p2551_p8, %p2545_p3 }
  0x64   : > { %2555 = shalt.err (!%p2552_p11)
}
  0x65   : > { %2341 = dma.hbm_to_vmem [thread:$0]  (!%p2980_p12), %s3498_s8, 16, %s2986_s26, [#allocation12]  }
  0x66   : > { %s2811_s20 = smov [#allocation14]   ;;  %s2812_s22 = smov [#allocation2]  }
  0x67   : > { %s528_s17 = sshll.u32 %s2811_s20, 4  ;;  %s444_s19 = sshll.u32 %s2812_s22, 4  ;;  %s529_s17 = int_to_ptr.vmem [resolvable:$true] %s528_s17  ;;  %s445_s19 = int_to_ptr.vmem [resolvable:$true] %s444_s19 }
  0x68   : > { %s2556_s23 = scalar_lea.hbm %s3500_s10, 16 }
  0x69   : > { %p2557_p13 = scmp.ne.s32.totalorder %s3500_s10, %s2556_s23  ;;  %p2563_p5 = scmp.lt.u32.totalorder %s2556_s23, %s3500_s10 }
  0x6b   : > { %p2559_p1 = pnand %p2557_p13, %p2996_p0 }
  0x6d   : > { %p2560_p6 = pneg %p2559_p1 }
  0x6f   : > { %p2565_p9 = pnand %p2563_p5, %p2560_p6 }
  0x71   : > { %2568 = shalt.err (!%p2565_p9)
}
  0x72   : > { %s2569_s26 = scalar_lea.vmem %s529_s17, 16  ;;  %s2576_s27 = scalar_lea.vmem %s529_s17, 32 }
  0x73   : > { %p2570_p10 = scmp.ne.s32.totalorder %s529_s17, %s2569_s26  ;;  %p2577_p4 = scmp.lt.s32.totalorder %s529_s17, %s529_s17 }
  0x74   : > { %p2578_p7 = scmp.lt.s32.totalorder %s2576_s27, %s2569_s26 }
  0x75   : > { %p2572_p2 = pnand %p2570_p10, %p2996_p0 }
  0x76   : > { %p2579_p8 = por %p2578_p7, %p2577_p4 }
  0x77   : > { %p2573_p3 = pneg %p2572_p2 }
  0x79   : > { %p2580_p11 = pnand %p2579_p8, %p2573_p3 }
  0x7b   : > { %2583 = shalt.err (!%p2580_p11)
}
  0x7c   : > { %2347 = dma.hbm_to_vmem [thread:$0]  (!%p2980_p12), %s3500_s10, 16, %s529_s17, [#allocation15]  }
  0x7d   : > { %s3539_s2 = sld [smem:[#allocation33_spill]] }
  0x83   : > { %s2584_s24 = scalar_lea.hbm %s3539_s2, 16 }
  0x84   : > { %p2585_p13 = scmp.ne.s32.totalorder %s3539_s2, %s2584_s24  ;;  %p2591_p5 = scmp.lt.u32.totalorder %s2584_s24, %s3539_s2 }
  0x86   : > { %p2587_p1 = pnand %p2585_p13, %p2996_p0 }
  0x88   : > { %p2588_p6 = pneg %p2587_p1 }
  0x8a   : > { %p2593_p9 = pnand %p2591_p5, %p2588_p6 }
  0x8c   : > { %2596 = shalt.err (!%p2593_p9)
}
  0x8d   : > { %s2597_s26 = scalar_lea.vmem %s445_s19, 16  ;;  %s2604_s17 = scalar_lea.vmem %s445_s19, 32 }
  0x8e   : > { %p2598_p10 = scmp.ne.s32.totalorder %s445_s19, %s2597_s26  ;;  %p2605_p4 = scmp.lt.s32.totalorder %s445_s19, %s445_s19 }
  0x8f   : > { %p2606_p7 = scmp.lt.s32.totalorder %s2604_s17, %s2597_s26 }
  0x90   : > { %p2600_p2 = pnand %p2598_p10, %p2996_p0 }
  0x91   : > { %p2607_p8 = por %p2606_p7, %p2605_p4 }
  0x92   : > { %p2601_p3 = pneg %p2600_p2 }
  0x94   : > { %p2608_p11 = pnand %p2607_p8, %p2601_p3 }
  0x96   : > { %2611 = shalt.err (!%p2608_p11)
}
  0x97   : > { %2326 = dma.hbm_to_vmem [thread:$0]  (!%p2980_p12), %s3539_s2, 16, %s445_s19, [#allocation3]  }
  0x98   : > { %s2813_s22 = smov [#allocation7]   ;;  %s2612_s23 = scalar_lea.hbm %s3495_s5, 256 }
  0x99   : > { %s468_s4 = sshll.u32 %s2813_s22, 4  ;;  %p2613_p13 = scmp.ne.s32.totalorder %s3495_s5, %s2612_s23  ;;  %s469_s4 = int_to_ptr.vmem [resolvable:$true] %s468_s4 }
  0x9a   : > { %p2619_p5 = scmp.lt.u32.totalorder %s2612_s23, %s3495_s5 }
  0x9b   : > { %p2615_p1 = pnand %p2613_p13, %p2996_p0 }
  0x9d   : > { %p2616_p6 = pneg %p2615_p1 }
  0x9f   : > { %p2621_p9 = pnand %p2619_p5, %p2616_p6 }
  0xa1   : > { %2624 = shalt.err (!%p2621_p9)
}
  0xa2   : > { %s2625_s19 = scalar_lea.vmem %s469_s4, 256  ;;  %p2633_p4 = scmp.lt.s32.totalorder %s469_s4, %s469_s4 }
  0xa3   : > { %p2626_p10 = scmp.ne.s32.totalorder %s469_s4, %s2625_s19  ;;  %p2634_p7 = scmp.lt.s32.totalorder %s2625_s19, %s2625_s19 }
  0xa5   : > { %p2628_p2 = pnand %p2626_p10, %p2996_p0  ;;  %p2635_p8 = por %p2634_p7, %p2633_p4 }
  0xa7   : > { %p2629_p3 = pneg %p2628_p2 }
  0xa9   : > { %p2636_p11 = pnand %p2635_p8, %p2629_p3 }
  0xab   : > { %2639 = shalt.err (!%p2636_p11)
}
  0xac   : > { %s2814_s17 = smov 64   ;;  %s2815_s27 = smov 4  }
  0xad   : > { %2332 = dma.hbm_to_vmem [thread:$0]  (!%p2980_p12), %s3495_s5, 256, %s469_s4, [#allocation6], %s2814_s17, %s2814_s17, %s2815_s27  }
  0xae   : > { %s2816_s0 = smov [#allocation10]   ;;  %s2817_s23 = smov [#allocation13]  }
  0xaf   : > { %s493_s24 = sshll.u32 %s2816_s0, 4  ;;  %s514_s30 = sshll.u32 %s2817_s23, 4  ;;  %s494_s24 = int_to_ptr.vmem [resolvable:$true] %s493_s24  ;;  %s3117_s30 = int_to_ptr.vmem [resolvable:$true] %s514_s30 }
  0xb0   : > { %s2640_s26 = scalar_lea.hbm %s3497_s7, 16 }
  0xb1   : > { %p2641_p13 = scmp.ne.s32.totalorder %s3497_s7, %s2640_s26  ;;  %p2647_p5 = scmp.lt.u32.totalorder %s2640_s26, %s3497_s7 }
  0xb3   : > { %p2643_p1 = pnand %p2641_p13, %p2996_p0 }
  0xb5   : > { %p2644_p6 = pneg %p2643_p1 }
  0xb7   : > { %p2649_p9 = pnand %p2647_p5, %p2644_p6 }
  0xb9   : > { %2652 = shalt.err (!%p2649_p9)
}
  0xba   : > { %s2653_s22 = scalar_lea.vmem %s494_s24, 16  ;;  %s2660_s0 = scalar_lea.vmem %s494_s24, 32 }
  0xbb   : > { %p2654_p10 = scmp.ne.s32.totalorder %s494_s24, %s2653_s22  ;;  %p2661_p4 = scmp.lt.s32.totalorder %s494_s24, %s494_s24 }
  0xbc   : > { %p2662_p7 = scmp.lt.s32.totalorder %s2660_s0, %s2653_s22 }
  0xbd   : > { %p2656_p2 = pnand %p2654_p10, %p2996_p0 }
  0xbe   : > { %p2663_p8 = por %p2662_p7, %p2661_p4 }
  0xbf   : > { %p2657_p3 = pneg %p2656_p2 }
  0xc1   : > { %p2664_p11 = pnand %p2663_p8, %p2657_p3 }
  0xc3   : > { %2667 = shalt.err (!%p2664_p11)
}
  0xc4   : > { %2338 = dma.hbm_to_vmem [thread:$0]  (!%p2980_p12), %s3497_s7, 16, %s494_s24, [#allocation9]  }
  0xc5   : > { %s2668_s26 = scalar_lea.hbm %s3499_s9, 256 }
  0xc6   : > { %p2669_p13 = scmp.ne.s32.totalorder %s3499_s9, %s2668_s26  ;;  %p2675_p5 = scmp.lt.u32.totalorder %s2668_s26, %s3499_s9 }
  0xc8   : > { %p2671_p1 = pnand %p2669_p13, %p2996_p0 }
  0xca   : > { %p2672_p6 = pneg %p2671_p1 }
  0xcc   : > { %p2677_p9 = pnand %p2675_p5, %p2672_p6 }
  0xce   : > { %2680 = shalt.err (!%p2677_p9)
}
  0xcf   : > { %s2681_s24 = scalar_lea.vmem %s3117_s30, 256  ;;  %p2689_p4 = scmp.lt.s32.totalorder %s3117_s30, %s3117_s30 }
  0xd0   : > { %p2682_p10 = scmp.ne.s32.totalorder %s3117_s30, %s2681_s24  ;;  %p2690_p7 = scmp.lt.s32.totalorder %s2681_s24, %s2681_s24 }
  0xd2   : > { %p2684_p2 = pnand %p2682_p10, %p2996_p0  ;;  %p2691_p8 = por %p2690_p7, %p2689_p4 }
  0xd4   : > { %p2685_p3 = pneg %p2684_p2 }
  0xd6   : > { %p2692_p11 = pnand %p2691_p8, %p2685_p3 }
  0xd8   : > { %2695 = shalt.err (!%p2692_p11)
}
  0xd9   : > { %2344 = dma.hbm_to_vmem [thread:$0]  (!%p2980_p12), %s3499_s9, 256, %s3117_s30, [#allocation12], %s2814_s17, %s2814_s17, %s2815_s27  }
  0xda   : > { %s2818_s23 = smov [#allocation16]   ;;  %s2696_s19 = scalar_lea.hbm %s3502_s12, 16 }
  0xdb   : > { %s542_s16 = sshll.u32 %s2818_s23, 4  ;;  %p2697_p13 = scmp.ne.s32.totalorder %s3502_s12, %s2696_s19  ;;  %s543_s16 = int_to_ptr.vmem [resolvable:$true] %s542_s16 }
  0xdc   : > { %p2703_p5 = scmp.lt.u32.totalorder %s2696_s19, %s3502_s12 }
  0xdd   : > { %p2699_p1 = pnand %p2697_p13, %p2996_p0 }
  0xdf   : > { %p2700_p6 = pneg %p2699_p1 }
  0xe1   : > { %p2705_p9 = pnand %p2703_p5, %p2700_p6 }
  0xe3   : > { %2708 = shalt.err (!%p2705_p9)
}
  0xe4   : > { %s2709_s17 = scalar_lea.vmem %s543_s16, 16  ;;  %s2716_s27 = scalar_lea.vmem %s543_s16, 32 }
  0xe5   : > { %p2710_p10 = scmp.ne.s32.totalorder %s543_s16, %s2709_s17  ;;  %p2717_p4 = scmp.lt.s32.totalorder %s543_s16, %s543_s16 }
  0xe6   : > { %p2718_p7 = scmp.lt.s32.totalorder %s2716_s27, %s2709_s17 }
  0xe7   : > { %p2712_p2 = pnand %p2710_p10, %p2996_p0 }
  0xe8   : > { %p2719_p8 = por %p2718_p7, %p2717_p4 }
  0xe9   : > { %p2713_p3 = pneg %p2712_p2 }
  0xeb   : > { %p2720_p11 = pnand %p2719_p8, %p2713_p3 }
  0xed   : > { %2723 = shalt.err (!%p2720_p11)
}
  0xee   : > { %2350 = dma.hbm_to_vmem [thread:$0]  (!%p2980_p12), %s3502_s12, 16, %s543_s16, [#allocation15]  }
  0xef   : > { %p3540_p13 = scmp.ne.s32.totalorder %s3535_s21, 0 }
  0xf0   : > { %p3541_p1 = scmp.eq.s32.totalorder (!%p3540_p13), %s2944_s28, 0 }
  0xf1   : > { %574 = sbr.rel (%p3540_p13) target bundleno = 4611 (0x1203), region = 88 }
  0xf8   : > { %2769 = dma.done.wait (%p3541_p1), [#allocation3], 16   ;;  %p3542_p0 = pmov %p3541_p1 }
  0xfa   : > { %2771 = vsyncadd (%p3542_p0), [#allocation3], 4294967280  ;;  %p3543_p6 = pmov %p3542_p0 }
  0xfb   : > { %p3544_p5 = pmov %p3542_p0 }
  0xfc   : > { %2773 = dma.done.wait (%p3543_p6), [#allocation6], 272  }
  0xfd   : > { %2775 = vsyncadd (%p3544_p5), [#allocation6], 4294967024  ;;  %p3545_p9 = pmov %p3542_p0 }
  0xfe   : > { %p3546_p12 = pmov %p3542_p0 }
  0xff   : > { %2777 = dma.done.wait (%p3545_p9), [#allocation9], 32  }
 0x100   : > { %2779 = vsyncadd (%p3546_p12), [#allocation9], 4294967264  ;;  %p3547_p10 = pmov %p3542_p0 }
 0x101   : > { %p3548_p2 = pmov %p3542_p0 }
 0x102   : > { %2781 = dma.done.wait (%p3547_p10), [#allocation12], 272  }
 0x103   : > { %2783 = vsyncadd (%p3548_p2), [#allocation12], 4294967024  ;;  %p3549_p3 = pmov %p3542_p0 }
 0x104   : > { %p3550_p4 = pmov %p3542_p0 }
 0x105   : > { %2785 = dma.done.wait (%p3549_p3), [#allocation15], 32  }
 0x106   : > { %2787 = vsyncadd (%p3550_p4), [#allocation15], 4294967264  ;;  %p657_p7 = scmp.lt.s32.totalorder %s2944_s28, 1  ;;  %s3551_s23 = sld [smem:[#allocation31_spill]]  ;;  %vm663_vm0 = vcmask 261120   ;;  %v2430_v7 = vld [vmem:[%s3493_s3] sm:$0xff]   ;;  %v764_v34 = vlaneseq }
 0x107   : > { %v2819_v8 = vmov 0.0   ;;  %vm2820_vm1 = vmmov 0   ;;  %v2431_v9 = vld [vmem:[%s3493_s3 + $0x8] sm:$0xff]   ;;  %s3552_s24 = sld [smem:[#allocation32_spill]]  ;;  %v2046_v16 = vld [vmem:[#allocation2] ss:$0 sm:$0xff] }
 0x108   : > { %s658_s21 = scalar_select %p657_p7, %s2944_s28, 1  ;;  %2149 = vmatprep.subr.bf16.mxu0 %v2819_v8  ;;  %2153 = vmatprep.mubr.msk.bf16.mxu0 %vm2820_vm1, %v2819_v8  ;;  %v2047_v20 = vld [vmem:[#allocation5] ss:$0 sm:$0xff]  ;;  %vm772_vm2 = vcmask 64512   ;;  %v3252_v35 = vshrl.u32 %v764_v34, 7  ;;  %v3254_v36 = vand.u32 127, %v764_v34 }
 0x109   : > { %2150 = vmatpush3.bf16.msra.mxu0 %v2430_v7  ;;  %2157 = vmatprep.subr.bf16.mxu1 %v2819_v8  ;;  %s2821_s17 = smov 96   ;;  %s2822_s27 = smov 120   ;;  %vm837_vm4 = vcmask 1043456  }
 0x10a   : > { %s2044_s18 = sshll.u32 %s658_s21, 3  ;;  %2151 = vmatprep.subr.bf16.mxu0 %v2819_v8  ;;  %2159 = vmatprep.mubr.msk.bf16.mxu1 %vm2820_vm1, %v2819_v8  ;;  %s2823_s30 = smov 88   ;;  %vm768_vm3 = vcmp.le.s32.totalorder %v3254_v36, %v3252_v35  ;;  %vm1628_vm5 = vcmp.lt.s32.totalorder %v3254_v36, 64  ;;  %vm1654_vm6 = vcmp.ge.s32.totalorder %v3254_v36, 64 }
 0x10b   : > { %s2824_s0 = smov 56   ;;  %s2825_s21 = smov 64  }
 0x10c   : > { %s660_s16 = scalar_lea.vmem %s3551_s23, %s2044_s18  ;;  %s2826_s18 = smov 80  }
 0x10d   : > { %v3208_v0 = vld [vmem:[%s660_s16] sm:$0xff]  ;;  %2152 = vmatpush3.bf16.msra.mxu0 %v2431_v9  ;;  %s2827_s29 = smov 112   ;;  %s2828_s2 = smov 48  }
 0x10e   : > { %v664_v1 = vsel %vm663_vm0, %v3208_v0, 0.0  ;;  %2163 = vmatprep.subr.bf16.mxu0 %v2819_v8  ;;  %v2045_v14 = vld [vmem:[%s3552_s24] ss:$0 sm:$0xff]  ;;  %v882_v9 = vld [vmem:[#allocation7] sm:$0xf]  ;;  %s2829_s23 = smov 104  }
 0x10f   : > { %665 = vadd.xlane.f32.xlu0 %v664_v1  ;;  %s2830_s16 = smov 72   ;;  %s2831_s1 = smov 40  }
 0x110   : > { %s654_s22 = sand.u32 1, %s2798_s25   ;;  %s2832_s19 = smov [#allocation17]  }
 0x111   : > { %s2043_s24 = sshll.u32 %s654_s22, 3  ;;  %s2728_s20 = sshll.u32 %s2832_s19, 4  ;;  %s2729_s20 = int_to_ptr.vmem [resolvable:$false] %s2728_s20 }
 0x112   : > { %s2730_s4 = scalar_lea.vmem %s2729_s20, 256 }
 0x19c   : > { %v666_v2 = vpop.xlane.xlu0 %665 }
 0x19d   : > { %v668_v3 = vmul.f32 0.03125, %v666_v2 }
 0x19f   : > { %v669_v4 = vsub.f32 %v3208_v0, %v668_v3 }
 0x1a1   : > { %v670_v5 = vmul.f32 %v669_v4, %v669_v4 }
 0x1a3   : > { %v671_v6 = vsel %vm663_vm0, %v670_v5, 0.0 }
 0x1a4   : > { %672 = vadd.xlane.f32.xlu0 %v671_v6 }
 0x231   : > { %v673_v10 = vpop.xlane.xlu0 %672 }
 0x232   : > { %v674_v11 = vmul.f32 0.03125, %v673_v10  ;;  %v1047_v10 = vsel %vm837_vm4, %v882_v9, 0 }
 0x234   : > { %v675_v12 = vadd.f32 1e-05, %v674_v11  ;;  %v996_v11 = vld [vmem:[#allocation7 + $0x4] sm:$0xf] }
 0x236   : > { %2452 = vrsqrt.f32 %v675_v12  ;;  %v1001_v12 = vsel %vm837_vm4, %v996_v11, 0 }
 0x240   : > { %v2453_v13 = vpop.eup %2452 }
 0x241   : > { %v677_v15 = vmul.f32 %v2453_v13, %v669_v4 }
 0x243   : > { %v685_v17 = vmul.f32 %v2045_v14, %v677_v15 }
 0x245   : > { %v693_v18 = vadd.f32 %v2046_v16, %v685_v17 }
 0x247   : > { %v694_v19 = vpack.c.bf16 %v693_v18, %v693_v18 }
 0x249   : > { %2154 = vmatmul.mubr.msk.bf16.vlgmr.msra.gmra.mrb[0].mxu0 %vm663_vm0, %v694_v19 }
 0x24a   : > { %2165 = vmatprep.mubr.msk.bf16.mxu0 %vm2820_vm1, %v2819_v8 }
 0x31c   : > { %v755_v21 = vpop.f32.mrb[0].mxu0 }
 0x31d   : > { %v756_v22 = vadd.f32 %v2047_v20, %v755_v21  ;;  %v2155_v23 = vpop.f32.mrb[1].mxu0 }
 0x31e   : > { %v758_v24 = vpop.f32.mrb[2].mxu0 }
 0x31f   : > { %v761_v25 = vmul.f32 0.35355338, %v756_v22  ;;  %v3234_v26 = vpack.c.bf16 %v756_v22, %v756_v22  ;;  %v2156_v27 = vpop.f32.mrb[3].mxu0 }
 0x321   : > { %v3236_v28 = vpack.c.bf16 %v761_v25, %v761_v25  ;;  %770 = vrot.lane.b32.xlu1 %v3234_v26, %s2821_s17 }
 0x323   : > { %884 = vrot.lane.b32.xlu0 %v3236_v28, %s2822_s27 }
 0x325   : > { %886 = vrot.lane.b32.xlu1 %v3234_v26, %s2823_s30  ;;  %s3553_s30 = sld [smem:[#allocation35_spill]] }
 0x393   : > { %v771_v29 = vpop.permute.xlu1 %770 }
 0x394   : > { %v777_v30 = vsel %vm772_vm2, %v771_v29, 0 }
 0x395   : > { %2158 = vmatpush3.bf16.xpose.msra.mxu1 %v777_v30  ;;  %v885_v33 = vpop.permute.xlu0 %884 }
 0x396   : > { %2169 = vmatprep.subr.bf16.mxu1 %v2819_v8 }
 0x397   : > { %v887_v31 = vpop.permute.xlu1 %886 }
 0x398   : > { %v892_v32 = vsel %vm772_vm2, %v887_v31, 0 }
 0x39c   : > { %2160 = vmatmul.mubr.msk.bf16.vlgmr.msra.gmra.mrb[0].mxu1 %vm772_vm2, %v3236_v28 }
 0x39d   : > { %2170 = vmatpush3.bf16.xpose.msra.mxu1 %v892_v32  ;;  %2171 = vmatprep.mubr.msk.bf16.mxu1 %vm2820_vm1, %v2819_v8 }
 0x39e   : > { %2181 = vmatprep.subr.bf16.mxu1 %v2819_v8 }
 0x3a4   : > { %2172 = vmatmul.mubr.msk.bf16.vlgmr.msra.gmra.mrb[4].mxu1 %vm772_vm2, %v885_v33 }
 0x3a5   : > { %2183 = vmatprep.mubr.msk.bf16.mxu1 %vm2820_vm1, %v2819_v8  ;;  %2182 = vmatpush3.bf16.msra.mxu1 %v1001_v12 }
 0x3a6   : > { %2193 = vmatprep.subr.bf16.mxu1 %v2819_v8 }
 0x46f   : > { %v813_v37 = vpop.f32.mrb[0].mxu1 }
 0x470   : > { %v819_v38 = vsel %vm768_vm3, %v813_v37, -1e+30  ;;  %v2161_v39 = vpop.f32.mrb[1].mxu1 }
 0x471   : > { %v816_v40 = vpop.f32.mrb[2].mxu1  ;;  %v820_v41 = vsel %vm772_vm2, %v819_v38, -inf }
 0x472   : > { %821 = vmax.xlane.f32.xlu1 %v820_v41  ;;  %v2162_v42 = vpop.f32.mrb[3].mxu1 }
 0x477   : > { %v928_v43 = vpop.f32.mrb[4].mxu1 }
 0x478   : > { %v934_v44 = vsel %vm768_vm3, %v928_v43, -1e+30  ;;  %v2173_v45 = vpop.f32.mrb[5].mxu1 }
 0x479   : > { %v931_v46 = vpop.f32.mrb[6].mxu1  ;;  %v935_v47 = vsel %vm772_vm2, %v934_v44, -inf }
 0x47a   : > { %936 = vmax.xlane.f32.xlu0 %v935_v47  ;;  %v2174_v48 = vpop.f32.mrb[7].mxu1 }
 0x490   : > { %947 = vrot.lane.b32.xlu0 %v3234_v26, %s2824_s0  ;;  %s3554_s0 = sld [smem:[#allocation29_spill]] }
 0x496   : > { %p3556_p11 = scmp.ne.s32.totalorder %s3554_s0, 0 }
 0x4ff   : > { %v822_v49 = vpop.xlane.xlu1 %821 }
 0x500   : > { %v823_v50 = vsub.f32 %v819_v38, %v822_v49 }
 0x502   : > { %v824_v51 = vmul.f32 1.442695, %v823_v50 }
 0x504   : > { %2454 = vpow2.f32 %v824_v51 }
 0x507   : > { %v937_v52 = vpop.xlane.xlu0 %936 }
 0x508   : > { %v938_v53 = vsub.f32 %v934_v44, %v937_v52 }
 0x50a   : > { %v939_v54 = vmul.f32 1.442695, %v938_v53 }
 0x50b   : > { %v948_v2 = vpop.permute.xlu0 %947 }
 0x50c   : > { %2456 = vpow2.f32 %v939_v54  ;;  %v953_v4 = vsel %vm837_vm4, %v948_v2, 0 }
 0x50e   : > { %v2455_v55 = vpop.eup %2454 }
 0x50f   : > { %v826_v56 = vsel %vm772_vm2, %v2455_v55, 0.0 }
 0x510   : > { %827 = vadd.xlane.f32.xlu1 %v826_v56 }
 0x516   : > { %v2457_v57 = vpop.eup %2456 }
 0x517   : > { %v941_v58 = vsel %vm772_vm2, %v2457_v57, 0.0 }
 0x518   : > { %942 = vadd.xlane.f32.xlu1 %v941_v58  ;;  %v1201_v58 = vld [vmem:[#allocation7 + $0x8] sm:$0xf] }
 0x529   : > { %832 = vrot.lane.b32.xlu1 %v3234_v26, %s2825_s21  ;;  %s2095_s21 = sshll.u32 %s2944_s28, 7  ;;  %s1861_s28 = scalar_lea.sflag [#allocation4], %s654_s22 }
 0x52d   : > { %1091 = vrot.lane.b32.xlu1 %v3234_v26, %s2826_s18  ;;  %s656_s18 = scalar_lea.vmem [#allocation17], %s2043_s24 }
 0x531   : > { %1089 = vrot.lane.b32.xlu1 %v3236_v28, %s2827_s29  ;;  %s1874_s29 = sshll.u32 %s656_s18, 4  ;;  %s3449_s29 = int_to_ptr.vmem [resolvable:$true] %s1874_s29 }
 0x532   : > { %s2724_s26 = scalar_lea.vmem %s3449_s29, 128  ;;  %p2731_p0 = scmp.lt.s32.totalorder %s3449_s29, %s2729_s20 }
 0x533   : > { %p2725_p8 = scmp.ne.s32.totalorder %s3449_s29, %s2724_s26  ;;  %p2732_p6 = scmp.lt.s32.totalorder %s2730_s4, %s2724_s26 }
 0x535   : > { %p2726_p13 = pnand %p2725_p8, %p3556_p11  ;;  %p2733_p5 = por %p2732_p6, %p2731_p0 }
 0x537   : > { %p2727_p1 = pneg %p2726_p13 }
 0x539   : > { %p2734_p9 = pnand %p2733_p5, %p2727_p1 }
 0x59d   : > { %v828_v59 = vpop.xlane.xlu1 %827 }
 0x59e   : > { %2458 = vrcp.f32 %v828_v59  ;;  %v1206_v59 = vsel %vm837_vm4, %v1201_v58, 0  ;;  %v2064_v58 = vld [vmem:[#allocation10] ss:$0 sm:$0xff] }
 0x5a5   : > { %v943_v60 = vpop.xlane.xlu1 %942 }
 0x5a6   : > { %2460 = vrcp.f32 %v943_v60 }
 0x5a8   : > { %v2459_v61 = vpop.eup %2458 }
 0x5a9   : > { %v830_v62 = vmul.f32 %v2459_v61, %v2455_v55  ;;  %v833_v63 = vpop.permute.xlu1 %832 }
 0x5aa   : > { %v839_v1 = vsel %vm837_vm4, %v833_v63, 0 }
 0x5ab   : > { %2164 = vmatpush3.bf16.msra.mxu0 %v839_v1  ;;  %v831_v3 = vpack.c.bf16 %v830_v62, %v830_v62 }
 0x5ac   : > { %2175 = vmatprep.subr.bf16.mxu0 %v2819_v8 }
 0x5ad   : > { %v1092_v18 = vpop.permute.xlu1 %1091 }
 0x5ae   : > { %2166 = vmatmul.mubr.msk.bf16.vlgmr.msra.gmra.mrb[4].mxu0 %vm772_vm2, %v831_v3  ;;  %v1097_v23 = vsel %vm772_vm2, %v1092_v18, 0 }
 0x5af   : > { %2176 = vmatpush3.bf16.msra.mxu0 %v953_v4  ;;  %2177 = vmatprep.mubr.msk.bf16.mxu0 %vm2820_vm1, %v2819_v8 }
 0x5b0   : > { %v2461_v5 = vpop.eup %2460  ;;  %2187 = vmatprep.subr.bf16.mxu0 %v2819_v8 }
 0x5b1   : > { %v945_v6 = vmul.f32 %v2461_v5, %v2457_v57  ;;  %v1090_v25 = vpop.permute.xlu1 %1089 }
 0x5b3   : > { %v946_v7 = vpack.c.bf16 %v945_v6, %v945_v6 }
 0x5b6   : > { %2178 = vmatmul.mubr.msk.bf16.vlgmr.msra.gmra.mrb[8].mxu0 %vm772_vm2, %v946_v7 }
 0x5b7   : > { %2189 = vmatprep.mubr.msk.bf16.mxu0 %vm2820_vm1, %v2819_v8  ;;  %2188 = vmatpush3.bf16.msra.mxu0 %v1047_v10 }
 0x5b8   : > { %2199 = vmatprep.subr.bf16.mxu0 %v2819_v8 }
 0x681   : > { %v875_v13 = vpop.f32.mrb[4].mxu0 }
 0x682   : > { %v881_v14 = vpack.c.bf16 %v875_v13, %v875_v13  ;;  %v2167_v15 = vpop.f32.mrb[5].mxu0 }
 0x683   : > { %v878_v16 = vpop.f32.mrb[6].mxu0 }
 0x684   : > { %v2168_v17 = vpop.f32.mrb[7].mxu0  ;;  %2190 = vmatmul.mubr.msk.bf16.vlgmr.msra.gmra.mrb[12].mxu0 %vm772_vm2, %v881_v14 }
 0x685   : > { %2201 = vmatprep.mubr.msk.bf16.mxu0 %vm2820_vm1, %v2819_v8 }
 0x689   : > { %v989_v19 = vpop.f32.mrb[8].mxu0 }
 0x68a   : > { %v995_v20 = vpack.c.bf16 %v989_v19, %v989_v19  ;;  %v2179_v21 = vpop.f32.mrb[9].mxu0 }
 0x68b   : > { %v992_v22 = vpop.f32.mrb[10].mxu0 }
 0x68c   : > { %v2180_v24 = vpop.f32.mrb[11].mxu0  ;;  %2184 = vmatmul.mubr.msk.bf16.vlgmr.msra.gmra.mrb[8].mxu1 %vm772_vm2, %v995_v20 }
 0x68d   : > { %2194 = vmatpush3.bf16.xpose.msra.mxu1 %v1097_v23  ;;  %2195 = vmatprep.mubr.msk.bf16.mxu1 %vm2820_vm1, %v2819_v8 }
 0x68e   : > { %2205 = vmatprep.subr.bf16.mxu1 %v2819_v8 }
 0x694   : > { %2196 = vmatmul.mubr.msk.bf16.vlgmr.msra.gmra.mrb[12].mxu1 %vm772_vm2, %v1090_v25 }
 0x695   : > { %2207 = vmatprep.mubr.msk.bf16.mxu1 %vm2820_vm1, %v2819_v8  ;;  %2206 = vmatpush3.bf16.msra.mxu1 %v1206_v59 }
 0x696   : > { %2217 = vmatprep.subr.bf16.mxu1 %v2819_v8 }
 0x757   : > { %v1083_v27 = vpop.f32.mrb[12].mxu0 }
 0x758   : > { %v2191_v29 = vpop.f32.mrb[13].mxu0 }
 0x759   : > { %v1086_v30 = vpop.f32.mrb[14].mxu0 }
 0x75a   : > { %v2192_v31 = vpop.f32.mrb[15].mxu0 }
 0x75f   : > { %v1037_v32 = vpop.f32.mrb[8].mxu1 }
 0x760   : > { %v3297_v33 = vadd.f32 %v1083_v27, %v1037_v32  ;;  %v2185_v34 = vpop.f32.mrb[9].mxu1 }
 0x761   : > { %v1040_v37 = vpop.f32.mrb[10].mxu1 }
 0x762   : > { %v2186_v38 = vpop.f32.mrb[11].mxu1 }
 0x767   : > { %v1133_v39 = vpop.f32.mrb[12].mxu1 }
 0x768   : > { %v1139_v40 = vsel %vm768_vm3, %v1133_v39, -1e+30  ;;  %v2197_v41 = vpop.f32.mrb[13].mxu1 }
 0x769   : > { %v1136_v42 = vpop.f32.mrb[14].mxu1  ;;  %v1140_v43 = vsel %vm772_vm2, %v1139_v40, -inf }
 0x76a   : > { %1141 = vmax.xlane.f32.xlu1 %v1140_v43  ;;  %v2198_v44 = vpop.f32.mrb[15].mxu1 }
 0x77b   : > { %1152 = vrot.lane.b32.xlu1 %v3234_v26, %s2828_s2 }
 0x77f   : > { %1249 = vrot.lane.b32.xlu1 %v3236_v28, %s2829_s23 }
 0x7f7   : > { %v1142_v45 = vpop.xlane.xlu1 %1141 }
 0x7f8   : > { %v1143_v46 = vsub.f32 %v1139_v40, %v1142_v45 }
 0x7fa   : > { %v1144_v47 = vmul.f32 1.442695, %v1143_v46 }
 0x7fb   : > { %v1153_v48 = vpop.permute.xlu1 %1152 }
 0x7fc   : > { %2462 = vpow2.f32 %v1144_v47  ;;  %v1158_v49 = vsel %vm837_vm4, %v1153_v48, 0  ;;  %v2432_v48 = vld [vmem:[#allocation13] sm:$0xff]  }
 0x7fd   : > { %2200 = vmatpush3.bf16.msra.mxu0 %v1158_v49  ;;  %v2433_v49 = vld [vmem:[#allocation13 + $0x8] sm:$0xff]  }
 0x7fe   : > { %2211 = vmatprep.subr.bf16.mxu0 %v2819_v8 }
 0x7ff   : > { %v1250_v57 = vpop.permute.xlu1 %1249 }
 0x806   : > { %v2463_v50 = vpop.eup %2462 }
 0x807   : > { %v1146_v51 = vsel %vm772_vm2, %v2463_v50, 0.0 }
 0x808   : > { %1147 = vadd.xlane.f32.xlu0 %v1146_v51  ;;  %v2438_v51 = vld [vmem:[%s3501_s11 + $0x10] sm:$0xff]  }
 0x81e   : > { %1251 = vrot.lane.b32.xlu0 %v3234_v26, %s2830_s16  ;;  %s3555_s16 = sld [smem:[#allocation36_spill]] }
 0x895   : > { %v1148_v52 = vpop.xlane.xlu0 %1147 }
 0x896   : > { %2464 = vrcp.f32 %v1148_v52  ;;  %v2439_v52 = vld [vmem:[%s3501_s11 + $0x18] sm:$0xff]  }
 0x899   : > { %v1252_v54 = vpop.permute.xlu0 %1251 }
 0x89a   : > { %v1257_v56 = vsel %vm772_vm2, %v1252_v54, 0 }
 0x8a0   : > { %v2465_v28 = vpop.eup %2464 }
 0x8a1   : > { %v1150_v53 = vmul.f32 %v2465_v28, %v2463_v50  ;;  %v2437_v50 = vld [vmem:[%s3501_s11 + $0x8] sm:$0xff]   ;;  %v2440_v28 = vld [vmem:[%s3501_s11 + $0x20] sm:$0xff]  }
 0x8a3   : > { %v1151_v55 = vpack.c.bf16 %v1150_v53, %v1150_v53  ;;  %v2441_v53 = vld [vmem:[%s3501_s11 + $0x28] sm:$0xff]  }
 0x8a5   : > { %2202 = vmatmul.mubr.msk.bf16.vlgmr.msra.gmra.mrb[16].mxu0 %vm772_vm2, %v1151_v55 }
 0x8a6   : > { %2212 = vmatpush3.bf16.xpose.msra.mxu0 %v1257_v56  ;;  %2213 = vmatprep.mubr.msk.bf16.mxu0 %vm2820_vm1, %v2819_v8 }
 0x8a7   : > { %2223 = vmatprep.subr.bf16.mxu0 %v2819_v8 }
 0x8ad   : > { %2214 = vmatmul.mubr.msk.bf16.vlgmr.msra.gmra.mrb[20].mxu0 %vm772_vm2, %v1250_v57 }
 0x8ae   : > { %2225 = vmatprep.mubr.msk.bf16.mxu0 %vm2820_vm1, %v2819_v8 }
 0x978   : > { %v1194_v60 = vpop.f32.mrb[16].mxu0 }
 0x979   : > { %v1200_v61 = vpack.c.bf16 %v1194_v60, %v1194_v60  ;;  %v2203_v62 = vpop.f32.mrb[17].mxu0  ;;  %v2065_v60 = vld [vmem:[#allocation11] ss:$0 sm:$0xff] }
 0x97a   : > { %v1197_v63 = vpop.f32.mrb[18].mxu0 }
 0x97b   : > { %v2204_v1 = vpop.f32.mrb[19].mxu0  ;;  %2208 = vmatmul.mubr.msk.bf16.vlgmr.msra.gmra.mrb[16].mxu1 %vm772_vm2, %v1200_v61  ;;  %v2434_v63 = vld [vmem:[%s3503_s13] sm:$0xff]  }
 0x97c   : > { %2219 = vmatprep.mubr.msk.bf16.mxu1 %vm2820_vm1, %v2819_v8 }
 0x980   : > { %v1293_v2 = vpop.f32.mrb[20].mxu0 }
 0x981   : > { %v1299_v3 = vsel %vm768_vm3, %v1293_v2, -1e+30  ;;  %v2215_v4 = vpop.f32.mrb[21].mxu0  ;;  %v2435_v2 = vld [vmem:[%s3503_s13 + $0x8] sm:$0xff]  }
 0x982   : > { %v1296_v5 = vpop.f32.mrb[22].mxu0  ;;  %v1300_v6 = vsel %vm772_vm2, %v1299_v3, -inf  ;;  %v2443_v4 = vld [vmem:[%s3501_s11 + $0x38] sm:$0xff]  }
 0x983   : > { %1301 = vmax.xlane.f32.xlu1 %v1300_v6  ;;  %v2216_v7 = vpop.f32.mrb[23].mxu0  ;;  %v2066_v5 = vld [vmem:[#allocation14] ss:$0 sm:$0xff] }
 0xa10   : > { %v1302_v9 = vpop.xlane.xlu1 %1301 }
 0xa11   : > { %v1303_v10 = vsub.f32 %v1299_v3, %v1302_v9  ;;  %v2442_v3 = vld [vmem:[%s3501_s11 + $0x30] sm:$0xff]  }
 0xa13   : > { %v1304_v11 = vmul.f32 1.442695, %v1303_v10 }
 0xa15   : > { %2466 = vpow2.f32 %v1304_v11 }
 0xa1f   : > { %v2467_v12 = vpop.eup %2466 }
 0xa20   : > { %v1306_v13 = vsel %vm772_vm2, %v2467_v12, 0.0 }
 0xa21   : > { %1307 = vadd.xlane.f32.xlu0 %v1306_v13 }
 0xa37   : > { %1312 = vrot.lane.b32.xlu0 %v3234_v26, %s2831_s1  ;;  %v1361_v26 = vld [vmem:[#allocation7 + $0xc] sm:$0xf]  ;;  %s3447_s1 = scalar_lea.hbm %s3555_s16, %s2095_s21 }
 0xa38   : > { %v1366_v24 = vsel %vm837_vm4, %v1361_v26, 0 }
 0xa39   : > { %2224 = vmatpush3.bf16.msra.mxu0 %v1366_v24 }
 0xa3a   : > { %2237 = vmatprep.subr.bf16.mxu0 %v2819_v8 }
 0xa4e   : > { %v1242_v14 = vpop.f32.mrb[16].mxu1 }
 0xa4f   : > { %v1248_v35 = vadd.f32 %v1242_v14, %v3297_v33  ;;  %v2209_v15 = vpop.f32.mrb[17].mxu1  ;;  %v2063_v33 = vld [vmem:[#allocation8] ss:$0 sm:$0xff] }
 0xa50   : > { %v1245_v16 = vpop.f32.mrb[18].mxu1 }
 0xa51   : > { %v2210_v17 = vpop.f32.mrb[19].mxu1 }
 0xa52   : > { %v2070_v17 = vld [vmem:[#allocation16] ss:$0 sm:$0xff] }
 0xaae   : > { %v1308_v18 = vpop.xlane.xlu0 %1307 }
 0xaaf   : > { %2468 = vrcp.f32 %v1308_v18 }
 0xab2   : > { %v1313_v19 = vpop.permute.xlu0 %1312 }
 0xab3   : > { %v1318_v20 = vsel %vm837_vm4, %v1313_v19, 0 }
 0xab4   : > { %2218 = vmatpush3.bf16.msra.mxu1 %v1318_v20 }
 0xab5   : > { %2229 = vmatprep.subr.bf16.mxu1 %v2819_v8 }
 0xab9   : > { %v2469_v21 = vpop.eup %2468 }
 0xaba   : > { %v1310_v22 = vmul.f32 %v2469_v21, %v2467_v12 }
 0xabc   : > { %v1311_v23 = vpack.c.bf16 %v1310_v22, %v1310_v22 }
 0xabe   : > { %2220 = vmatmul.mubr.msk.bf16.vlgmr.msra.gmra.mrb[20].mxu1 %vm772_vm2, %v1311_v23 }
 0xabf   : > { %2233 = vmatprep.mubr.msk.bf16.mxu1 %vm2820_vm1, %v2819_v8  ;;  %2230 = vmatpush3.bf16.msra.mxu1 %v2432_v48 }
 0xac0   : > { %2231 = vmatprep.subr.bf16.mxu1 %v2819_v8 }
 0xac3   : > { %2232 = vmatpush3.bf16.msra.mxu1 %v2433_v49  ;;  %v2448_v49 = vld [vmem:[%s3505_s15 + $0x20] sm:$0xff]  }
 0xac4   : > { %2257 = vmatprep.subr.bf16.mxu1 %v2819_v8 }
 0xb91   : > { %v1354_v25 = vpop.f32.mrb[20].mxu1 }
 0xb92   : > { %v1360_v27 = vpack.c.bf16 %v1354_v25, %v1354_v25  ;;  %v2221_v29 = vpop.f32.mrb[21].mxu1 }
 0xb93   : > { %v1357_v30 = vpop.f32.mrb[22].mxu1 }
 0xb94   : > { %v2222_v31 = vpop.f32.mrb[23].mxu1  ;;  %2226 = vmatmul.mubr.msk.bf16.vlgmr.msra.gmra.mrb[24].mxu0 %vm772_vm2, %v1360_v27 }
 0xb95   : > { %2253 = vmatprep.mubr.msk.bf16.mxu0 %vm2820_vm1, %v2819_v8 }
 0xc67   : > { %v1402_v32 = vpop.f32.mrb[24].mxu0 }
 0xc68   : > { %v1408_v34 = vadd.f32 %v1402_v32, %v1248_v35  ;;  %v2227_v37 = vpop.f32.mrb[25].mxu0 }
 0xc69   : > { %v1405_v38 = vpop.f32.mrb[26].mxu0  ;;  %v2445_v37 = vld [vmem:[%s3505_s15 + $0x8] sm:$0xff]  }
 0xc6a   : > { %v1416_v39 = vadd.f32 %v2063_v33, %v1408_v34  ;;  %v2228_v40 = vpop.f32.mrb[27].mxu0  ;;  %v2444_v34 = vld [vmem:[%s3505_s15] sm:$0xff]   ;;  %v2446_v38 = vld [vmem:[%s3505_s15 + $0x10] sm:$0xff]  }
 0xc6c   : > { %v3340_v41 = vadd.f32 %v1416_v39, %v3208_v0  ;;  %v2436_v0 = vld [vmem:[%s3501_s11] sm:$0xff]   ;;  %v2447_v39 = vld [vmem:[%s3505_s15 + $0x18] sm:$0xff]  }
 0xc6d   : > { %2238 = vmatpush3.bf16.msra.mxu0 %v2436_v0  ;;  %v2449_v0 = vld [vmem:[%s3505_s15 + $0x28] sm:$0xff]  }
 0xc6e   : > { %v1418_v42 = vsel %vm663_vm0, %v3340_v41, 0.0  ;;  %2239 = vmatprep.subr.bf16.mxu0 %v2819_v8 }
 0xc6f   : > { %1419 = vadd.xlane.f32.xlu1 %v1418_v42 }
 0xc71   : > { %2240 = vmatpush3.bf16.msra.mxu0 %v2437_v50  ;;  %v2450_v50 = vld [vmem:[%s3505_s15 + $0x30] sm:$0xff]  }
 0xc72   : > { %2241 = vmatprep.subr.bf16.mxu0 %v2819_v8 }
 0xc75   : > { %2242 = vmatpush3.bf16.msra.mxu0 %v2438_v51  ;;  %v2451_v51 = vld [vmem:[%s3505_s15 + $0x38] sm:$0xff]  }
 0xc76   : > { %2243 = vmatprep.subr.bf16.mxu0 %v2819_v8 }
 0xc79   : > { %2244 = vmatpush3.bf16.msra.mxu0 %v2439_v52 }
 0xc7a   : > { %2245 = vmatprep.subr.bf16.mxu0 %v2819_v8 }
 0xc7d   : > { %2246 = vmatpush3.bf16.msra.mxu0 %v2440_v28 }
 0xc7e   : > { %2247 = vmatprep.subr.bf16.mxu0 %v2819_v8 }
 0xc81   : > { %2248 = vmatpush3.bf16.msra.mxu0 %v2441_v53 }
 0xc82   : > { %2249 = vmatprep.subr.bf16.mxu0 %v2819_v8 }
 0xc85   : > { %2250 = vmatpush3.bf16.msra.mxu0 %v2442_v3 }
 0xc86   : > { %2251 = vmatprep.subr.bf16.mxu0 %v2819_v8 }
 0xc89   : > { %2252 = vmatpush3.bf16.msra.mxu0 %v2443_v4 }
 0xcfc   : > { %v1420_v43 = vpop.xlane.xlu1 %1419 }
 0xcfd   : > { %v1421_v44 = vmul.f32 0.03125, %v1420_v43 }
 0xcff   : > { %v1422_v45 = vsub.f32 %v3340_v41, %v1421_v44 }
 0xd01   : > { %v1423_v46 = vmul.f32 %v1422_v45, %v1422_v45 }
 0xd03   : > { %v1424_v47 = vsel %vm663_vm0, %v1423_v46, 0.0 }
 0xd04   : > { %1425 = vadd.xlane.f32.xlu1 %v1424_v47 }
 0xd91   : > { %v1426_v54 = vpop.xlane.xlu1 %1425 }
 0xd92   : > { %v1427_v55 = vmul.f32 0.03125, %v1426_v54 }
 0xd94   : > { %v1428_v56 = vadd.f32 1e-05, %v1427_v55 }
 0xd96   : > { %2470 = vrsqrt.f32 %v1428_v56 }
 0xda0   : > { %v2471_v57 = vpop.eup %2470 }
 0xda1   : > { %v1430_v59 = vmul.f32 %v2471_v57, %v1422_v45  ;;  %v2081_v57 = vld [vmem:[%s3504_s14] ss:$0 sm:$0xff] }
 0xda3   : > { %v1438_v61 = vmul.f32 %v2064_v58, %v1430_v59 }
 0xda5   : > { %v1446_v62 = vadd.f32 %v2065_v60, %v1438_v61 }
 0xda7   : > { %v1447_v1 = vpack.c.bf16 %v1446_v62, %v1446_v62 }
 0xda9   : > { %2234 = vmatmul.mubr.msk.bf16.vlgmr.msra.gmra.mrb[24].mxu1 %vm663_vm0, %v1447_v1 }
 0xdaa   : > { %2258 = vmatpush3.bf16.msra.mxu1 %v2434_v63  ;;  %2261 = vmatprep.mubr.msk.bf16.mxu1 %vm2820_vm1, %v2819_v8 }
 0xdab   : > { %2259 = vmatprep.subr.bf16.mxu1 %v2819_v8 }
 0xdae   : > { %2260 = vmatpush3.bf16.msra.mxu1 %v2435_v2 }
 0xdaf   : > { %2265 = vmatprep.subr.bf16.mxu1 %v2819_v8 }
 0xdb1   : > { %2262 = vmatmul.mubr.msk.bf16.vlgmr.msra.gmra.mrb[28].mxu1 %vm663_vm0, %v1447_v1 }
 0xdb2   : > { %2281 = vmatprep.mubr.msk.bf16.mxu1 %vm2820_vm1, %v2819_v8  ;;  %2266 = vmatpush3.bf16.msra.mxu1 %v2444_v34 }
 0xdb3   : > { %2267 = vmatprep.subr.bf16.mxu1 %v2819_v8 }
 0xdb6   : > { %2268 = vmatpush3.bf16.msra.mxu1 %v2445_v37 }
 0xdb7   : > { %2269 = vmatprep.subr.bf16.mxu1 %v2819_v8 }
 0xdba   : > { %2270 = vmatpush3.bf16.msra.mxu1 %v2446_v38 }
 0xdbb   : > { %2271 = vmatprep.subr.bf16.mxu1 %v2819_v8 }
 0xdbe   : > { %2272 = vmatpush3.bf16.msra.mxu1 %v2447_v39 }
 0xdbf   : > { %2273 = vmatprep.subr.bf16.mxu1 %v2819_v8 }
 0xdc2   : > { %2274 = vmatpush3.bf16.msra.mxu1 %v2448_v49 }
 0xdc3   : > { %2275 = vmatprep.subr.bf16.mxu1 %v2819_v8 }
 0xdc6   : > { %2276 = vmatpush3.bf16.msra.mxu1 %v2449_v0 }
 0xdc7   : > { %2277 = vmatprep.subr.bf16.mxu1 %v2819_v8 }
 0xdca   : > { %2278 = vmatpush3.bf16.msra.mxu1 %v2450_v50 }
 0xdcb   : > { %2279 = vmatprep.subr.bf16.mxu1 %v2819_v8 }
 0xdce   : > { %2280 = vmatpush3.bf16.msra.mxu1 %v2451_v51 }
 0xe7c   : > { %v1508_v6 = vpop.f32.mrb[24].mxu1 }
 0xe7d   : > { %v1509_v7 = vadd.f32 %v2066_v5, %v1508_v6  ;;  %v2235_v9 = vpop.f32.mrb[25].mxu1  ;;  %v2085_v6 = vld [vmem:[%s3553_s30] ss:$0 sm:$0xff] }
 0xe7e   : > { %v1511_v10 = vpop.f32.mrb[26].mxu1 }
 0xe7f   : > { %v1514_v11 = vmax.f32 %v1509_v7, 0.0  ;;  %v2236_v12 = vpop.f32.mrb[27].mxu1 }
 0xe81   : > { %v1515_v13 = vpack.c.bf16 %v1514_v11, %v1514_v11 }
 0xe83   : > { %2254 = vmatmul.mubr.bf16.vlgmr.msra.gmra.mrb[28].mxu0 %v1515_v13 }
 0xe84   : > { %v3393_v14 = vpop.f32.mrb[28].mxu1 }
 0xe85   : > { %v2263_v35 = vpop.f32.mrb[29].mxu1  ;;  %v1739_v61 = vadd.f32 %v2081_v57, %v3393_v14 }
 0xe86   : > { %v1741_v15 = vpop.f32.mrb[30].mxu1 }
 0xe87   : > { %v2264_v16 = vpop.f32.mrb[31].mxu1  ;;  %v1744_v2 = vmax.f32 %v1739_v61, 0.0 }
 0xf56   : > { %v1621_v18 = vpop.f32.mrb[28].mxu0 }
 0xf57   : > { %v1622_v19 = vadd.f32 %v2070_v17, %v1621_v18  ;;  %v2255_v20 = vpop.f32.mrb[29].mxu0 }
 0xf58   : > { %v1624_v21 = vpop.f32.mrb[30].mxu0 }
 0xf59   : > { %v2256_v22 = vpop.f32.mrb[31].mxu0  ;;  %v1630_v23 = vsel %vm1628_vm5, %v1622_v19, -1e+30  ;;  %v1657_v26 = vsel %vm1654_vm6, %v1622_v19, -1e+30 }
 0xf5a   : > { %1631 = vmax.xlane.f32.xlu1 %v1630_v23 }
 0xf5e   : > { %1658 = vmax.xlane.f32.xlu1 %v1657_v26 }
 0xfe7   : > { %v1632_v24 = vpop.xlane.xlu1 %1631 }
 0xfe8   : > { %vm1633_vm7 = vcmp.eq.f32.partialorder %v1622_v19, %v1632_v24 }
 0xfe9   : > { %vm1634_vm8 = vmand %vm1628_vm5, %vm1633_vm7 }
 0xfea   : > { %v1635_v25 = vsel %vm1634_vm8, %v3254_v36, 128 }
 0xfeb   : > { %v1659_v27 = vpop.xlane.xlu1 %1658  ;;  %v1637_v29 = vshra.s32 %v1635_v25, 16  ;;  %v1636_v40 = vand.u32 65535, %v1635_v25 }
 0xfec   : > { %vm1660_vm9 = vcmp.eq.f32.partialorder %v1622_v19, %v1659_v27 }
 0xfed   : > { %vm1661_vm10 = vmand %vm1654_vm6, %vm1660_vm9  ;;  %v1639_v30 = vcvt.s32.f32 %v1637_v29  ;;  %v1638_v43 = vcvt.s32.f32 %v1636_v40 }
 0xfee   : > { %v1662_v31 = vsel %vm1661_vm10, %v3254_v36, 128 }
 0xfef   : > { %1640 = vmin.xlane.f32.xlu1 %v1639_v30  ;;  %v1664_v32 = vshra.s32 %v1662_v31, 16  ;;  %v1663_v44 = vand.u32 65535, %v1662_v31 }
 0xff1   : > { %v1666_v33 = vcvt.s32.f32 %v1664_v32  ;;  %v1665_v47 = vcvt.s32.f32 %v1663_v44 }
 0xff3   : > { %1667 = vmin.xlane.f32.xlu0 %v1666_v33 }
0x107c   : > { %v1641_v42 = vpop.xlane.xlu1 %1640 }
0x107d   : > { %vm1642_vm11 = vcmp.eq.f32.partialorder %v1639_v30, %v1641_v42  ;;  %v1647_v52 = vcvt.f32.s32 %v1641_v42 }
0x107e   : > { %v1643_v45 = vsel %vm1642_vm11, %v1638_v43, inf }
0x107f   : > { %1644 = vmin.xlane.f32.xlu1 %v1643_v45  ;;  %v1648_v53 = vshll.u32 %v1647_v52, 16 }
0x1080   : > { %v1668_v46 = vpop.xlane.xlu0 %1667 }
0x1081   : > { %vm1669_vm12 = vcmp.eq.f32.partialorder %v1666_v33, %v1668_v46  ;;  %v1674_v54 = vcvt.f32.s32 %v1668_v46 }
0x1082   : > { %v1670_v48 = vsel %vm1669_vm12, %v1665_v47, inf }
0x1083   : > { %1671 = vmin.xlane.f32.xlu1 %v1670_v48  ;;  %v1675_v59 = vshll.u32 %v1674_v54, 16 }
0x110c   : > { %v1645_v28 = vpop.xlane.xlu1 %1644 }
0x110d   : > { %v1646_v55 = vcvt.f32.s32 %v1645_v28 }
0x110f   : > { %v1649_v56 = vadd.s32 %v1648_v53, %v1646_v55 }
0x1110   : > { %v1672_v58 = vpop.xlane.xlu1 %1671 }
0x1111   : > { %v1673_v60 = vcvt.f32.s32 %v1672_v58  ;;  %vm1650_vm13 = vcmp.eq.s32.totalorder %v3254_v36, %v1649_v56 }
0x1112   : > { %v2079_v63 = vsel %vm1650_vm13, 1.0, %v2819_v8 }
0x1113   : > { %v1676_v62 = vadd.s32 %v1675_v59, %v1673_v60 }
0x1115   : > { %vm1677_vm14 = vcmp.eq.s32.totalorder %v3254_v36, %v1676_v62 }
0x1116   : > { %v2080_v1 = vsel %vm1677_vm14, 1.0, %v2819_v8 }
0x1117   : > { %v1680_v3 = vadd.f32 %v2080_v1, %v2079_v63 }
0x1119   : > { %v1745_v4 = vmul.f32 %v1744_v2, %v1680_v3 }
0x111b   : > { %v1746_v5 = vpack.c.bf16 %v1745_v4, %v1745_v4 }
0x111d   : > { %2282 = vmatmul.mubr.bf16.vlgmr.msra.gmra.mrb[32].mxu1 %v1746_v5 }
0x11f0   : > { %v1852_v7 = vpop.f32.mrb[32].mxu1 }
0x11f1   : > { %v1853_v36 = vadd.f32 %v2085_v6, %v1852_v7  ;;  %v2283_v9 = vpop.f32.mrb[33].mxu1 }
0x11f2   : > { %v1855_v10 = vpop.f32.mrb[34].mxu1 }
0x11f3   : > { %v1858_v8 = vadd.f32 %v1853_v36, %v3340_v41  ;;  %v2284_v11 = vpop.f32.mrb[35].mxu1 }
0x11f5   : > { %1859 = vst.msk [vmem:[%s656_s18] sm:$0xff] %vm663_vm0, %v1858_v8 }
0x11f6   : > { %2737 = shalt.err (!%p2734_p9)
}
0x11f7   : > { %s2738_s22 = scalar_lea.hbm %s3447_s1, 128  ;;  %s2742_s27 = scalar_lea.hbm %s3555_s16, 256 }
0x11f8   : > { %p2739_p12 = scmp.ne.s32.totalorder %s3447_s1, %s2738_s22  ;;  %p2743_p3 = scmp.lt.u32.totalorder %s3447_s1, %s3555_s16 }
0x11f9   : > { %p2744_p4 = scmp.lt.u32.totalorder %s2742_s27, %s2738_s22  ;;  %p2746_p8 = scmp.lt.u32.totalorder %s2738_s22, %s3447_s1 }
0x11fa   : > { %p2740_p10 = pnand %p2739_p12, %p3556_p11 }
0x11fb   : > { %p2745_p7 = por %p2744_p4, %p2743_p3 }
0x11fc   : > { %p2741_p2 = pneg %p2740_p10 }
0x11fd   : > { %p2747_p13 = por %p2746_p8, %p2745_p7 }
0x11ff   : > { %p2748_p1 = pnand %p2747_p13, %p2741_p2 }
0x1201   : > { %2751 = shalt.err (!%p2748_p1)
}
0x1202   : > { %2321 = dma.vmem_to_hbm [thread:$0]  (%p3556_p11), %s3449_s29, 128, %s3447_s1, %s1861_s28  }
0x1203 PF: > { %s3557_s18 = sld [smem:[#allocation26_spill]]  ;;  %s3558_s2 = sld [smem:[#allocation24_spill]] }
0x1204   : > { %s3559_s23 = sld [smem:[#allocation30_spill]] }
0x1209   : > { %p2373_p0 = scmp.ge.s32.totalorder %s3557_s18, 2  ;;  %s1886_s26 = sand.u32 1, %s3558_s2  }
0x120a   : > { %p3560_p6 = scmp.ne.s32.totalorder %s3559_s23, 0  ;;  %s1887_s19 = scalar_lea.sflag [#allocation4], %s1886_s26 }
0x120c   : > { %p2352_p5 = pnand %p2373_p0, %p3560_p6 }
0x120e   : > { %2789 = dma.done.wait (!%p2352_p5), %s1887_s19, 128  }
0x120f   : > { %2791 = vsyncadd (!%p2352_p5), %s1887_s19, 4294967168  ;;  %s3561_s27 = sld [smem:[#allocation27_spill]]  ;;  %s3562_s20 = sld [smem:[#allocation25_spill]] }
0x1210   : > { %s3563_s26 = sld [smem:[#allocation28_spill]]  ;;  %s3564_s24 = smov %s2798_s25 }
0x1215   : > { %p32_p9 = scmp.ge.s32.totalorder %s3561_s27, 4   ;;  %s3565_s25 = smov %s3562_s20 }
0x1217   :  { %34 = sbr.rel (!%p32_p9) target bundleno = 15 (0xf), region = 160 }
0x121e   :  { %1892 = vsyncpa [#allocation3], 1 }
0x121f   :  { %1894 = vsyncpa [#allocation3 + $0x1], 1 }
0x1220   :  { %1895 = vsyncpa [#allocation6], 1 }
0x1221   :  { %1896 = vsyncpa [#allocation9], 1 }
0x1222   :  { %1897 = vsyncpa [#allocation12], 1 }
0x1223   :  { %1898 = vsyncpa [#allocation15], 1 }
0x1224   :  { %1899 = vsyncpa [#allocation4], 1 }
0x1225   :  { %1901 = vsyncpa [#allocation4 + $0x1], 1 }

</bundles_post_ra>
